<compile_context>
chip_gen: v6e
topology: v6e:2x2x1
jax: 0.10.0
libtpu: 0.0.40
codegen_flags: <defaults>
</compile_context>

<pallas_src>
import jax
import jax.numpy as jnp
from jax.experimental import pallas as pl
from jax.experimental.pallas import tpu as pltpu

# ----------------------------- configuration -------------------------------
H = 64            # hidden size of both LMs
NH = 4            # attention heads
DH = H // NH
FF = 128          # feed-forward dim
V1 = 128          # firstLM vocab size
V2 = 128          # secondLM vocab size
N_LAYERS_1 = 2    # firstLM encoder layers
N_LAYERS_2 = 2    # secondLM encoder layers
N_LABELS = 3      # SNLI labels
MAX_POS = 32
MASK_TOKEN_ID = 3
N_NONCES = 2
LAYERS = (-2, -1)  # layers combined by combine_layers
RESCALE = True

# Matmul operand dtype.  jnp.bfloat16 is the right choice on v6e / v7x
# (halves operand bytes / vreg footprint; accumulation stays f32 via
# preferred_element_type); keep f32 on v5e (no bf16 VPU/EUP).
MXU_DTYPE = jnp.float32

LAYER_STACK_KEYS = ("wqkv", "bqkv", "wo", "bo", "w1", "b1", "w2", "b2",
                    "ln1_g", "ln1_b", "ln2_g", "ln2_b")


# --------------------------- in-kernel helpers ------------------------------
def _ln(x, g, b, eps=1e-5):
    mu = jnp.mean(x, axis=-1, keepdims=True)
    var = jnp.mean(jnp.square(x - mu), axis=-1, keepdims=True)
    return (x - mu) * jax.lax.rsqrt(var + eps) * g + b


def _mm(a, b):
    return jnp.dot(a.astype(MXU_DTYPE), b.astype(MXU_DTYPE),
                   preferred_element_type=jnp.float32)


def _qk(q, k):
    # q @ k^T without an explicit transpose (contract last dims).
    return jax.lax.dot_general(q.astype(MXU_DTYPE), k.astype(MXU_DTYPE),
                               (((1,), (1,)), ((), ())),
                               preferred_element_type=jnp.float32)


def _run_layers(x, bias, layer_refs, n_layers, activation):
    """Post-LN transformer encoder layers on one example: x is (rows, H),
    bias is the (1, rows) additive key-padding bias (hoisted, reused across
    layers and heads)."""
    (wqkv, bqkv, wo, bo, w1, b1, w2, b2, g1, be1, g2, be2) = layer_refs
    scale = 1.0 / float(DH) ** 0.5
    hs = []
    for l in range(n_layers):
        qkv = _mm(x, wqkv[l]) + bqkv[l]          # fused QKV: (rows, 3H)
        wo_l = wo[l]
        attn = None
        for h in range(NH):
            q = qkv[:, h * DH:(h + 1) * DH]
            k = qkv[:, H + h * DH:H + (h + 1) * DH]
            v = qkv[:, 2 * H + h * DH:2 * H + (h + 1) * DH]
            s = _qk(q, k) * scale + bias          # (rows, rows)
            p = jax.nn.softmax(s, axis=-1)
            o_h = _mm(p, v)                       # (rows, DH)
            # (concat heads) @ W_o  ==  sum_h  o_h @ W_o[h*DH:(h+1)*DH, :]
            c = _mm(o_h, wo_l[h * DH:(h + 1) * DH, :])
            attn = c if attn is None else attn + c
        a = attn + bo[l]
        x = _ln(x + a, g1[l], be1[l])
        f = _mm(x, w1[l]) + b1[l]
        f = jnp.maximum(f, 0.0) if activation == "relu" else jax.nn.gelu(f)
        f = _mm(f, w2[l]) + b2[l]
        x = _ln(x + f, g2[l], be2[l])
        hs.append(x)
    return x, hs


# ------------------------------ fused kernels -------------------------------
def _context_kernel(*refs):
    # Fused per-context pipeline: firstLM embedding + 2 encoder layers,
    # combine_layers, CLS prepend, 1-layer emb_gen (relu) -> CLS output.
    ids_ref, bias1_ref, bias2_ref = refs[0:3]
    wemb_ref, pemb_ref, lng_ref, lnb_ref = refs[3:7]
    first_layers = refs[7:19]
    cls_ref = refs[19]
    eg_layers = refs[20:32]
    out_ref = refs[32]
    xbuf = refs[33]                                   # VMEM scratch (S+1, H)

    S = ids_ref.shape[1]
    V = wemb_ref.shape[0]

    ids = ids_ref[0]                                  # (S, 1) int32
    onehot = (jax.lax.broadcasted_iota(jnp.int32, (S, V), 1) == ids)
    emb = _mm(onehot.astype(jnp.float32), wemb_ref[...]) + pemb_ref[...]
    x = _ln(emb, lng_ref[...], lnb_ref[...])

    hidden = [x]
    x, hs = _run_layers(x, bias1_ref[0], first_layers, N_LAYERS_1, "gelu")
    hidden += hs
    # TODO(synk): combine_layers source not provided; using the mean of the
    # selected hidden-state layers.
    combined = sum(hidden[l] for l in LAYERS) / float(len(LAYERS))
    # dropout(0.2) is identity in the deterministic/eval forward.

    xbuf[0:1, :] = cls_ref[...]                       # prepend CLS token
    xbuf[pl.ds(1, S), :] = combined
    y, _ = _run_layers(xbuf[...], bias2_ref[0], eg_layers, 1, "relu")
    out_ref[0] = y[0:1, :]                            # CLS row = nonce embed


def _task_kernel(*refs):
    # Fused per-task-row pipeline: embedding with rank-1 memory correction,
    # secondLM embedding LN + 2 encoder layers, SNLI classification head.
    nonce_ref = refs[0]                               # SMEM (B2,) int32
    ids_ref, mem_ref, bias_ref = refs[1:4]
    wemb_ref, pemb_ref, lng_ref, lnb_ref = refs[4:8]
    layer_refs = refs[8:20]
    cdw_ref, cdb_ref, cow_ref, cob_ref = refs[20:24]
    logits_ref, hs_ref = refs[24:26]

    S = ids_ref.shape[1]
    V = wemb_ref.shape[0]

    ids = ids_ref[0]                                  # (S, 1) int32
    onehot = (jax.lax.broadcasted_iota(jnp.int32, (S, V), 1) == ids)
    base = _mm(onehot.astype(jnp.float32), wemb_ref[...])

    # get_new_weights_new + F.embedding as a rank-1 correction; the embedding
    # table stays read-only / VMEM-resident across the grid.
    r = nonce_ref[pl.program_id(0)]
    r_onehot = (jax.lax.broadcasted_iota(jnp.int32, (1, V), 1) == r)
    w_r = _mm(r_onehot.astype(jnp.float32), wemb_ref[...])        # (1, H)
    sel = (ids == r).astype(jnp.float32)                          # (S, 1)
    emb = base + sel * (mem_ref[0] - w_r)

    x = _ln(emb + pemb_ref[...], lng_ref[...], lnb_ref[...])
    hs_ref[0, 0] = x
    x, hs = _run_layers(x, bias_ref[0], layer_refs, N_LAYERS_2, "gelu")
    for i, h in enumerate(hs):
        hs_ref[0, i + 1] = h

    cls = x[0:1, :]                                   # <s> pooling
    hcls = jnp.tanh(_mm(cls, cdw_ref[...]) + cdb_ref[...])
    logits_ref[0] = _mm(hcls, cow_ref[...]) + cob_ref[...]


# ------------------------------ call wrappers --------------------------------
def _resident_spec(shape):
    nd = len(shape)
    return pl.BlockSpec(shape, lambda *_, nd=nd: (0,) * nd)


def context_forward(params, ids, bias1, bias2):
    Nc, S = ids.shape
    fl = params["firstLM"]
    fstack = params["firstLM_stack"]
    egstack = params["emb_gen_stack"]

    weight_args = ([fl["word_emb"], fl["pos_emb"][:S],
                    fl["emb_ln_g"].reshape(1, H), fl["emb_ln_b"].reshape(1, H)]
                   + [fstack[k] for k in LAYER_STACK_KEYS]
                   + [params["cls_token"]]
                   + [egstack[k] for k in LAYER_STACK_KEYS])

    in_specs = ([pl.BlockSpec((1, S, 1), lambda c: (c, 0, 0)),
                 pl.BlockSpec((1, 1, S), lambda c: (c, 0, 0)),
                 pl.BlockSpec((1, 1, S + 1), lambda c: (c, 0, 0))]
                + [_resident_spec(a.shape) for a in weight_args])

    return pl.pallas_call(
        _context_kernel,
        out_shape=jax.ShapeDtypeStruct((Nc, 1, H), jnp.float32),
        grid=(Nc,),
        in_specs=in_specs,
        out_specs=pl.BlockSpec((1, 1, H), lambda c: (c, 0, 0)),
        scratch_shapes=[pltpu.VMEM((S + 1, H), jnp.float32)],
        compiler_params=pltpu.CompilerParams(dimension_semantics=("parallel",)),
    )(ids.reshape(Nc, S, 1).astype(jnp.int32),
      bias1.astype(jnp.float32), bias2.astype(jnp.float32), *weight_args)


def task_forward(params, task_ids, nonce_idx, mem_rows, bias):
    B2, S = task_ids.shape
    sl = params["secondLM"]
    sstack = params["secondLM_stack"]

    weight_args = ([sl["word_emb"], sl["pos_emb"][:S],
                    sl["emb_ln_g"].reshape(1, H), sl["emb_ln_b"].reshape(1, H)]
                   + [sstack[k] for k in LAYER_STACK_KEYS]
                   + [sl["cls_dense_w"], sl["cls_dense_b"].reshape(1, H),
                      sl["cls_out_w"], sl["cls_out_b"].reshape(1, N_LABELS)])

    in_specs = ([pl.BlockSpec((1, S, 1), lambda b, *_: (b, 0, 0)),
                 pl.BlockSpec((1, 1, H), lambda b, *_: (b, 0, 0)),
                 pl.BlockSpec((1, 1, S), lambda b, *_: (b, 0, 0))]
                + [_resident_spec(a.shape) for a in weight_args])

    grid_spec = pltpu.PrefetchScalarGridSpec(
        num_scalar_prefetch=1,
        grid=(B2,),
        in_specs=in_specs,
        out_specs=[pl.BlockSpec((1, 1, N_LABELS), lambda b, *_: (b, 0, 0)),
                   pl.BlockSpec((1, N_LAYERS_2 + 1, S, H),
                                lambda b, *_: (b, 0, 0, 0))],
    )
    logits, hs = pl.pallas_call(
        _task_kernel,
        out_shape=(jax.ShapeDtypeStruct((B2, 1, N_LABELS), jnp.float32),
                   jax.ShapeDtypeStruct((B2, N_LAYERS_2 + 1, S, H), jnp.float32)),
        grid_spec=grid_spec,
        compiler_params=pltpu.CompilerParams(dimension_semantics=("parallel",)),
    )(nonce_idx.astype(jnp.int32),
      task_ids.reshape(B2, S, 1).astype(jnp.int32),
      mem_rows.astype(jnp.float32), bias.astype(jnp.float32), *weight_args)
    return logits.reshape(B2, N_LABELS), hs


# ------------------------------- forward glue --------------------------------
def swap_with_mask(ids, first_list, mask_token_id):
    out = ids
    for nonce in first_list:
        out = jnp.where(out == nonce, mask_token_id, out)
    return out


def morph_memory_snli_forward(params, batch):
    mlm_ids = batch["mlm_input_ids"]            # (b, k, l)
    mlm_attn = batch["mlm_attention_mask"]      # (b, k, l)
    task_ids_full = batch["task_input_ids"]     # (b_task, k_task, l_task)
    task_attn_full = batch["task_attention_mask"]
    nonceMLM = jnp.asarray(batch["nonceMLM"], jnp.int32)   # (b,)
    task_labels = jnp.asarray(batch["task_labels"], jnp.int32)

    b, k, l = mlm_ids.shape
    b_task, k_task, l_task = task_ids_full.shape

    # ---- context path: batched over all b*k contexts (no Python loop) -----
    ctx_ids = mlm_ids.reshape(b * k, l)
    ctx_attn = mlm_attn.reshape(b * k, l).astype(jnp.float32)
    new_inputs = swap_with_mask(ctx_ids, params["first_list"], MASK_TOKEN_ID)
    # additive key-padding biases, hoisted: computed once per sequence
    bias1 = ((1.0 - ctx_attn) * -1e9).reshape(b * k, 1, l)
    attn_cat = jnp.concatenate([jnp.ones((b * k, 1), jnp.float32), ctx_attn],
                               axis=1)
    bias2 = ((1.0 - attn_cat) * -1e9).reshape(b * k, 1, l + 1)

    nonce_embeds = context_forward(params, new_inputs, bias1, bias2)
    nonce_embeds = nonce_embeds.reshape(b, k, H)

    # OnlineProtoNet with mean aggregation: one memory per task example.
    mem = jnp.mean(nonce_embeds, axis=1)                      # (b, H)
    if RESCALE:
        # TODO(synk): OnlineProtoNet.retrieve(normalize=True) source not
        # provided; rescaling the stored embedding to the mean row norm.
        norm = jnp.linalg.norm(mem, axis=-1, keepdims=True)
        mem = mem / jnp.maximum(norm, 1e-6) * params["mean_norm"]

    # ---- task path ---------------------------------------------------------
    B2 = b_task * k_task
    task_ids = task_ids_full.reshape(B2, l_task)
    task_attn = task_attn_full.reshape(B2, l_task).astype(jnp.float32)
    bias_t = ((1.0 - task_attn) * -1e9).reshape(B2, 1, l_task)
    # broadcast each example's memory / nonce id over its k_task rows
    mem_rep = jnp.repeat(mem, k_task, axis=0).reshape(B2, 1, H)
    nonce_rep = jnp.repeat(nonceMLM, k_task, axis=0)

    logits, hs = task_forward(params, task_ids, nonce_rep, mem_rep, bias_t)

    logp = jax.nn.log_softmax(logits, axis=-1)
    labels = task_labels.reshape(-1)
    if labels.shape[0] != logits.shape[0]:   # labels given per task example
        labels = jnp.repeat(labels, k_task)
    loss = -jnp.mean(jnp.take_along_axis(logp, labels[:, None], axis=1))
    hidden_states = [hs[:, i] for i in range(hs.shape[1])]
    return {"loss": loss, "logits": logits, "hidden_states": hidden_states}


# ----------------------------- parameter setup ------------------------------
def stack_layer_params(layers):
    def st(key):
        return jnp.stack([lp[key] for lp in layers])

    def stv(key):
        return jnp.stack([lp[key].reshape(1, -1) for lp in layers])

    wqkv = jnp.stack([jnp.concatenate([lp["wq"], lp["wk"], lp["wv"]], axis=1)
                      for lp in layers])                    # (L, H, 3H)
    bqkv = jnp.stack([jnp.concatenate([lp["bq"], lp["bk"], lp["bv"]])
                      .reshape(1, -1) for lp in layers])    # (L, 1, 3H)
    return {"wqkv": wqkv, "bqkv": bqkv,
            "wo": st("wo"), "bo": stv("bo"),
            "w1": st("w1"), "b1": stv("b1"),
            "w2": st("w2"), "b2": stv("b2"),
            "ln1_g": stv("ln1_g"), "ln1_b": stv("ln1_b"),
            "ln2_g": stv("ln2_g"), "ln2_b": stv("ln2_b")}


def init_params(key):
    def dense(k, fan_in, fan_out):
        w = jax.random.normal(k, (fan_in, fan_out), jnp.float32) * 0.02
        return w, jnp.zeros((fan_out,), jnp.float32)

    def layer_params(k):
        ks = jax.random.split(k, 6)
        wq, bq = dense(ks[0], H, H)
        wk, bk = dense(ks[1], H, H)
        wv, bv = dense(ks[2], H, H)
        wo, bo = dense(ks[3], H, H)
        w1, b1 = dense(ks[4], H, FF)
        w2, b2 = dense(ks[5], FF, H)
        return {"wq": wq, "bq": bq, "wk": wk, "bk": bk, "wv": wv, "bv": bv,
                "wo": wo, "bo": bo, "w1": w1, "b1": b1, "w2": w2, "b2": b2,
                "ln1_g": jnp.ones((H,)), "ln1_b": jnp.zeros((H,)),
                "ln2_g": jnp.ones((H,)), "ln2_b": jnp.zeros((H,))}

    def lm_params(k, vocab, n_layers):
        ks = jax.random.split(k, n_layers + 2)
        return {
            "word_emb": jax.random.normal(ks[0], (vocab, H), jnp.float32) * 0.02,
            "pos_emb": jax.random.normal(ks[1], (MAX_POS, H), jnp.float32) * 0.02,
            "emb_ln_g": jnp.ones((H,)), "emb_ln_b": jnp.zeros((H,)),
            "layers": [layer_params(ks[2 + i]) for i in range(n_layers)],
        }

    keys = jax.random.split(key, 6)
    firstLM = lm_params(keys[0], V1, N_LAYERS_1)
    secondLM = lm_params(keys[1], V2, N_LAYERS_2)
    # nonce rows initialized with the mean of the non-nonce rows (as in __init__)
    m_first = jnp.mean(firstLM["word_emb"][: V1 - N_NONCES], axis=0)
    m_second = jnp.mean(secondLM["word_emb"][: V2 - N_NONCES], axis=0)
    firstLM["word_emb"] = firstLM["word_emb"].at[V1 - N_NONCES:].set(m_first)
    secondLM["word_emb"] = secondLM["word_emb"].at[V2 - N_NONCES:].set(m_second)
    cw, cb = dense(keys[2], H, H)
    ow, ob = dense(keys[3], H, N_LABELS)
    secondLM.update({"cls_dense_w": cw, "cls_dense_b": cb,
                     "cls_out_w": ow, "cls_out_b": ob})
    emb_gen = layer_params(keys[4])
    cls_token = jax.random.normal(keys[5], (1, H), jnp.float32)
    norms = jnp.linalg.norm(secondLM["word_emb"][: V2 - N_NONCES], axis=1)
    return {
        "firstLM": firstLM, "secondLM": secondLM,
        "firstLM_stack": stack_layer_params(firstLM["layers"]),
        "secondLM_stack": stack_layer_params(secondLM["layers"]),
        "emb_gen_stack": stack_layer_params([emb_gen]),
        "cls_token": cls_token,
        "first_list": list(range(V1 - N_NONCES, V1)),
        "std_second": jnp.std(norms), "mean_norm": jnp.mean(norms),
    }


# ---------------------------------- main -------------------------------------
if __name__ == "__main__":
    key = jax.random.PRNGKey(0)
    pkey, dkey = jax.random.split(key)
    params = init_params(pkey)

    b, k_mlm, l_mlm = 2, 2, 8
    b_task, k_task, l_task = 2, 1, 8
    k1, k2, k3 = jax.random.split(dkey, 3)

    nonceMLM = [V1 - N_NONCES, V1 - N_NONCES + 1]   # new-token ids per example

    mlm_input_ids = jax.random.randint(
        k1, (b, k_mlm, l_mlm), 4, V1 - N_NONCES, dtype=jnp.int32)
    for i in range(b):
        mlm_input_ids = mlm_input_ids.at[i, :, 2].set(nonceMLM[i])
    mlm_attention_mask = jnp.ones((b, k_mlm, l_mlm), jnp.int32)

    task_input_ids = jax.random.randint(
        k2, (b_task, k_task, l_task), 4, V2 - N_NONCES, dtype=jnp.int32)
    for i in range(b_task):
        task_input_ids = task_input_ids.at[i, :, 3].set(nonceMLM[i])
    task_attention_mask = jnp.ones((b_task, k_task, l_task), jnp.int32)
    task_labels = jax.random.randint(k3, (b_task,), 0, N_LABELS, dtype=jnp.int32)

    batch = {
        "mlm_input_ids": mlm_input_ids,
        "mlm_attention_mask": mlm_attention_mask,
        "task_input_ids": task_input_ids,
        "task_attention_mask": task_attention_mask,
        "nonceMLM": nonceMLM,
        "task_labels": task_labels,
    }

    out = morph_memory_snli_forward(params, batch)
    out = jax.block_until_ready(out)
    assert out["logits"].shape == (b_task * k_task, N_LABELS)
    assert jnp.isfinite(out["loss"])
    print("KERNEL_OK")
</pallas_src>

<mosaic_0001>
module attributes {stable_mosaic.version = 11 : i64} {
  func.func @_context_kernel(%arg0: i32, %arg1: memref<1x8x1xi32, #tpu.memory_space<vmem>>, %arg2: memref<1x1x8xf32, #tpu.memory_space<vmem>>, %arg3: memref<1x1x9xf32, #tpu.memory_space<vmem>>, %arg4: memref<128x64xf32, #tpu.memory_space<vmem>>, %arg5: memref<8x64xf32, #tpu.memory_space<vmem>>, %arg6: memref<1x64xf32, #tpu.memory_space<vmem>>, %arg7: memref<1x64xf32, #tpu.memory_space<vmem>>, %arg8: memref<2x64x192xf32, #tpu.memory_space<vmem>>, %arg9: memref<2x1x192xf32, #tpu.memory_space<vmem>>, %arg10: memref<2x64x64xf32, #tpu.memory_space<vmem>>, %arg11: memref<2x1x64xf32, #tpu.memory_space<vmem>>, %arg12: memref<2x64x128xf32, #tpu.memory_space<vmem>>, %arg13: memref<2x1x128xf32, #tpu.memory_space<vmem>>, %arg14: memref<2x128x64xf32, #tpu.memory_space<vmem>>, %arg15: memref<2x1x64xf32, #tpu.memory_space<vmem>>, %arg16: memref<2x1x64xf32, #tpu.memory_space<vmem>>, %arg17: memref<2x1x64xf32, #tpu.memory_space<vmem>>, %arg18: memref<2x1x64xf32, #tpu.memory_space<vmem>>, %arg19: memref<2x1x64xf32, #tpu.memory_space<vmem>>, %arg20: memref<1x64xf32, #tpu.memory_space<vmem>>, %arg21: memref<1x64x192xf32, #tpu.memory_space<vmem>>, %arg22: memref<1x1x192xf32, #tpu.memory_space<vmem>>, %arg23: memref<1x64x64xf32, #tpu.memory_space<vmem>>, %arg24: memref<1x1x64xf32, #tpu.memory_space<vmem>>, %arg25: memref<1x64x128xf32, #tpu.memory_space<vmem>>, %arg26: memref<1x1x128xf32, #tpu.memory_space<vmem>>, %arg27: memref<1x128x64xf32, #tpu.memory_space<vmem>>, %arg28: memref<1x1x64xf32, #tpu.memory_space<vmem>>, %arg29: memref<1x1x64xf32, #tpu.memory_space<vmem>>, %arg30: memref<1x1x64xf32, #tpu.memory_space<vmem>>, %arg31: memref<1x1x64xf32, #tpu.memory_space<vmem>>, %arg32: memref<1x1x64xf32, #tpu.memory_space<vmem>>, %arg33: memref<1x1x64xf32, #tpu.memory_space<vmem>>, %arg34: memref<9x64xf32, #tpu.memory_space<vmem>>) attributes {dimension_semantics = [#tpu.dimension_semantics<parallel>], iteration_bounds = array<i64: 4>, scalar_prefetch = 0 : i64, scratch_operands = 1 : i64, tpu.core_type = #tpu.core_type<tc>, window_params = [{transform_indices = @transform_0, window_bounds = array<i64: 1, 8, 1>}, {transform_indices = @transform_1, window_bounds = array<i64: 1, 1, 8>}, {transform_indices = @transform_2, window_bounds = array<i64: 1, 1, 9>}, {pipeline_mode = #tpu.pipeline_mode<synchronous>, transform_indices = @transform_3, window_bounds = array<i64: 128, 64>}, {pipeline_mode = #tpu.pipeline_mode<synchronous>, transform_indices = @transform_4, window_bounds = array<i64: 8, 64>}, {pipeline_mode = #tpu.pipeline_mode<synchronous>, transform_indices = @transform_5, window_bounds = array<i64: 1, 64>}, {pipeline_mode = #tpu.pipeline_mode<synchronous>, transform_indices = @transform_6, window_bounds = array<i64: 1, 64>}, {pipeline_mode = #tpu.pipeline_mode<synchronous>, transform_indices = @transform_7, window_bounds = array<i64: 2, 64, 192>}, {pipeline_mode = #tpu.pipeline_mode<synchronous>, transform_indices = @transform_8, window_bounds = array<i64: 2, 1, 192>}, {pipeline_mode = #tpu.pipeline_mode<synchronous>, transform_indices = @transform_9, window_bounds = array<i64: 2, 64, 64>}, {pipeline_mode = #tpu.pipeline_mode<synchronous>, transform_indices = @transform_10, window_bounds = array<i64: 2, 1, 64>}, {pipeline_mode = #tpu.pipeline_mode<synchronous>, transform_indices = @transform_11, window_bounds = array<i64: 2, 64, 128>}, {pipeline_mode = #tpu.pipeline_mode<synchronous>, transform_indices = @transform_12, window_bounds = array<i64: 2, 1, 128>}, {pipeline_mode = #tpu.pipeline_mode<synchronous>, transform_indices = @transform_13, window_bounds = array<i64: 2, 128, 64>}, {pipeline_mode = #tpu.pipeline_mode<synchronous>, transform_indices = @transform_14, window_bounds = array<i64: 2, 1, 64>}, {pipeline_mode = #tpu.pipeline_mode<synchronous>, transform_indices = @transform_15, window_bounds = array<i64: 2, 1, 64>}, {pipeline_mode = #tpu.pipeline_mode<synchronous>, transform_indices = @transform_16, window_bounds = array<i64: 2, 1, 64>}, {pipeline_mode = #tpu.pipeline_mode<synchronous>, transform_indices = @transform_17, window_bounds = array<i64: 2, 1, 64>}, {pipeline_mode = #tpu.pipeline_mode<synchronous>, transform_indices = @transform_18, window_bounds = array<i64: 2, 1, 64>}, {pipeline_mode = #tpu.pipeline_mode<synchronous>, transform_indices = @transform_19, window_bounds = array<i64: 1, 64>}, {pipeline_mode = #tpu.pipeline_mode<synchronous>, transform_indices = @transform_20, window_bounds = array<i64: 1, 64, 192>}, {pipeline_mode = #tpu.pipeline_mode<synchronous>, transform_indices = @transform_21, window_bounds = array<i64: 1, 1, 192>}, {pipeline_mode = #tpu.pipeline_mode<synchronous>, transform_indices = @transform_22, window_bounds = array<i64: 1, 64, 64>}, {pipeline_mode = #tpu.pipeline_mode<synchronous>, transform_indices = @transform_23, window_bounds = array<i64: 1, 1, 64>}, {pipeline_mode = #tpu.pipeline_mode<synchronous>, transform_indices = @transform_24, window_bounds = array<i64: 1, 64, 128>}, {pipeline_mode = #tpu.pipeline_mode<synchronous>, transform_indices = @transform_25, window_bounds = array<i64: 1, 1, 128>}, {pipeline_mode = #tpu.pipeline_mode<synchronous>, transform_indices = @transform_26, window_bounds = array<i64: 1, 128, 64>}, {pipeline_mode = #tpu.pipeline_mode<synchronous>, transform_indices = @transform_27, window_bounds = array<i64: 1, 1, 64>}, {pipeline_mode = #tpu.pipeline_mode<synchronous>, transform_indices = @transform_28, window_bounds = array<i64: 1, 1, 64>}, {pipeline_mode = #tpu.pipeline_mode<synchronous>, transform_indices = @transform_29, window_bounds = array<i64: 1, 1, 64>}, {pipeline_mode = #tpu.pipeline_mode<synchronous>, transform_indices = @transform_30, window_bounds = array<i64: 1, 1, 64>}, {pipeline_mode = #tpu.pipeline_mode<synchronous>, transform_indices = @transform_31, window_bounds = array<i64: 1, 1, 64>}, {transform_indices = @transform_32, window_bounds = array<i64: 1, 1, 64>}]} {
    %c0 = arith.constant 0 : index
    %c0_0 = arith.constant 0 : index
    %c0_1 = arith.constant 0 : index
    %0 = vector.load %arg1[%c0, %c0_0, %c0_1] : memref<1x8x1xi32, #tpu.memory_space<vmem>>, vector<1x8x1xi32>
    %1 = vector.shape_cast %0 : vector<1x8x1xi32> to vector<8x1xi32>
    %2 = tpu.iota {dimensions = array<i32: 1>} : vector<8x128xi32>
    %3 = vector.broadcast %1 : vector<8x1xi32> to vector<8x128xi32>
    %4 = arith.cmpi eq, %2, %3 : vector<8x128xi32>
    %5 = arith.extui %4 : vector<8x128xi1> to vector<8x128xi32>
    %6 = arith.sitofp %5 : vector<8x128xi32> to vector<8x128xf32>
    %c0_2 = arith.constant 0 : index
    %c0_3 = arith.constant 0 : index
    %7 = vector.load %arg4[%c0_2, %c0_3] : memref<128x64xf32, #tpu.memory_space<vmem>>, vector<128x64xf32>
    %cst = arith.constant dense<0.000000e+00> : vector<8x64xf32>
    %8 = tpu.matmul %6, %7, %cst {dimension_numbers = #tpu.dot_dimension_numbers<[1], [0], [0], [1], [0, 0, 1, 1], [], []>} : vector<8x128xf32>, vector<128x64xf32>, vector<8x64xf32> -> vector<8x64xf32>
    %c0_4 = arith.constant 0 : index
    %c0_5 = arith.constant 0 : index
    %9 = vector.load %arg5[%c0_4, %c0_5] : memref<8x64xf32, #tpu.memory_space<vmem>>, vector<8x64xf32>
    %10 = arith.addf %8, %9 : vector<8x64xf32>
    %c0_6 = arith.constant 0 : index
    %c0_7 = arith.constant 0 : index
    %11 = vector.load %arg6[%c0_6, %c0_7] : memref<1x64xf32, #tpu.memory_space<vmem>>, vector<1x64xf32>
    %c0_8 = arith.constant 0 : index
    %c0_9 = arith.constant 0 : index
    %12 = vector.load %arg7[%c0_8, %c0_9] : memref<1x64xf32, #tpu.memory_space<vmem>>, vector<1x64xf32>
    %cst_10 = arith.constant dense<0.000000e+00> : vector<8xf32>
    %13 = vector.multi_reduction <add>, %10, %cst_10 [1] : vector<8x64xf32> to vector<8xf32>
    %14 = vector.shape_cast %13 : vector<8xf32> to vector<8x1xf32>
    %cst_11 = arith.constant 6.400000e+01 : f32
    %15 = vector.broadcast %cst_11 : f32 to vector<8x1xf32>
    %16 = arith.divf %14, %15 : vector<8x1xf32>
    %17 = vector.broadcast %16 : vector<8x1xf32> to vector<8x64xf32>
    %18 = arith.subf %10, %17 : vector<8x64xf32>
    %19 = arith.mulf %18, %18 : vector<8x64xf32>
    %cst_12 = arith.constant dense<0.000000e+00> : vector<8xf32>
    %20 = vector.multi_reduction <add>, %19, %cst_12 [1] : vector<8x64xf32> to vector<8xf32>
    %21 = vector.shape_cast %20 : vector<8xf32> to vector<8x1xf32>
    %cst_13 = arith.constant 6.400000e+01 : f32
    %22 = vector.broadcast %cst_13 : f32 to vector<8x1xf32>
    %23 = arith.divf %21, %22 : vector<8x1xf32>
    %24 = vector.broadcast %16 : vector<8x1xf32> to vector<8x64xf32>
    %25 = arith.subf %10, %24 : vector<8x64xf32>
    %cst_14 = arith.constant 9.99999974E-6 : f32
    %26 = vector.broadcast %cst_14 : f32 to vector<8x1xf32>
    %27 = arith.addf %23, %26 : vector<8x1xf32>
    %28 = math.rsqrt %27 : vector<8x1xf32>
    %29 = vector.broadcast %28 : vector<8x1xf32> to vector<8x64xf32>
    %30 = arith.mulf %25, %29 : vector<8x64xf32>
    %31 = vector.broadcast %11 : vector<1x64xf32> to vector<8x64xf32>
    %32 = arith.mulf %30, %31 : vector<8x64xf32>
    %33 = vector.broadcast %12 : vector<1x64xf32> to vector<8x64xf32>
    %34 = arith.addf %32, %33 : vector<8x64xf32>
    %c0_15 = arith.constant 0 : index
    %c0_16 = arith.constant 0 : index
    %c0_17 = arith.constant 0 : index
    %35 = vector.load %arg2[%c0_15, %c0_16, %c0_17] : memref<1x1x8xf32, #tpu.memory_space<vmem>>, vector<1x1x8xf32>
    %36 = vector.shape_cast %35 : vector<1x1x8xf32> to vector<1x8xf32>
    %c0_18 = arith.constant 0 : index
    %c0_19 = arith.constant 0 : index
    %c0_20 = arith.constant 0 : index
    %37 = vector.load %arg8[%c0_18, %c0_19, %c0_20] : memref<2x64x192xf32, #tpu.memory_space<vmem>>, vector<1x64x192xf32>
    %38 = vector.shape_cast %37 : vector<1x64x192xf32> to vector<64x192xf32>
    %cst_21 = arith.constant dense<0.000000e+00> : vector<8x192xf32>
    %39 = tpu.matmul %34, %38, %cst_21 {dimension_numbers = #tpu.dot_dimension_numbers<[1], [0], [0], [1], [0, 0, 1, 1], [], []>} : vector<8x64xf32>, vector<64x192xf32>, vector<8x192xf32> -> vector<8x192xf32>
    %c0_22 = arith.constant 0 : index
    %c0_23 = arith.constant 0 : index
    %c0_24 = arith.constant 0 : index
    %40 = vector.load %arg9[%c0_22, %c0_23, %c0_24] : memref<2x1x192xf32, #tpu.memory_space<vmem>>, vector<1x1x192xf32>
    %41 = vector.shape_cast %40 : vector<1x1x192xf32> to vector<1x192xf32>
    %42 = vector.broadcast %41 : vector<1x192xf32> to vector<8x192xf32>
    %43 = arith.addf %39, %42 : vector<8x192xf32>
    %c0_25 = arith.constant 0 : index
    %c0_26 = arith.constant 0 : index
    %c0_27 = arith.constant 0 : index
    %44 = vector.load %arg10[%c0_25, %c0_26, %c0_27] : memref<2x64x64xf32, #tpu.memory_space<vmem>>, vector<1x64x64xf32>
    %45 = vector.shape_cast %44 : vector<1x64x64xf32> to vector<64x64xf32>
    %46 = vector.extract_strided_slice %43 {offsets = [0, 0], sizes = [8, 16], strides = [1, 1]} : vector<8x192xf32> to vector<8x16xf32>
    %47 = vector.extract_strided_slice %43 {offsets = [0, 64], sizes = [8, 16], strides = [1, 1]} : vector<8x192xf32> to vector<8x16xf32>
    %48 = vector.extract_strided_slice %43 {offsets = [0, 128], sizes = [8, 16], strides = [1, 1]} : vector<8x192xf32> to vector<8x16xf32>
    %cst_28 = arith.constant dense<0.000000e+00> : vector<8x8xf32>
    %49 = tpu.matmul %46, %47, %cst_28 {dimension_numbers = #tpu.dot_dimension_numbers<[1], [1], [0], [0], [0, 0, 1, 0], [], []>} : vector<8x16xf32>, vector<8x16xf32>, vector<8x8xf32> -> vector<8x8xf32>
    %cst_29 = arith.constant 2.500000e-01 : f32
    %50 = vector.broadcast %cst_29 : f32 to vector<8x8xf32>
    %51 = arith.mulf %49, %50 : vector<8x8xf32>
    %52 = vector.broadcast %36 : vector<1x8xf32> to vector<8x8xf32>
    %53 = arith.addf %51, %52 : vector<8x8xf32>
    %cst_30 = arith.constant dense<0xFF800000> : vector<8xf32>
    %54 = vector.multi_reduction <maximumf>, %53, %cst_30 [1] : vector<8x8xf32> to vector<8xf32>
    %cst_31 = arith.constant 0xFF800000 : f32
    %55 = vector.broadcast %cst_31 : f32 to vector<8xf32>
    %56 = arith.maximumf %55, %54 : vector<8xf32>
    %57 = vector.shape_cast %56 : vector<8xf32> to vector<8x1xf32>
    %58 = vector.broadcast %57 : vector<8x1xf32> to vector<8x8xf32>
    %59 = arith.subf %53, %58 : vector<8x8xf32>
    %60 = math.exp %59 : vector<8x8xf32>
    %cst_32 = arith.constant dense<0.000000e+00> : vector<8xf32>
    %61 = vector.multi_reduction <add>, %60, %cst_32 [1] : vector<8x8xf32> to vector<8xf32>
    %62 = vector.shape_cast %61 : vector<8xf32> to vector<8x1xf32>
    %63 = vector.broadcast %62 : vector<8x1xf32> to vector<8x8xf32>
    %64 = arith.divf %60, %63 : vector<8x8xf32>
    %cst_33 = arith.constant dense<0.000000e+00> : vector<8x16xf32>
    %65 = tpu.matmul %64, %48, %cst_33 {dimension_numbers = #tpu.dot_dimension_numbers<[1], [0], [0], [1], [0, 0, 1, 1], [], []>} : vector<8x8xf32>, vector<8x16xf32>, vector<8x16xf32> -> vector<8x16xf32>
    %66 = vector.extract_strided_slice %45 {offsets = [0, 0], sizes = [16, 64], strides = [1, 1]} : vector<64x64xf32> to vector<16x64xf32>
    %cst_34 = arith.constant dense<0.000000e+00> : vector<8x64xf32>
    %67 = tpu.matmul %65, %66, %cst_34 {dimension_numbers = #tpu.dot_dimension_numbers<[1], [0], [0], [1], [0, 0, 1, 1], [], []>} : vector<8x16xf32>, vector<16x64xf32>, vector<8x64xf32> -> vector<8x64xf32>
    %68 = vector.extract_strided_slice %43 {offsets = [0, 16], sizes = [8, 16], strides = [1, 1]} : vector<8x192xf32> to vector<8x16xf32>
    %69 = vector.extract_strided_slice %43 {offsets = [0, 80], sizes = [8, 16], strides = [1, 1]} : vector<8x192xf32> to vector<8x16xf32>
    %70 = vector.extract_strided_slice %43 {offsets = [0, 144], sizes = [8, 16], strides = [1, 1]} : vector<8x192xf32> to vector<8x16xf32>
    %cst_35 = arith.constant dense<0.000000e+00> : vector<8x8xf32>
    %71 = tpu.matmul %68, %69, %cst_35 {dimension_numbers = #tpu.dot_dimension_numbers<[1], [1], [0], [0], [0, 0, 1, 0], [], []>} : vector<8x16xf32>, vector<8x16xf32>, vector<8x8xf32> -> vector<8x8xf32>
    %cst_36 = arith.constant 2.500000e-01 : f32
    %72 = vector.broadcast %cst_36 : f32 to vector<8x8xf32>
    %73 = arith.mulf %71, %72 : vector<8x8xf32>
    %74 = vector.broadcast %36 : vector<1x8xf32> to vector<8x8xf32>
    %75 = arith.addf %73, %74 : vector<8x8xf32>
    %cst_37 = arith.constant dense<0xFF800000> : vector<8xf32>
    %76 = vector.multi_reduction <maximumf>, %75, %cst_37 [1] : vector<8x8xf32> to vector<8xf32>
    %cst_38 = arith.constant 0xFF800000 : f32
    %77 = vector.broadcast %cst_38 : f32 to vector<8xf32>
    %78 = arith.maximumf %77, %76 : vector<8xf32>
    %79 = vector.shape_cast %78 : vector<8xf32> to vector<8x1xf32>
    %80 = vector.broadcast %79 : vector<8x1xf32> to vector<8x8xf32>
    %81 = arith.subf %75, %80 : vector<8x8xf32>
    %82 = math.exp %81 : vector<8x8xf32>
    %cst_39 = arith.constant dense<0.000000e+00> : vector<8xf32>
    %83 = vector.multi_reduction <add>, %82, %cst_39 [1] : vector<8x8xf32> to vector<8xf32>
    %84 = vector.shape_cast %83 : vector<8xf32> to vector<8x1xf32>
    %85 = vector.broadcast %84 : vector<8x1xf32> to vector<8x8xf32>
    %86 = arith.divf %82, %85 : vector<8x8xf32>
    %cst_40 = arith.constant dense<0.000000e+00> : vector<8x16xf32>
    %87 = tpu.matmul %86, %70, %cst_40 {dimension_numbers = #tpu.dot_dimension_numbers<[1], [0], [0], [1], [0, 0, 1, 1], [], []>} : vector<8x8xf32>, vector<8x16xf32>, vector<8x16xf32> -> vector<8x16xf32>
    %88 = vector.extract_strided_slice %45 {offsets = [16, 0], sizes = [16, 64], strides = [1, 1]} : vector<64x64xf32> to vector<16x64xf32>
    %cst_41 = arith.constant dense<0.000000e+00> : vector<8x64xf32>
    %89 = tpu.matmul %87, %88, %cst_41 {dimension_numbers = #tpu.dot_dimension_numbers<[1], [0], [0], [1], [0, 0, 1, 1], [], []>} : vector<8x16xf32>, vector<16x64xf32>, vector<8x64xf32> -> vector<8x64xf32>
    %90 = arith.addf %67, %89 : vector<8x64xf32>
    %91 = vector.extract_strided_slice %43 {offsets = [0, 32], sizes = [8, 16], strides = [1, 1]} : vector<8x192xf32> to vector<8x16xf32>
    %92 = vector.extract_strided_slice %43 {offsets = [0, 96], sizes = [8, 16], strides = [1, 1]} : vector<8x192xf32> to vector<8x16xf32>
    %93 = vector.extract_strided_slice %43 {offsets = [0, 160], sizes = [8, 16], strides = [1, 1]} : vector<8x192xf32> to vector<8x16xf32>
    %cst_42 = arith.constant dense<0.000000e+00> : vector<8x8xf32>
    %94 = tpu.matmul %91, %92, %cst_42 {dimension_numbers = #tpu.dot_dimension_numbers<[1], [1], [0], [0], [0, 0, 1, 0], [], []>} : vector<8x16xf32>, vector<8x16xf32>, vector<8x8xf32> -> vector<8x8xf32>
    %cst_43 = arith.constant 2.500000e-01 : f32
    %95 = vector.broadcast %cst_43 : f32 to vector<8x8xf32>
    %96 = arith.mulf %94, %95 : vector<8x8xf32>
    %97 = vector.broadcast %36 : vector<1x8xf32> to vector<8x8xf32>
    %98 = arith.addf %96, %97 : vector<8x8xf32>
    %cst_44 = arith.constant dense<0xFF800000> : vector<8xf32>
    %99 = vector.multi_reduction <maximumf>, %98, %cst_44 [1] : vector<8x8xf32> to vector<8xf32>
    %cst_45 = arith.constant 0xFF800000 : f32
    %100 = vector.broadcast %cst_45 : f32 to vector<8xf32>
    %101 = arith.maximumf %100, %99 : vector<8xf32>
    %102 = vector.shape_cast %101 : vector<8xf32> to vector<8x1xf32>
    %103 = vector.broadcast %102 : vector<8x1xf32> to vector<8x8xf32>
    %104 = arith.subf %98, %103 : vector<8x8xf32>
    %105 = math.exp %104 : vector<8x8xf32>
    %cst_46 = arith.constant dense<0.000000e+00> : vector<8xf32>
    %106 = vector.multi_reduction <add>, %105, %cst_46 [1] : vector<8x8xf32> to vector<8xf32>
    %107 = vector.shape_cast %106 : vector<8xf32> to vector<8x1xf32>
    %108 = vector.broadcast %107 : vector<8x1xf32> to vector<8x8xf32>
    %109 = arith.divf %105, %108 : vector<8x8xf32>
    %cst_47 = arith.constant dense<0.000000e+00> : vector<8x16xf32>
    %110 = tpu.matmul %109, %93, %cst_47 {dimension_numbers = #tpu.dot_dimension_numbers<[1], [0], [0], [1], [0, 0, 1, 1], [], []>} : vector<8x8xf32>, vector<8x16xf32>, vector<8x16xf32> -> vector<8x16xf32>
    %111 = vector.extract_strided_slice %45 {offsets = [32, 0], sizes = [16, 64], strides = [1, 1]} : vector<64x64xf32> to vector<16x64xf32>
    %cst_48 = arith.constant dense<0.000000e+00> : vector<8x64xf32>
    %112 = tpu.matmul %110, %111, %cst_48 {dimension_numbers = #tpu.dot_dimension_numbers<[1], [0], [0], [1], [0, 0, 1, 1], [], []>} : vector<8x16xf32>, vector<16x64xf32>, vector<8x64xf32> -> vector<8x64xf32>
    %113 = arith.addf %90, %112 : vector<8x64xf32>
    %114 = vector.extract_strided_slice %43 {offsets = [0, 48], sizes = [8, 16], strides = [1, 1]} : vector<8x192xf32> to vector<8x16xf32>
    %115 = vector.extract_strided_slice %43 {offsets = [0, 112], sizes = [8, 16], strides = [1, 1]} : vector<8x192xf32> to vector<8x16xf32>
    %116 = vector.extract_strided_slice %43 {offsets = [0, 176], sizes = [8, 16], strides = [1, 1]} : vector<8x192xf32> to vector<8x16xf32>
    %cst_49 = arith.constant dense<0.000000e+00> : vector<8x8xf32>
    %117 = tpu.matmul %114, %115, %cst_49 {dimension_numbers = #tpu.dot_dimension_numbers<[1], [1], [0], [0], [0, 0, 1, 0], [], []>} : vector<8x16xf32>, vector<8x16xf32>, vector<8x8xf32> -> vector<8x8xf32>
    %cst_50 = arith.constant 2.500000e-01 : f32
    %118 = vector.broadcast %cst_50 : f32 to vector<8x8xf32>
    %119 = arith.mulf %117, %118 : vector<8x8xf32>
    %120 = vector.broadcast %36 : vector<1x8xf32> to vector<8x8xf32>
    %121 = arith.addf %119, %120 : vector<8x8xf32>
    %cst_51 = arith.constant dense<0xFF800000> : vector<8xf32>
    %122 = vector.multi_reduction <maximumf>, %121, %cst_51 [1] : vector<8x8xf32> to vector<8xf32>
    %cst_52 = arith.constant 0xFF800000 : f32
    %123 = vector.broadcast %cst_52 : f32 to vector<8xf32>
    %124 = arith.maximumf %123, %122 : vector<8xf32>
    %125 = vector.shape_cast %124 : vector<8xf32> to vector<8x1xf32>
    %126 = vector.broadcast %125 : vector<8x1xf32> to vector<8x8xf32>
    %127 = arith.subf %121, %126 : vector<8x8xf32>
    %128 = math.exp %127 : vector<8x8xf32>
    %cst_53 = arith.constant dense<0.000000e+00> : vector<8xf32>
    %129 = vector.multi_reduction <add>, %128, %cst_53 [1] : vector<8x8xf32> to vector<8xf32>
    %130 = vector.shape_cast %129 : vector<8xf32> to vector<8x1xf32>
    %131 = vector.broadcast %130 : vector<8x1xf32> to vector<8x8xf32>
    %132 = arith.divf %128, %131 : vector<8x8xf32>
    %cst_54 = arith.constant dense<0.000000e+00> : vector<8x16xf32>
    %133 = tpu.matmul %132, %116, %cst_54 {dimension_numbers = #tpu.dot_dimension_numbers<[1], [0], [0], [1], [0, 0, 1, 1], [], []>} : vector<8x8xf32>, vector<8x16xf32>, vector<8x16xf32> -> vector<8x16xf32>
    %134 = vector.extract_strided_slice %45 {offsets = [48, 0], sizes = [16, 64], strides = [1, 1]} : vector<64x64xf32> to vector<16x64xf32>
    %cst_55 = arith.constant dense<0.000000e+00> : vector<8x64xf32>
    %135 = tpu.matmul %133, %134, %cst_55 {dimension_numbers = #tpu.dot_dimension_numbers<[1], [0], [0], [1], [0, 0, 1, 1], [], []>} : vector<8x16xf32>, vector<16x64xf32>, vector<8x64xf32> -> vector<8x64xf32>
    %136 = arith.addf %113, %135 : vector<8x64xf32>
    %c0_56 = arith.constant 0 : index
    %c0_57 = arith.constant 0 : index
    %c0_58 = arith.constant 0 : index
    %137 = vector.load %arg11[%c0_56, %c0_57, %c0_58] : memref<2x1x64xf32, #tpu.memory_space<vmem>>, vector<1x1x64xf32>
    %138 = vector.shape_cast %137 : vector<1x1x64xf32> to vector<1x64xf32>
    %139 = vector.broadcast %138 : vector<1x64xf32> to vector<8x64xf32>
    %140 = arith.addf %136, %139 : vector<8x64xf32>
    %141 = arith.addf %34, %140 : vector<8x64xf32>
    %c0_59 = arith.constant 0 : index
    %c0_60 = arith.constant 0 : index
    %c0_61 = arith.constant 0 : index
    %142 = vector.load %arg16[%c0_59, %c0_60, %c0_61] : memref<2x1x64xf32, #tpu.memory_space<vmem>>, vector<1x1x64xf32>
    %143 = vector.shape_cast %142 : vector<1x1x64xf32> to vector<1x64xf32>
    %c0_62 = arith.constant 0 : index
    %c0_63 = arith.constant 0 : index
    %c0_64 = arith.constant 0 : index
    %144 = vector.load %arg17[%c0_62, %c0_63, %c0_64] : memref<2x1x64xf32, #tpu.memory_space<vmem>>, vector<1x1x64xf32>
    %145 = vector.shape_cast %144 : vector<1x1x64xf32> to vector<1x64xf32>
    %cst_65 = arith.constant dense<0.000000e+00> : vector<8xf32>
    %146 = vector.multi_reduction <add>, %141, %cst_65 [1] : vector<8x64xf32> to vector<8xf32>
    %147 = vector.shape_cast %146 : vector<8xf32> to vector<8x1xf32>
    %cst_66 = arith.constant 6.400000e+01 : f32
    %148 = vector.broadcast %cst_66 : f32 to vector<8x1xf32>
    %149 = arith.divf %147, %148 : vector<8x1xf32>
    %150 = vector.broadcast %149 : vector<8x1xf32> to vector<8x64xf32>
    %151 = arith.subf %141, %150 : vector<8x64xf32>
    %152 = arith.mulf %151, %151 : vector<8x64xf32>
    %cst_67 = arith.constant dense<0.000000e+00> : vector<8xf32>
    %153 = vector.multi_reduction <add>, %152, %cst_67 [1] : vector<8x64xf32> to vector<8xf32>
    %154 = vector.shape_cast %153 : vector<8xf32> to vector<8x1xf32>
    %cst_68 = arith.constant 6.400000e+01 : f32
    %155 = vector.broadcast %cst_68 : f32 to vector<8x1xf32>
    %156 = arith.divf %154, %155 : vector<8x1xf32>
    %157 = vector.broadcast %149 : vector<8x1xf32> to vector<8x64xf32>
    %158 = arith.subf %141, %157 : vector<8x64xf32>
    %cst_69 = arith.constant 9.99999974E-6 : f32
    %159 = vector.broadcast %cst_69 : f32 to vector<8x1xf32>
    %160 = arith.addf %156, %159 : vector<8x1xf32>
    %161 = math.rsqrt %160 : vector<8x1xf32>
    %162 = vector.broadcast %161 : vector<8x1xf32> to vector<8x64xf32>
    %163 = arith.mulf %158, %162 : vector<8x64xf32>
    %164 = vector.broadcast %143 : vector<1x64xf32> to vector<8x64xf32>
    %165 = arith.mulf %163, %164 : vector<8x64xf32>
    %166 = vector.broadcast %145 : vector<1x64xf32> to vector<8x64xf32>
    %167 = arith.addf %165, %166 : vector<8x64xf32>
    %c0_70 = arith.constant 0 : index
    %c0_71 = arith.constant 0 : index
    %c0_72 = arith.constant 0 : index
    %168 = vector.load %arg12[%c0_70, %c0_71, %c0_72] : memref<2x64x128xf32, #tpu.memory_space<vmem>>, vector<1x64x128xf32>
    %169 = vector.shape_cast %168 : vector<1x64x128xf32> to vector<64x128xf32>
    %cst_73 = arith.constant dense<0.000000e+00> : vector<8x128xf32>
    %170 = tpu.matmul %167, %169, %cst_73 {dimension_numbers = #tpu.dot_dimension_numbers<[1], [0], [0], [1], [0, 0, 1, 1], [], []>} : vector<8x64xf32>, vector<64x128xf32>, vector<8x128xf32> -> vector<8x128xf32>
    %c0_74 = arith.constant 0 : index
    %c0_75 = arith.constant 0 : index
    %c0_76 = arith.constant 0 : index
    %171 = vector.load %arg13[%c0_74, %c0_75, %c0_76] : memref<2x1x128xf32, #tpu.memory_space<vmem>>, vector<1x1x128xf32>
    %172 = vector.shape_cast %171 : vector<1x1x128xf32> to vector<1x128xf32>
    %173 = vector.broadcast %172 : vector<1x128xf32> to vector<8x128xf32>
    %174 = arith.addf %170, %173 : vector<8x128xf32>
    %175 = arith.mulf %174, %174 : vector<8x128xf32>
    %176 = arith.mulf %174, %175 : vector<8x128xf32>
    %cst_77 = arith.constant 4.471500e-02 : f32
    %177 = vector.broadcast %cst_77 : f32 to vector<8x128xf32>
    %178 = arith.mulf %177, %176 : vector<8x128xf32>
    %179 = arith.addf %174, %178 : vector<8x128xf32>
    %cst_78 = arith.constant 0.797884583 : f32
    %180 = vector.broadcast %cst_78 : f32 to vector<8x128xf32>
    %181 = arith.mulf %180, %179 : vector<8x128xf32>
    %182 = math.tanh %181 : vector<8x128xf32>
    %cst_79 = arith.constant 1.000000e+00 : f32
    %183 = vector.broadcast %cst_79 : f32 to vector<8x128xf32>
    %184 = arith.addf %183, %182 : vector<8x128xf32>
    %cst_80 = arith.constant 5.000000e-01 : f32
    %185 = vector.broadcast %cst_80 : f32 to vector<8x128xf32>
    %186 = arith.mulf %185, %184 : vector<8x128xf32>
    %187 = arith.mulf %174, %186 : vector<8x128xf32>
    %c0_81 = arith.constant 0 : index
    %c0_82 = arith.constant 0 : index
    %c0_83 = arith.constant 0 : index
    %188 = vector.load %arg14[%c0_81, %c0_82, %c0_83] : memref<2x128x64xf32, #tpu.memory_space<vmem>>, vector<1x128x64xf32>
    %189 = vector.shape_cast %188 : vector<1x128x64xf32> to vector<128x64xf32>
    %cst_84 = arith.constant dense<0.000000e+00> : vector<8x64xf32>
    %190 = tpu.matmul %187, %189, %cst_84 {dimension_numbers = #tpu.dot_dimension_numbers<[1], [0], [0], [1], [0, 0, 1, 1], [], []>} : vector<8x128xf32>, vector<128x64xf32>, vector<8x64xf32> -> vector<8x64xf32>
    %c0_85 = arith.constant 0 : index
    %c0_86 = arith.constant 0 : index
    %c0_87 = arith.constant 0 : index
    %191 = vector.load %arg15[%c0_85, %c0_86, %c0_87] : memref<2x1x64xf32, #tpu.memory_space<vmem>>, vector<1x1x64xf32>
    %192 = vector.shape_cast %191 : vector<1x1x64xf32> to vector<1x64xf32>
    %193 = vector.broadcast %192 : vector<1x64xf32> to vector<8x64xf32>
    %194 = arith.addf %190, %193 : vector<8x64xf32>
    %195 = arith.addf %167, %194 : vector<8x64xf32>
    %c0_88 = arith.constant 0 : index
    %c0_89 = arith.constant 0 : index
    %c0_90 = arith.constant 0 : index
    %196 = vector.load %arg18[%c0_88, %c0_89, %c0_90] : memref<2x1x64xf32, #tpu.memory_space<vmem>>, vector<1x1x64xf32>
    %197 = vector.shape_cast %196 : vector<1x1x64xf32> to vector<1x64xf32>
    %c0_91 = arith.constant 0 : index
    %c0_92 = arith.constant 0 : index
    %c0_93 = arith.constant 0 : index
    %198 = vector.load %arg19[%c0_91, %c0_92, %c0_93] : memref<2x1x64xf32, #tpu.memory_space<vmem>>, vector<1x1x64xf32>
    %199 = vector.shape_cast %198 : vector<1x1x64xf32> to vector<1x64xf32>
    %cst_94 = arith.constant dense<0.000000e+00> : vector<8xf32>
    %200 = vector.multi_reduction <add>, %195, %cst_94 [1] : vector<8x64xf32> to vector<8xf32>
    %201 = vector.shape_cast %200 : vector<8xf32> to vector<8x1xf32>
    %cst_95 = arith.constant 6.400000e+01 : f32
    %202 = vector.broadcast %cst_95 : f32 to vector<8x1xf32>
    %203 = arith.divf %201, %202 : vector<8x1xf32>
    %204 = vector.broadcast %203 : vector<8x1xf32> to vector<8x64xf32>
    %205 = arith.subf %195, %204 : vector<8x64xf32>
    %206 = arith.mulf %205, %205 : vector<8x64xf32>
    %cst_96 = arith.constant dense<0.000000e+00> : vector<8xf32>
    %207 = vector.multi_reduction <add>, %206, %cst_96 [1] : vector<8x64xf32> to vector<8xf32>
    %208 = vector.shape_cast %207 : vector<8xf32> to vector<8x1xf32>
    %cst_97 = arith.constant 6.400000e+01 : f32
    %209 = vector.broadcast %cst_97 : f32 to vector<8x1xf32>
    %210 = arith.divf %208, %209 : vector<8x1xf32>
    %211 = vector.broadcast %203 : vector<8x1xf32> to vector<8x64xf32>
    %212 = arith.subf %195, %211 : vector<8x64xf32>
    %cst_98 = arith.constant 9.99999974E-6 : f32
    %213 = vector.broadcast %cst_98 : f32 to vector<8x1xf32>
    %214 = arith.addf %210, %213 : vector<8x1xf32>
    %215 = math.rsqrt %214 : vector<8x1xf32>
    %216 = vector.broadcast %215 : vector<8x1xf32> to vector<8x64xf32>
    %217 = arith.mulf %212, %216 : vector<8x64xf32>
    %218 = vector.broadcast %197 : vector<1x64xf32> to vector<8x64xf32>
    %219 = arith.mulf %217, %218 : vector<8x64xf32>
    %220 = vector.broadcast %199 : vector<1x64xf32> to vector<8x64xf32>
    %221 = arith.addf %219, %220 : vector<8x64xf32>
    %c1 = arith.constant 1 : index
    %c0_99 = arith.constant 0 : index
    %c0_100 = arith.constant 0 : index
    %222 = vector.load %arg8[%c1, %c0_99, %c0_100] : memref<2x64x192xf32, #tpu.memory_space<vmem>>, vector<1x64x192xf32>
    %223 = vector.shape_cast %222 : vector<1x64x192xf32> to vector<64x192xf32>
    %cst_101 = arith.constant dense<0.000000e+00> : vector<8x192xf32>
    %224 = tpu.matmul %221, %223, %cst_101 {dimension_numbers = #tpu.dot_dimension_numbers<[1], [0], [0], [1], [0, 0, 1, 1], [], []>} : vector<8x64xf32>, vector<64x192xf32>, vector<8x192xf32> -> vector<8x192xf32>
    %c1_102 = arith.constant 1 : index
    %c0_103 = arith.constant 0 : index
    %c0_104 = arith.constant 0 : index
    %225 = vector.load %arg9[%c1_102, %c0_103, %c0_104] : memref<2x1x192xf32, #tpu.memory_space<vmem>>, vector<1x1x192xf32>
    %226 = vector.shape_cast %225 : vector<1x1x192xf32> to vector<1x192xf32>
    %227 = vector.broadcast %226 : vector<1x192xf32> to vector<8x192xf32>
    %228 = arith.addf %224, %227 : vector<8x192xf32>
    %c1_105 = arith.constant 1 : index
    %c0_106 = arith.constant 0 : index
    %c0_107 = arith.constant 0 : index
    %229 = vector.load %arg10[%c1_105, %c0_106, %c0_107] : memref<2x64x64xf32, #tpu.memory_space<vmem>>, vector<1x64x64xf32>
    %230 = vector.shape_cast %229 : vector<1x64x64xf32> to vector<64x64xf32>
    %231 = vector.extract_strided_slice %228 {offsets = [0, 0], sizes = [8, 16], strides = [1, 1]} : vector<8x192xf32> to vector<8x16xf32>
    %232 = vector.extract_strided_slice %228 {offsets = [0, 64], sizes = [8, 16], strides = [1, 1]} : vector<8x192xf32> to vector<8x16xf32>
    %233 = vector.extract_strided_slice %228 {offsets = [0, 128], sizes = [8, 16], strides = [1, 1]} : vector<8x192xf32> to vector<8x16xf32>
    %cst_108 = arith.constant dense<0.000000e+00> : vector<8x8xf32>
    %234 = tpu.matmul %231, %232, %cst_108 {dimension_numbers = #tpu.dot_dimension_numbers<[1], [1], [0], [0], [0, 0, 1, 0], [], []>} : vector<8x16xf32>, vector<8x16xf32>, vector<8x8xf32> -> vector<8x8xf32>
    %cst_109 = arith.constant 2.500000e-01 : f32
    %235 = vector.broadcast %cst_109 : f32 to vector<8x8xf32>
    %236 = arith.mulf %234, %235 : vector<8x8xf32>
    %237 = vector.broadcast %36 : vector<1x8xf32> to vector<8x8xf32>
    %238 = arith.addf %236, %237 : vector<8x8xf32>
    %cst_110 = arith.constant dense<0xFF800000> : vector<8xf32>
    %239 = vector.multi_reduction <maximumf>, %238, %cst_110 [1] : vector<8x8xf32> to vector<8xf32>
    %cst_111 = arith.constant 0xFF800000 : f32
    %240 = vector.broadcast %cst_111 : f32 to vector<8xf32>
    %241 = arith.maximumf %240, %239 : vector<8xf32>
    %242 = vector.shape_cast %241 : vector<8xf32> to vector<8x1xf32>
    %243 = vector.broadcast %242 : vector<8x1xf32> to vector<8x8xf32>
    %244 = arith.subf %238, %243 : vector<8x8xf32>
    %245 = math.exp %244 : vector<8x8xf32>
    %cst_112 = arith.constant dense<0.000000e+00> : vector<8xf32>
    %246 = vector.multi_reduction <add>, %245, %cst_112 [1] : vector<8x8xf32> to vector<8xf32>
    %247 = vector.shape_cast %246 : vector<8xf32> to vector<8x1xf32>
    %248 = vector.broadcast %247 : vector<8x1xf32> to vector<8x8xf32>
    %249 = arith.divf %245, %248 : vector<8x8xf32>
    %cst_113 = arith.constant dense<0.000000e+00> : vector<8x16xf32>
    %250 = tpu.matmul %249, %233, %cst_113 {dimension_numbers = #tpu.dot_dimension_numbers<[1], [0], [0], [1], [0, 0, 1, 1], [], []>} : vector<8x8xf32>, vector<8x16xf32>, vector<8x16xf32> -> vector<8x16xf32>
    %251 = vector.extract_strided_slice %230 {offsets = [0, 0], sizes = [16, 64], strides = [1, 1]} : vector<64x64xf32> to vector<16x64xf32>
    %cst_114 = arith.constant dense<0.000000e+00> : vector<8x64xf32>
    %252 = tpu.matmul %250, %251, %cst_114 {dimension_numbers = #tpu.dot_dimension_numbers<[1], [0], [0], [1], [0, 0, 1, 1], [], []>} : vector<8x16xf32>, vector<16x64xf32>, vector<8x64xf32> -> vector<8x64xf32>
    %253 = vector.extract_strided_slice %228 {offsets = [0, 16], sizes = [8, 16], strides = [1, 1]} : vector<8x192xf32> to vector<8x16xf32>
    %254 = vector.extract_strided_slice %228 {offsets = [0, 80], sizes = [8, 16], strides = [1, 1]} : vector<8x192xf32> to vector<8x16xf32>
    %255 = vector.extract_strided_slice %228 {offsets = [0, 144], sizes = [8, 16], strides = [1, 1]} : vector<8x192xf32> to vector<8x16xf32>
    %cst_115 = arith.constant dense<0.000000e+00> : vector<8x8xf32>
    %256 = tpu.matmul %253, %254, %cst_115 {dimension_numbers = #tpu.dot_dimension_numbers<[1], [1], [0], [0], [0, 0, 1, 0], [], []>} : vector<8x16xf32>, vector<8x16xf32>, vector<8x8xf32> -> vector<8x8xf32>
    %cst_116 = arith.constant 2.500000e-01 : f32
    %257 = vector.broadcast %cst_116 : f32 to vector<8x8xf32>
    %258 = arith.mulf %256, %257 : vector<8x8xf32>
    %259 = vector.broadcast %36 : vector<1x8xf32> to vector<8x8xf32>
    %260 = arith.addf %258, %259 : vector<8x8xf32>
    %cst_117 = arith.constant dense<0xFF800000> : vector<8xf32>
    %261 = vector.multi_reduction <maximumf>, %260, %cst_117 [1] : vector<8x8xf32> to vector<8xf32>
    %cst_118 = arith.constant 0xFF800000 : f32
    %262 = vector.broadcast %cst_118 : f32 to vector<8xf32>
    %263 = arith.maximumf %262, %261 : vector<8xf32>
    %264 = vector.shape_cast %263 : vector<8xf32> to vector<8x1xf32>
    %265 = vector.broadcast %264 : vector<8x1xf32> to vector<8x8xf32>
    %266 = arith.subf %260, %265 : vector<8x8xf32>
    %267 = math.exp %266 : vector<8x8xf32>
    %cst_119 = arith.constant dense<0.000000e+00> : vector<8xf32>
    %268 = vector.multi_reduction <add>, %267, %cst_119 [1] : vector<8x8xf32> to vector<8xf32>
    %269 = vector.shape_cast %268 : vector<8xf32> to vector<8x1xf32>
    %270 = vector.broadcast %269 : vector<8x1xf32> to vector<8x8xf32>
    %271 = arith.divf %267, %270 : vector<8x8xf32>
    %cst_120 = arith.constant dense<0.000000e+00> : vector<8x16xf32>
    %272 = tpu.matmul %271, %255, %cst_120 {dimension_numbers = #tpu.dot_dimension_numbers<[1], [0], [0], [1], [0, 0, 1, 1], [], []>} : vector<8x8xf32>, vector<8x16xf32>, vector<8x16xf32> -> vector<8x16xf32>
    %273 = vector.extract_strided_slice %230 {offsets = [16, 0], sizes = [16, 64], strides = [1, 1]} : vector<64x64xf32> to vector<16x64xf32>
    %cst_121 = arith.constant dense<0.000000e+00> : vector<8x64xf32>
    %274 = tpu.matmul %272, %273, %cst_121 {dimension_numbers = #tpu.dot_dimension_numbers<[1], [0], [0], [1], [0, 0, 1, 1], [], []>} : vector<8x16xf32>, vector<16x64xf32>, vector<8x64xf32> -> vector<8x64xf32>
    %275 = arith.addf %252, %274 : vector<8x64xf32>
    %276 = vector.extract_strided_slice %228 {offsets = [0, 32], sizes = [8, 16], strides = [1, 1]} : vector<8x192xf32> to vector<8x16xf32>
    %277 = vector.extract_strided_slice %228 {offsets = [0, 96], sizes = [8, 16], strides = [1, 1]} : vector<8x192xf32> to vector<8x16xf32>
    %278 = vector.extract_strided_slice %228 {offsets = [0, 160], sizes = [8, 16], strides = [1, 1]} : vector<8x192xf32> to vector<8x16xf32>
    %cst_122 = arith.constant dense<0.000000e+00> : vector<8x8xf32>
    %279 = tpu.matmul %276, %277, %cst_122 {dimension_numbers = #tpu.dot_dimension_numbers<[1], [1], [0], [0], [0, 0, 1, 0], [], []>} : vector<8x16xf32>, vector<8x16xf32>, vector<8x8xf32> -> vector<8x8xf32>
    %cst_123 = arith.constant 2.500000e-01 : f32
    %280 = vector.broadcast %cst_123 : f32 to vector<8x8xf32>
    %281 = arith.mulf %279, %280 : vector<8x8xf32>
    %282 = vector.broadcast %36 : vector<1x8xf32> to vector<8x8xf32>
    %283 = arith.addf %281, %282 : vector<8x8xf32>
    %cst_124 = arith.constant dense<0xFF800000> : vector<8xf32>
    %284 = vector.multi_reduction <maximumf>, %283, %cst_124 [1] : vector<8x8xf32> to vector<8xf32>
    %cst_125 = arith.constant 0xFF800000 : f32
    %285 = vector.broadcast %cst_125 : f32 to vector<8xf32>
    %286 = arith.maximumf %285, %284 : vector<8xf32>
    %287 = vector.shape_cast %286 : vector<8xf32> to vector<8x1xf32>
    %288 = vector.broadcast %287 : vector<8x1xf32> to vector<8x8xf32>
    %289 = arith.subf %283, %288 : vector<8x8xf32>
    %290 = math.exp %289 : vector<8x8xf32>
    %cst_126 = arith.constant dense<0.000000e+00> : vector<8xf32>
    %291 = vector.multi_reduction <add>, %290, %cst_126 [1] : vector<8x8xf32> to vector<8xf32>
    %292 = vector.shape_cast %291 : vector<8xf32> to vector<8x1xf32>
    %293 = vector.broadcast %292 : vector<8x1xf32> to vector<8x8xf32>
    %294 = arith.divf %290, %293 : vector<8x8xf32>
    %cst_127 = arith.constant dense<0.000000e+00> : vector<8x16xf32>
    %295 = tpu.matmul %294, %278, %cst_127 {dimension_numbers = #tpu.dot_dimension_numbers<[1], [0], [0], [1], [0, 0, 1, 1], [], []>} : vector<8x8xf32>, vector<8x16xf32>, vector<8x16xf32> -> vector<8x16xf32>
    %296 = vector.extract_strided_slice %230 {offsets = [32, 0], sizes = [16, 64], strides = [1, 1]} : vector<64x64xf32> to vector<16x64xf32>
    %cst_128 = arith.constant dense<0.000000e+00> : vector<8x64xf32>
    %297 = tpu.matmul %295, %296, %cst_128 {dimension_numbers = #tpu.dot_dimension_numbers<[1], [0], [0], [1], [0, 0, 1, 1], [], []>} : vector<8x16xf32>, vector<16x64xf32>, vector<8x64xf32> -> vector<8x64xf32>
    %298 = arith.addf %275, %297 : vector<8x64xf32>
    %299 = vector.extract_strided_slice %228 {offsets = [0, 48], sizes = [8, 16], strides = [1, 1]} : vector<8x192xf32> to vector<8x16xf32>
    %300 = vector.extract_strided_slice %228 {offsets = [0, 112], sizes = [8, 16], strides = [1, 1]} : vector<8x192xf32> to vector<8x16xf32>
    %301 = vector.extract_strided_slice %228 {offsets = [0, 176], sizes = [8, 16], strides = [1, 1]} : vector<8x192xf32> to vector<8x16xf32>
    %cst_129 = arith.constant dense<0.000000e+00> : vector<8x8xf32>
    %302 = tpu.matmul %299, %300, %cst_129 {dimension_numbers = #tpu.dot_dimension_numbers<[1], [1], [0], [0], [0, 0, 1, 0], [], []>} : vector<8x16xf32>, vector<8x16xf32>, vector<8x8xf32> -> vector<8x8xf32>
    %cst_130 = arith.constant 2.500000e-01 : f32
    %303 = vector.broadcast %cst_130 : f32 to vector<8x8xf32>
    %304 = arith.mulf %302, %303 : vector<8x8xf32>
    %305 = vector.broadcast %36 : vector<1x8xf32> to vector<8x8xf32>
    %306 = arith.addf %304, %305 : vector<8x8xf32>
    %cst_131 = arith.constant dense<0xFF800000> : vector<8xf32>
    %307 = vector.multi_reduction <maximumf>, %306, %cst_131 [1] : vector<8x8xf32> to vector<8xf32>
    %cst_132 = arith.constant 0xFF800000 : f32
    %308 = vector.broadcast %cst_132 : f32 to vector<8xf32>
    %309 = arith.maximumf %308, %307 : vector<8xf32>
    %310 = vector.shape_cast %309 : vector<8xf32> to vector<8x1xf32>
    %311 = vector.broadcast %310 : vector<8x1xf32> to vector<8x8xf32>
    %312 = arith.subf %306, %311 : vector<8x8xf32>
    %313 = math.exp %312 : vector<8x8xf32>
    %cst_133 = arith.constant dense<0.000000e+00> : vector<8xf32>
    %314 = vector.multi_reduction <add>, %313, %cst_133 [1] : vector<8x8xf32> to vector<8xf32>
    %315 = vector.shape_cast %314 : vector<8xf32> to vector<8x1xf32>
    %316 = vector.broadcast %315 : vector<8x1xf32> to vector<8x8xf32>
    %317 = arith.divf %313, %316 : vector<8x8xf32>
    %cst_134 = arith.constant dense<0.000000e+00> : vector<8x16xf32>
    %318 = tpu.matmul %317, %301, %cst_134 {dimension_numbers = #tpu.dot_dimension_numbers<[1], [0], [0], [1], [0, 0, 1, 1], [], []>} : vector<8x8xf32>, vector<8x16xf32>, vector<8x16xf32> -> vector<8x16xf32>
    %319 = vector.extract_strided_slice %230 {offsets = [48, 0], sizes = [16, 64], strides = [1, 1]} : vector<64x64xf32> to vector<16x64xf32>
    %cst_135 = arith.constant dense<0.000000e+00> : vector<8x64xf32>
    %320 = tpu.matmul %318, %319, %cst_135 {dimension_numbers = #tpu.dot_dimension_numbers<[1], [0], [0], [1], [0, 0, 1, 1], [], []>} : vector<8x16xf32>, vector<16x64xf32>, vector<8x64xf32> -> vector<8x64xf32>
    %321 = arith.addf %298, %320 : vector<8x64xf32>
    %c1_136 = arith.constant 1 : index
    %c0_137 = arith.constant 0 : index
    %c0_138 = arith.constant 0 : index
    %322 = vector.load %arg11[%c1_136, %c0_137, %c0_138] : memref<2x1x64xf32, #tpu.memory_space<vmem>>, vector<1x1x64xf32>
    %323 = vector.shape_cast %322 : vector<1x1x64xf32> to vector<1x64xf32>
    %324 = vector.broadcast %323 : vector<1x64xf32> to vector<8x64xf32>
    %325 = arith.addf %321, %324 : vector<8x64xf32>
    %326 = arith.addf %221, %325 : vector<8x64xf32>
    %c1_139 = arith.constant 1 : index
    %c0_140 = arith.constant 0 : index
    %c0_141 = arith.constant 0 : index
    %327 = vector.load %arg16[%c1_139, %c0_140, %c0_141] : memref<2x1x64xf32, #tpu.memory_space<vmem>>, vector<1x1x64xf32>
    %328 = vector.shape_cast %327 : vector<1x1x64xf32> to vector<1x64xf32>
    %c1_142 = arith.constant 1 : index
    %c0_143 = arith.constant 0 : index
    %c0_144 = arith.constant 0 : index
    %329 = vector.load %arg17[%c1_142, %c0_143, %c0_144] : memref<2x1x64xf32, #tpu.memory_space<vmem>>, vector<1x1x64xf32>
    %330 = vector.shape_cast %329 : vector<1x1x64xf32> to vector<1x64xf32>
    %cst_145 = arith.constant dense<0.000000e+00> : vector<8xf32>
    %331 = vector.multi_reduction <add>, %326, %cst_145 [1] : vector<8x64xf32> to vector<8xf32>
    %332 = vector.shape_cast %331 : vector<8xf32> to vector<8x1xf32>
    %cst_146 = arith.constant 6.400000e+01 : f32
    %333 = vector.broadcast %cst_146 : f32 to vector<8x1xf32>
    %334 = arith.divf %332, %333 : vector<8x1xf32>
    %335 = vector.broadcast %334 : vector<8x1xf32> to vector<8x64xf32>
    %336 = arith.subf %326, %335 : vector<8x64xf32>
    %337 = arith.mulf %336, %336 : vector<8x64xf32>
    %cst_147 = arith.constant dense<0.000000e+00> : vector<8xf32>
    %338 = vector.multi_reduction <add>, %337, %cst_147 [1] : vector<8x64xf32> to vector<8xf32>
    %339 = vector.shape_cast %338 : vector<8xf32> to vector<8x1xf32>
    %cst_148 = arith.constant 6.400000e+01 : f32
    %340 = vector.broadcast %cst_148 : f32 to vector<8x1xf32>
    %341 = arith.divf %339, %340 : vector<8x1xf32>
    %342 = vector.broadcast %334 : vector<8x1xf32> to vector<8x64xf32>
    %343 = arith.subf %326, %342 : vector<8x64xf32>
    %cst_149 = arith.constant 9.99999974E-6 : f32
    %344 = vector.broadcast %cst_149 : f32 to vector<8x1xf32>
    %345 = arith.addf %341, %344 : vector<8x1xf32>
    %346 = math.rsqrt %345 : vector<8x1xf32>
    %347 = vector.broadcast %346 : vector<8x1xf32> to vector<8x64xf32>
    %348 = arith.mulf %343, %347 : vector<8x64xf32>
    %349 = vector.broadcast %328 : vector<1x64xf32> to vector<8x64xf32>
    %350 = arith.mulf %348, %349 : vector<8x64xf32>
    %351 = vector.broadcast %330 : vector<1x64xf32> to vector<8x64xf32>
    %352 = arith.addf %350, %351 : vector<8x64xf32>
    %c1_150 = arith.constant 1 : index
    %c0_151 = arith.constant 0 : index
    %c0_152 = arith.constant 0 : index
    %353 = vector.load %arg12[%c1_150, %c0_151, %c0_152] : memref<2x64x128xf32, #tpu.memory_space<vmem>>, vector<1x64x128xf32>
    %354 = vector.shape_cast %353 : vector<1x64x128xf32> to vector<64x128xf32>
    %cst_153 = arith.constant dense<0.000000e+00> : vector<8x128xf32>
    %355 = tpu.matmul %352, %354, %cst_153 {dimension_numbers = #tpu.dot_dimension_numbers<[1], [0], [0], [1], [0, 0, 1, 1], [], []>} : vector<8x64xf32>, vector<64x128xf32>, vector<8x128xf32> -> vector<8x128xf32>
    %c1_154 = arith.constant 1 : index
    %c0_155 = arith.constant 0 : index
    %c0_156 = arith.constant 0 : index
    %356 = vector.load %arg13[%c1_154, %c0_155, %c0_156] : memref<2x1x128xf32, #tpu.memory_space<vmem>>, vector<1x1x128xf32>
    %357 = vector.shape_cast %356 : vector<1x1x128xf32> to vector<1x128xf32>
    %358 = vector.broadcast %357 : vector<1x128xf32> to vector<8x128xf32>
    %359 = arith.addf %355, %358 : vector<8x128xf32>
    %360 = arith.mulf %359, %359 : vector<8x128xf32>
    %361 = arith.mulf %359, %360 : vector<8x128xf32>
    %cst_157 = arith.constant 4.471500e-02 : f32
    %362 = vector.broadcast %cst_157 : f32 to vector<8x128xf32>
    %363 = arith.mulf %362, %361 : vector<8x128xf32>
    %364 = arith.addf %359, %363 : vector<8x128xf32>
    %cst_158 = arith.constant 0.797884583 : f32
    %365 = vector.broadcast %cst_158 : f32 to vector<8x128xf32>
    %366 = arith.mulf %365, %364 : vector<8x128xf32>
    %367 = math.tanh %366 : vector<8x128xf32>
    %cst_159 = arith.constant 1.000000e+00 : f32
    %368 = vector.broadcast %cst_159 : f32 to vector<8x128xf32>
    %369 = arith.addf %368, %367 : vector<8x128xf32>
    %cst_160 = arith.constant 5.000000e-01 : f32
    %370 = vector.broadcast %cst_160 : f32 to vector<8x128xf32>
    %371 = arith.mulf %370, %369 : vector<8x128xf32>
    %372 = arith.mulf %359, %371 : vector<8x128xf32>
    %c1_161 = arith.constant 1 : index
    %c0_162 = arith.constant 0 : index
    %c0_163 = arith.constant 0 : index
    %373 = vector.load %arg14[%c1_161, %c0_162, %c0_163] : memref<2x128x64xf32, #tpu.memory_space<vmem>>, vector<1x128x64xf32>
    %374 = vector.shape_cast %373 : vector<1x128x64xf32> to vector<128x64xf32>
    %cst_164 = arith.constant dense<0.000000e+00> : vector<8x64xf32>
    %375 = tpu.matmul %372, %374, %cst_164 {dimension_numbers = #tpu.dot_dimension_numbers<[1], [0], [0], [1], [0, 0, 1, 1], [], []>} : vector<8x128xf32>, vector<128x64xf32>, vector<8x64xf32> -> vector<8x64xf32>
    %c1_165 = arith.constant 1 : index
    %c0_166 = arith.constant 0 : index
    %c0_167 = arith.constant 0 : index
    %376 = vector.load %arg15[%c1_165, %c0_166, %c0_167] : memref<2x1x64xf32, #tpu.memory_space<vmem>>, vector<1x1x64xf32>
    %377 = vector.shape_cast %376 : vector<1x1x64xf32> to vector<1x64xf32>
    %378 = vector.broadcast %377 : vector<1x64xf32> to vector<8x64xf32>
    %379 = arith.addf %375, %378 : vector<8x64xf32>
    %380 = arith.addf %352, %379 : vector<8x64xf32>
    %c1_168 = arith.constant 1 : index
    %c0_169 = arith.constant 0 : index
    %c0_170 = arith.constant 0 : index
    %381 = vector.load %arg18[%c1_168, %c0_169, %c0_170] : memref<2x1x64xf32, #tpu.memory_space<vmem>>, vector<1x1x64xf32>
    %382 = vector.shape_cast %381 : vector<1x1x64xf32> to vector<1x64xf32>
    %c1_171 = arith.constant 1 : index
    %c0_172 = arith.constant 0 : index
    %c0_173 = arith.constant 0 : index
    %383 = vector.load %arg19[%c1_171, %c0_172, %c0_173] : memref<2x1x64xf32, #tpu.memory_space<vmem>>, vector<1x1x64xf32>
    %384 = vector.shape_cast %383 : vector<1x1x64xf32> to vector<1x64xf32>
    %cst_174 = arith.constant dense<0.000000e+00> : vector<8xf32>
    %385 = vector.multi_reduction <add>, %380, %cst_174 [1] : vector<8x64xf32> to vector<8xf32>
    %386 = vector.shape_cast %385 : vector<8xf32> to vector<8x1xf32>
    %cst_175 = arith.constant 6.400000e+01 : f32
    %387 = vector.broadcast %cst_175 : f32 to vector<8x1xf32>
    %388 = arith.divf %386, %387 : vector<8x1xf32>
    %389 = vector.broadcast %388 : vector<8x1xf32> to vector<8x64xf32>
    %390 = arith.subf %380, %389 : vector<8x64xf32>
    %391 = arith.mulf %390, %390 : vector<8x64xf32>
    %cst_176 = arith.constant dense<0.000000e+00> : vector<8xf32>
    %392 = vector.multi_reduction <add>, %391, %cst_176 [1] : vector<8x64xf32> to vector<8xf32>
    %393 = vector.shape_cast %392 : vector<8xf32> to vector<8x1xf32>
    %cst_177 = arith.constant 6.400000e+01 : f32
    %394 = vector.broadcast %cst_177 : f32 to vector<8x1xf32>
    %395 = arith.divf %393, %394 : vector<8x1xf32>
    %396 = vector.broadcast %388 : vector<8x1xf32> to vector<8x64xf32>
    %397 = arith.subf %380, %396 : vector<8x64xf32>
    %cst_178 = arith.constant 9.99999974E-6 : f32
    %398 = vector.broadcast %cst_178 : f32 to vector<8x1xf32>
    %399 = arith.addf %395, %398 : vector<8x1xf32>
    %400 = math.rsqrt %399 : vector<8x1xf32>
    %401 = vector.broadcast %400 : vector<8x1xf32> to vector<8x64xf32>
    %402 = arith.mulf %397, %401 : vector<8x64xf32>
    %403 = vector.broadcast %382 : vector<1x64xf32> to vector<8x64xf32>
    %404 = arith.mulf %402, %403 : vector<8x64xf32>
    %405 = vector.broadcast %384 : vector<1x64xf32> to vector<8x64xf32>
    %406 = arith.addf %404, %405 : vector<8x64xf32>
    %cst_179 = arith.constant 0.000000e+00 : f32
    %407 = vector.broadcast %cst_179 : f32 to vector<8x64xf32>
    %408 = arith.addf %407, %221 : vector<8x64xf32>
    %409 = arith.addf %408, %406 : vector<8x64xf32>
    %cst_180 = arith.constant 2.000000e+00 : f32
    %410 = vector.broadcast %cst_180 : f32 to vector<8x64xf32>
    %411 = arith.divf %409, %410 : vector<8x64xf32>
    %c0_181 = arith.constant 0 : index
    %c0_182 = arith.constant 0 : index
    %412 = vector.load %arg20[%c0_181, %c0_182] : memref<1x64xf32, #tpu.memory_space<vmem>>, vector<1x64xf32>
    %c0_183 = arith.constant 0 : index
    %c0_184 = arith.constant 0 : index
    %413 = vector.load %arg34[%c0_183, %c0_184] : memref<9x64xf32, #tpu.memory_space<vmem>>, vector<1x64xf32>
    tpu.vector_store %arg34[%c0_183, %c0_184], %412 {strides = array<i32>} : memref<9x64xf32, #tpu.memory_space<vmem>>, vector<1x64xf32>,
    %c1_185 = arith.constant 1 : index
    %c0_186 = arith.constant 0 : index
    %414 = vector.load %arg34[%c1_185, %c0_186] : memref<9x64xf32, #tpu.memory_space<vmem>>, vector<8x64xf32>
    tpu.vector_store %arg34[%c1_185, %c0_186], %411 {strides = array<i32>} : memref<9x64xf32, #tpu.memory_space<vmem>>, vector<8x64xf32>,
    %c0_187 = arith.constant 0 : index
    %c0_188 = arith.constant 0 : index
    %415 = vector.load %arg34[%c0_187, %c0_188] : memref<9x64xf32, #tpu.memory_space<vmem>>, vector<9x64xf32>
    %c0_189 = arith.constant 0 : index
    %c0_190 = arith.constant 0 : index
    %c0_191 = arith.constant 0 : index
    %416 = vector.load %arg3[%c0_189, %c0_190, %c0_191] : memref<1x1x9xf32, #tpu.memory_space<vmem>>, vector<1x1x9xf32>
    %417 = vector.shape_cast %416 : vector<1x1x9xf32> to vector<1x9xf32>
    %c0_192 = arith.constant 0 : index
    %c0_193 = arith.constant 0 : index
    %c0_194 = arith.constant 0 : index
    %418 = vector.load %arg21[%c0_192, %c0_193, %c0_194] : memref<1x64x192xf32, #tpu.memory_space<vmem>>, vector<1x64x192xf32>
    %419 = vector.shape_cast %418 : vector<1x64x192xf32> to vector<64x192xf32>
    %cst_195 = arith.constant dense<0.000000e+00> : vector<9x192xf32>
    %420 = tpu.matmul %415, %419, %cst_195 {dimension_numbers = #tpu.dot_dimension_numbers<[1], [0], [0], [1], [0, 0, 1, 1], [], []>} : vector<9x64xf32>, vector<64x192xf32>, vector<9x192xf32> -> vector<9x192xf32>
    %c0_196 = arith.constant 0 : index
    %c0_197 = arith.constant 0 : index
    %c0_198 = arith.constant 0 : index
    %421 = vector.load %arg22[%c0_196, %c0_197, %c0_198] : memref<1x1x192xf32, #tpu.memory_space<vmem>>, vector<1x1x192xf32>
    %422 = vector.shape_cast %421 : vector<1x1x192xf32> to vector<1x192xf32>
    %423 = vector.broadcast %422 : vector<1x192xf32> to vector<9x192xf32>
    %424 = arith.addf %420, %423 : vector<9x192xf32>
    %c0_199 = arith.constant 0 : index
    %c0_200 = arith.constant 0 : index
    %c0_201 = arith.constant 0 : index
    %425 = vector.load %arg23[%c0_199, %c0_200, %c0_201] : memref<1x64x64xf32, #tpu.memory_space<vmem>>, vector<1x64x64xf32>
    %426 = vector.shape_cast %425 : vector<1x64x64xf32> to vector<64x64xf32>
    %427 = vector.extract_strided_slice %424 {offsets = [0, 0], sizes = [9, 16], strides = [1, 1]} : vector<9x192xf32> to vector<9x16xf32>
    %428 = vector.extract_strided_slice %424 {offsets = [0, 64], sizes = [9, 16], strides = [1, 1]} : vector<9x192xf32> to vector<9x16xf32>
    %429 = vector.extract_strided_slice %424 {offsets = [0, 128], sizes = [9, 16], strides = [1, 1]} : vector<9x192xf32> to vector<9x16xf32>
    %cst_202 = arith.constant dense<0.000000e+00> : vector<9x9xf32>
    %430 = tpu.matmul %427, %428, %cst_202 {dimension_numbers = #tpu.dot_dimension_numbers<[1], [1], [0], [0], [0, 0, 1, 0], [], []>} : vector<9x16xf32>, vector<9x16xf32>, vector<9x9xf32> -> vector<9x9xf32>
    %cst_203 = arith.constant 2.500000e-01 : f32
    %431 = vector.broadcast %cst_203 : f32 to vector<9x9xf32>
    %432 = arith.mulf %430, %431 : vector<9x9xf32>
    %433 = vector.broadcast %417 : vector<1x9xf32> to vector<9x9xf32>
    %434 = arith.addf %432, %433 : vector<9x9xf32>
    %cst_204 = arith.constant dense<0xFF800000> : vector<9xf32>
    %435 = vector.multi_reduction <maximumf>, %434, %cst_204 [1] : vector<9x9xf32> to vector<9xf32>
    %cst_205 = arith.constant 0xFF800000 : f32
    %436 = vector.broadcast %cst_205 : f32 to vector<9xf32>
    %437 = arith.maximumf %436, %435 : vector<9xf32>
    %438 = vector.shape_cast %437 : vector<9xf32> to vector<9x1xf32>
    %439 = vector.broadcast %438 : vector<9x1xf32> to vector<9x9xf32>
    %440 = arith.subf %434, %439 : vector<9x9xf32>
    %441 = math.exp %440 : vector<9x9xf32>
    %cst_206 = arith.constant dense<0.000000e+00> : vector<9xf32>
    %442 = vector.multi_reduction <add>, %441, %cst_206 [1] : vector<9x9xf32> to vector<9xf32>
    %443 = vector.shape_cast %442 : vector<9xf32> to vector<9x1xf32>
    %444 = vector.broadcast %443 : vector<9x1xf32> to vector<9x9xf32>
    %445 = arith.divf %441, %444 : vector<9x9xf32>
    %cst_207 = arith.constant dense<0.000000e+00> : vector<9x16xf32>
    %446 = tpu.matmul %445, %429, %cst_207 {dimension_numbers = #tpu.dot_dimension_numbers<[1], [0], [0], [1], [0, 0, 1, 1], [], []>} : vector<9x9xf32>, vector<9x16xf32>, vector<9x16xf32> -> vector<9x16xf32>
    %447 = vector.extract_strided_slice %426 {offsets = [0, 0], sizes = [16, 64], strides = [1, 1]} : vector<64x64xf32> to vector<16x64xf32>
    %cst_208 = arith.constant dense<0.000000e+00> : vector<9x64xf32>
    %448 = tpu.matmul %446, %447, %cst_208 {dimension_numbers = #tpu.dot_dimension_numbers<[1], [0], [0], [1], [0, 0, 1, 1], [], []>} : vector<9x16xf32>, vector<16x64xf32>, vector<9x64xf32> -> vector<9x64xf32>
    %449 = vector.extract_strided_slice %424 {offsets = [0, 16], sizes = [9, 16], strides = [1, 1]} : vector<9x192xf32> to vector<9x16xf32>
    %450 = vector.extract_strided_slice %424 {offsets = [0, 80], sizes = [9, 16], strides = [1, 1]} : vector<9x192xf32> to vector<9x16xf32>
    %451 = vector.extract_strided_slice %424 {offsets = [0, 144], sizes = [9, 16], strides = [1, 1]} : vector<9x192xf32> to vector<9x16xf32>
    %cst_209 = arith.constant dense<0.000000e+00> : vector<9x9xf32>
    %452 = tpu.matmul %449, %450, %cst_209 {dimension_numbers = #tpu.dot_dimension_numbers<[1], [1], [0], [0], [0, 0, 1, 0], [], []>} : vector<9x16xf32>, vector<9x16xf32>, vector<9x9xf32> -> vector<9x9xf32>
    %cst_210 = arith.constant 2.500000e-01 : f32
    %453 = vector.broadcast %cst_210 : f32 to vector<9x9xf32>
    %454 = arith.mulf %452, %453 : vector<9x9xf32>
    %455 = vector.broadcast %417 : vector<1x9xf32> to vector<9x9xf32>
    %456 = arith.addf %454, %455 : vector<9x9xf32>
    %cst_211 = arith.constant dense<0xFF800000> : vector<9xf32>
    %457 = vector.multi_reduction <maximumf>, %456, %cst_211 [1] : vector<9x9xf32> to vector<9xf32>
    %cst_212 = arith.constant 0xFF800000 : f32
    %458 = vector.broadcast %cst_212 : f32 to vector<9xf32>
    %459 = arith.maximumf %458, %457 : vector<9xf32>
    %460 = vector.shape_cast %459 : vector<9xf32> to vector<9x1xf32>
    %461 = vector.broadcast %460 : vector<9x1xf32> to vector<9x9xf32>
    %462 = arith.subf %456, %461 : vector<9x9xf32>
    %463 = math.exp %462 : vector<9x9xf32>
    %cst_213 = arith.constant dense<0.000000e+00> : vector<9xf32>
    %464 = vector.multi_reduction <add>, %463, %cst_213 [1] : vector<9x9xf32> to vector<9xf32>
    %465 = vector.shape_cast %464 : vector<9xf32> to vector<9x1xf32>
    %466 = vector.broadcast %465 : vector<9x1xf32> to vector<9x9xf32>
    %467 = arith.divf %463, %466 : vector<9x9xf32>
    %cst_214 = arith.constant dense<0.000000e+00> : vector<9x16xf32>
    %468 = tpu.matmul %467, %451, %cst_214 {dimension_numbers = #tpu.dot_dimension_numbers<[1], [0], [0], [1], [0, 0, 1, 1], [], []>} : vector<9x9xf32>, vector<9x16xf32>, vector<9x16xf32> -> vector<9x16xf32>
    %469 = vector.extract_strided_slice %426 {offsets = [16, 0], sizes = [16, 64], strides = [1, 1]} : vector<64x64xf32> to vector<16x64xf32>
    %cst_215 = arith.constant dense<0.000000e+00> : vector<9x64xf32>
    %470 = tpu.matmul %468, %469, %cst_215 {dimension_numbers = #tpu.dot_dimension_numbers<[1], [0], [0], [1], [0, 0, 1, 1], [], []>} : vector<9x16xf32>, vector<16x64xf32>, vector<9x64xf32> -> vector<9x64xf32>
    %471 = arith.addf %448, %470 : vector<9x64xf32>
    %472 = vector.extract_strided_slice %424 {offsets = [0, 32], sizes = [9, 16], strides = [1, 1]} : vector<9x192xf32> to vector<9x16xf32>
    %473 = vector.extract_strided_slice %424 {offsets = [0, 96], sizes = [9, 16], strides = [1, 1]} : vector<9x192xf32> to vector<9x16xf32>
    %474 = vector.extract_strided_slice %424 {offsets = [0, 160], sizes = [9, 16], strides = [1, 1]} : vector<9x192xf32> to vector<9x16xf32>
    %cst_216 = arith.constant dense<0.000000e+00> : vector<9x9xf32>
    %475 = tpu.matmul %472, %473, %cst_216 {dimension_numbers = #tpu.dot_dimension_numbers<[1], [1], [0], [0], [0, 0, 1, 0], [], []>} : vector<9x16xf32>, vector<9x16xf32>, vector<9x9xf32> -> vector<9x9xf32>
    %cst_217 = arith.constant 2.500000e-01 : f32
    %476 = vector.broadcast %cst_217 : f32 to vector<9x9xf32>
    %477 = arith.mulf %475, %476 : vector<9x9xf32>
    %478 = vector.broadcast %417 : vector<1x9xf32> to vector<9x9xf32>
    %479 = arith.addf %477, %478 : vector<9x9xf32>
    %cst_218 = arith.constant dense<0xFF800000> : vector<9xf32>
    %480 = vector.multi_reduction <maximumf>, %479, %cst_218 [1] : vector<9x9xf32> to vector<9xf32>
    %cst_219 = arith.constant 0xFF800000 : f32
    %481 = vector.broadcast %cst_219 : f32 to vector<9xf32>
    %482 = arith.maximumf %481, %480 : vector<9xf32>
    %483 = vector.shape_cast %482 : vector<9xf32> to vector<9x1xf32>
    %484 = vector.broadcast %483 : vector<9x1xf32> to vector<9x9xf32>
    %485 = arith.subf %479, %484 : vector<9x9xf32>
    %486 = math.exp %485 : vector<9x9xf32>
    %cst_220 = arith.constant dense<0.000000e+00> : vector<9xf32>
    %487 = vector.multi_reduction <add>, %486, %cst_220 [1] : vector<9x9xf32> to vector<9xf32>
    %488 = vector.shape_cast %487 : vector<9xf32> to vector<9x1xf32>
    %489 = vector.broadcast %488 : vector<9x1xf32> to vector<9x9xf32>
    %490 = arith.divf %486, %489 : vector<9x9xf32>
    %cst_221 = arith.constant dense<0.000000e+00> : vector<9x16xf32>
    %491 = tpu.matmul %490, %474, %cst_221 {dimension_numbers = #tpu.dot_dimension_numbers<[1], [0], [0], [1], [0, 0, 1, 1], [], []>} : vector<9x9xf32>, vector<9x16xf32>, vector<9x16xf32> -> vector<9x16xf32>
    %492 = vector.extract_strided_slice %426 {offsets = [32, 0], sizes = [16, 64], strides = [1, 1]} : vector<64x64xf32> to vector<16x64xf32>
    %cst_222 = arith.constant dense<0.000000e+00> : vector<9x64xf32>
    %493 = tpu.matmul %491, %492, %cst_222 {dimension_numbers = #tpu.dot_dimension_numbers<[1], [0], [0], [1], [0, 0, 1, 1], [], []>} : vector<9x16xf32>, vector<16x64xf32>, vector<9x64xf32> -> vector<9x64xf32>
    %494 = arith.addf %471, %493 : vector<9x64xf32>
    %495 = vector.extract_strided_slice %424 {offsets = [0, 48], sizes = [9, 16], strides = [1, 1]} : vector<9x192xf32> to vector<9x16xf32>
    %496 = vector.extract_strided_slice %424 {offsets = [0, 112], sizes = [9, 16], strides = [1, 1]} : vector<9x192xf32> to vector<9x16xf32>
    %497 = vector.extract_strided_slice %424 {offsets = [0, 176], sizes = [9, 16], strides = [1, 1]} : vector<9x192xf32> to vector<9x16xf32>
    %cst_223 = arith.constant dense<0.000000e+00> : vector<9x9xf32>
    %498 = tpu.matmul %495, %496, %cst_223 {dimension_numbers = #tpu.dot_dimension_numbers<[1], [1], [0], [0], [0, 0, 1, 0], [], []>} : vector<9x16xf32>, vector<9x16xf32>, vector<9x9xf32> -> vector<9x9xf32>
    %cst_224 = arith.constant 2.500000e-01 : f32
    %499 = vector.broadcast %cst_224 : f32 to vector<9x9xf32>
    %500 = arith.mulf %498, %499 : vector<9x9xf32>
    %501 = vector.broadcast %417 : vector<1x9xf32> to vector<9x9xf32>
    %502 = arith.addf %500, %501 : vector<9x9xf32>
    %cst_225 = arith.constant dense<0xFF800000> : vector<9xf32>
    %503 = vector.multi_reduction <maximumf>, %502, %cst_225 [1] : vector<9x9xf32> to vector<9xf32>
    %cst_226 = arith.constant 0xFF800000 : f32
    %504 = vector.broadcast %cst_226 : f32 to vector<9xf32>
    %505 = arith.maximumf %504, %503 : vector<9xf32>
    %506 = vector.shape_cast %505 : vector<9xf32> to vector<9x1xf32>
    %507 = vector.broadcast %506 : vector<9x1xf32> to vector<9x9xf32>
    %508 = arith.subf %502, %507 : vector<9x9xf32>
    %509 = math.exp %508 : vector<9x9xf32>
    %cst_227 = arith.constant dense<0.000000e+00> : vector<9xf32>
    %510 = vector.multi_reduction <add>, %509, %cst_227 [1] : vector<9x9xf32> to vector<9xf32>
    %511 = vector.shape_cast %510 : vector<9xf32> to vector<9x1xf32>
    %512 = vector.broadcast %511 : vector<9x1xf32> to vector<9x9xf32>
    %513 = arith.divf %509, %512 : vector<9x9xf32>
    %cst_228 = arith.constant dense<0.000000e+00> : vector<9x16xf32>
    %514 = tpu.matmul %513, %497, %cst_228 {dimension_numbers = #tpu.dot_dimension_numbers<[1], [0], [0], [1], [0, 0, 1, 1], [], []>} : vector<9x9xf32>, vector<9x16xf32>, vector<9x16xf32> -> vector<9x16xf32>
    %515 = vector.extract_strided_slice %426 {offsets = [48, 0], sizes = [16, 64], strides = [1, 1]} : vector<64x64xf32> to vector<16x64xf32>
    %cst_229 = arith.constant dense<0.000000e+00> : vector<9x64xf32>
    %516 = tpu.matmul %514, %515, %cst_229 {dimension_numbers = #tpu.dot_dimension_numbers<[1], [0], [0], [1], [0, 0, 1, 1], [], []>} : vector<9x16xf32>, vector<16x64xf32>, vector<9x64xf32> -> vector<9x64xf32>
    %517 = arith.addf %494, %516 : vector<9x64xf32>
    %c0_230 = arith.constant 0 : index
    %c0_231 = arith.constant 0 : index
    %c0_232 = arith.constant 0 : index
    %518 = vector.load %arg24[%c0_230, %c0_231, %c0_232] : memref<1x1x64xf32, #tpu.memory_space<vmem>>, vector<1x1x64xf32>
    %519 = vector.shape_cast %518 : vector<1x1x64xf32> to vector<1x64xf32>
    %520 = vector.broadcast %519 : vector<1x64xf32> to vector<9x64xf32>
    %521 = arith.addf %517, %520 : vector<9x64xf32>
    %522 = arith.addf %415, %521 : vector<9x64xf32>
    %c0_233 = arith.constant 0 : index
    %c0_234 = arith.constant 0 : index
    %c0_235 = arith.constant 0 : index
    %523 = vector.load %arg29[%c0_233, %c0_234, %c0_235] : memref<1x1x64xf32, #tpu.memory_space<vmem>>, vector<1x1x64xf32>
    %524 = vector.shape_cast %523 : vector<1x1x64xf32> to vector<1x64xf32>
    %c0_236 = arith.constant 0 : index
    %c0_237 = arith.constant 0 : index
    %c0_238 = arith.constant 0 : index
    %525 = vector.load %arg30[%c0_236, %c0_237, %c0_238] : memref<1x1x64xf32, #tpu.memory_space<vmem>>, vector<1x1x64xf32>
    %526 = vector.shape_cast %525 : vector<1x1x64xf32> to vector<1x64xf32>
    %cst_239 = arith.constant dense<0.000000e+00> : vector<9xf32>
    %527 = vector.multi_reduction <add>, %522, %cst_239 [1] : vector<9x64xf32> to vector<9xf32>
    %528 = vector.shape_cast %527 : vector<9xf32> to vector<9x1xf32>
    %cst_240 = arith.constant 6.400000e+01 : f32
    %529 = vector.broadcast %cst_240 : f32 to vector<9x1xf32>
    %530 = arith.divf %528, %529 : vector<9x1xf32>
    %531 = vector.broadcast %530 : vector<9x1xf32> to vector<9x64xf32>
    %532 = arith.subf %522, %531 : vector<9x64xf32>
    %533 = arith.mulf %532, %532 : vector<9x64xf32>
    %cst_241 = arith.constant dense<0.000000e+00> : vector<9xf32>
    %534 = vector.multi_reduction <add>, %533, %cst_241 [1] : vector<9x64xf32> to vector<9xf32>
    %535 = vector.shape_cast %534 : vector<9xf32> to vector<9x1xf32>
    %cst_242 = arith.constant 6.400000e+01 : f32
    %536 = vector.broadcast %cst_242 : f32 to vector<9x1xf32>
    %537 = arith.divf %535, %536 : vector<9x1xf32>
    %538 = vector.broadcast %530 : vector<9x1xf32> to vector<9x64xf32>
    %539 = arith.subf %522, %538 : vector<9x64xf32>
    %cst_243 = arith.constant 9.99999974E-6 : f32
    %540 = vector.broadcast %cst_243 : f32 to vector<9x1xf32>
    %541 = arith.addf %537, %540 : vector<9x1xf32>
    %542 = math.rsqrt %541 : vector<9x1xf32>
    %543 = vector.broadcast %542 : vector<9x1xf32> to vector<9x64xf32>
    %544 = arith.mulf %539, %543 : vector<9x64xf32>
    %545 = vector.broadcast %524 : vector<1x64xf32> to vector<9x64xf32>
    %546 = arith.mulf %544, %545 : vector<9x64xf32>
    %547 = vector.broadcast %526 : vector<1x64xf32> to vector<9x64xf32>
    %548 = arith.addf %546, %547 : vector<9x64xf32>
    %c0_244 = arith.constant 0 : index
    %c0_245 = arith.constant 0 : index
    %c0_246 = arith.constant 0 : index
    %549 = vector.load %arg25[%c0_244, %c0_245, %c0_246] : memref<1x64x128xf32, #tpu.memory_space<vmem>>, vector<1x64x128xf32>
    %550 = vector.shape_cast %549 : vector<1x64x128xf32> to vector<64x128xf32>
    %cst_247 = arith.constant dense<0.000000e+00> : vector<9x128xf32>
    %551 = tpu.matmul %548, %550, %cst_247 {dimension_numbers = #tpu.dot_dimension_numbers<[1], [0], [0], [1], [0, 0, 1, 1], [], []>} : vector<9x64xf32>, vector<64x128xf32>, vector<9x128xf32> -> vector<9x128xf32>
    %c0_248 = arith.constant 0 : index
    %c0_249 = arith.constant 0 : index
    %c0_250 = arith.constant 0 : index
    %552 = vector.load %arg26[%c0_248, %c0_249, %c0_250] : memref<1x1x128xf32, #tpu.memory_space<vmem>>, vector<1x1x128xf32>
    %553 = vector.shape_cast %552 : vector<1x1x128xf32> to vector<1x128xf32>
    %554 = vector.broadcast %553 : vector<1x128xf32> to vector<9x128xf32>
    %555 = arith.addf %551, %554 : vector<9x128xf32>
    %cst_251 = arith.constant 0.000000e+00 : f32
    %556 = vector.broadcast %cst_251 : f32 to vector<9x128xf32>
    %557 = arith.maximumf %555, %556 : vector<9x128xf32>
    %c0_252 = arith.constant 0 : index
    %c0_253 = arith.constant 0 : index
    %c0_254 = arith.constant 0 : index
    %558 = vector.load %arg27[%c0_252, %c0_253, %c0_254] : memref<1x128x64xf32, #tpu.memory_space<vmem>>, vector<1x128x64xf32>
    %559 = vector.shape_cast %558 : vector<1x128x64xf32> to vector<128x64xf32>
    %cst_255 = arith.constant dense<0.000000e+00> : vector<9x64xf32>
    %560 = tpu.matmul %557, %559, %cst_255 {dimension_numbers = #tpu.dot_dimension_numbers<[1], [0], [0], [1], [0, 0, 1, 1], [], []>} : vector<9x128xf32>, vector<128x64xf32>, vector<9x64xf32> -> vector<9x64xf32>
    %c0_256 = arith.constant 0 : index
    %c0_257 = arith.constant 0 : index
    %c0_258 = arith.constant 0 : index
    %561 = vector.load %arg28[%c0_256, %c0_257, %c0_258] : memref<1x1x64xf32, #tpu.memory_space<vmem>>, vector<1x1x64xf32>
    %562 = vector.shape_cast %561 : vector<1x1x64xf32> to vector<1x64xf32>
    %563 = vector.broadcast %562 : vector<1x64xf32> to vector<9x64xf32>
    %564 = arith.addf %560, %563 : vector<9x64xf32>
    %565 = arith.addf %548, %564 : vector<9x64xf32>
    %c0_259 = arith.constant 0 : index
    %c0_260 = arith.constant 0 : index
    %c0_261 = arith.constant 0 : index
    %566 = vector.load %arg31[%c0_259, %c0_260, %c0_261] : memref<1x1x64xf32, #tpu.memory_space<vmem>>, vector<1x1x64xf32>
    %567 = vector.shape_cast %566 : vector<1x1x64xf32> to vector<1x64xf32>
    %c0_262 = arith.constant 0 : index
    %c0_263 = arith.constant 0 : index
    %c0_264 = arith.constant 0 : index
    %568 = vector.load %arg32[%c0_262, %c0_263, %c0_264] : memref<1x1x64xf32, #tpu.memory_space<vmem>>, vector<1x1x64xf32>
    %569 = vector.shape_cast %568 : vector<1x1x64xf32> to vector<1x64xf32>
    %cst_265 = arith.constant dense<0.000000e+00> : vector<9xf32>
    %570 = vector.multi_reduction <add>, %565, %cst_265 [1] : vector<9x64xf32> to vector<9xf32>
    %571 = vector.shape_cast %570 : vector<9xf32> to vector<9x1xf32>
    %cst_266 = arith.constant 6.400000e+01 : f32
    %572 = vector.broadcast %cst_266 : f32 to vector<9x1xf32>
    %573 = arith.divf %571, %572 : vector<9x1xf32>
    %574 = vector.broadcast %573 : vector<9x1xf32> to vector<9x64xf32>
    %575 = arith.subf %565, %574 : vector<9x64xf32>
    %576 = arith.mulf %575, %575 : vector<9x64xf32>
    %cst_267 = arith.constant dense<0.000000e+00> : vector<9xf32>
    %577 = vector.multi_reduction <add>, %576, %cst_267 [1] : vector<9x64xf32> to vector<9xf32>
    %578 = vector.shape_cast %577 : vector<9xf32> to vector<9x1xf32>
    %cst_268 = arith.constant 6.400000e+01 : f32
    %579 = vector.broadcast %cst_268 : f32 to vector<9x1xf32>
    %580 = arith.divf %578, %579 : vector<9x1xf32>
    %581 = vector.broadcast %573 : vector<9x1xf32> to vector<9x64xf32>
    %582 = arith.subf %565, %581 : vector<9x64xf32>
    %cst_269 = arith.constant 9.99999974E-6 : f32
    %583 = vector.broadcast %cst_269 : f32 to vector<9x1xf32>
    %584 = arith.addf %580, %583 : vector<9x1xf32>
    %585 = math.rsqrt %584 : vector<9x1xf32>
    %586 = vector.broadcast %585 : vector<9x1xf32> to vector<9x64xf32>
    %587 = arith.mulf %582, %586 : vector<9x64xf32>
    %588 = vector.broadcast %567 : vector<1x64xf32> to vector<9x64xf32>
    %589 = arith.mulf %587, %588 : vector<9x64xf32>
    %590 = vector.broadcast %569 : vector<1x64xf32> to vector<9x64xf32>
    %591 = arith.addf %589, %590 : vector<9x64xf32>
    %592 = vector.extract_strided_slice %591 {offsets = [0, 0], sizes = [1, 64], strides = [1, 1]} : vector<9x64xf32> to vector<1x64xf32>
    %c0_270 = arith.constant 0 : index
    %c0_271 = arith.constant 0 : index
    %c0_272 = arith.constant 0 : index
    %593 = vector.load %arg33[%c0_270, %c0_271, %c0_272] : memref<1x1x64xf32, #tpu.memory_space<vmem>>, vector<1x1x64xf32>
    %594 = vector.shape_cast %593 : vector<1x1x64xf32> to vector<1x64xf32>
    %595 = vector.shape_cast %592 : vector<1x64xf32> to vector<1x1x64xf32>
    tpu.vector_store %arg33[%c0_270, %c0_271, %c0_272], %595 {strides = array<i32>} : memref<1x1x64xf32, #tpu.memory_space<vmem>>, vector<1x1x64xf32>,
    return
  }
  func.func @transform_0(%arg0: i32) -> (i32, i32, i32) {
    %c0_i32 = arith.constant 0 : i32
    %c0_i32_0 = arith.constant 0 : i32
    %c0_i32_1 = arith.constant 0 : i32
    return %arg0, %c0_i32, %c0_i32_0 : i32, i32, i32
  }
  func.func @transform_1(%arg0: i32) -> (i32, i32, i32) {
    %c0_i32 = arith.constant 0 : i32
    %c0_i32_0 = arith.constant 0 : i32
    %c0_i32_1 = arith.constant 0 : i32
    return %arg0, %c0_i32, %c0_i32_0 : i32, i32, i32
  }
  func.func @transform_2(%arg0: i32) -> (i32, i32, i32) {
    %c0_i32 = arith.constant 0 : i32
    %c0_i32_0 = arith.constant 0 : i32
    %c0_i32_1 = arith.constant 0 : i32
    return %arg0, %c0_i32, %c0_i32_0 : i32, i32, i32
  }
  func.func @transform_3(%arg0: i32) -> (i32, i32) {
    %c0_i32 = arith.constant 0 : i32
    %c0_i32_0 = arith.constant 0 : i32
    %c0_i32_1 = arith.constant 0 : i32
    return %c0_i32, %c0_i32_0 : i32, i32
  }
  func.func @transform_4(%arg0: i32) -> (i32, i32) {
    %c0_i32 = arith.constant 0 : i32
    %c0_i32_0 = arith.constant 0 : i32
    %c0_i32_1 = arith.constant 0 : i32
    return %c0_i32, %c0_i32_0 : i32, i32
  }
  func.func @transform_5(%arg0: i32) -> (i32, i32) {
    %c0_i32 = arith.constant 0 : i32
    %c0_i32_0 = arith.constant 0 : i32
    %c0_i32_1 = arith.constant 0 : i32
    return %c0_i32, %c0_i32_0 : i32, i32
  }
  func.func @transform_6(%arg0: i32) -> (i32, i32) {
    %c0_i32 = arith.constant 0 : i32
    %c0_i32_0 = arith.constant 0 : i32
    %c0_i32_1 = arith.constant 0 : i32
    return %c0_i32, %c0_i32_0 : i32, i32
  }
  func.func @transform_7(%arg0: i32) -> (i32, i32, i32) {
    %c0_i32 = arith.constant 0 : i32
    %c0_i32_0 = arith.constant 0 : i32
    %c0_i32_1 = arith.constant 0 : i32
    %c0_i32_2 = arith.constant 0 : i32
    return %c0_i32, %c0_i32_0, %c0_i32_1 : i32, i32, i32
  }
  func.func @transform_8(%arg0: i32) -> (i32, i32, i32) {
    %c0_i32 = arith.constant 0 : i32
    %c0_i32_0 = arith.constant 0 : i32
    %c0_i32_1 = arith.constant 0 : i32
    %c0_i32_2 = arith.constant 0 : i32
    return %c0_i32, %c0_i32_0, %c0_i32_1 : i32, i32, i32
  }
  func.func @transform_9(%arg0: i32) -> (i32, i32, i32) {
    %c0_i32 = arith.constant 0 : i32
    %c0_i32_0 = arith.constant 0 : i32
    %c0_i32_1 = arith.constant 0 : i32
    %c0_i32_2 = arith.constant 0 : i32
    return %c0_i32, %c0_i32_0, %c0_i32_1 : i32, i32, i32
  }
  func.func @transform_10(%arg0: i32) -> (i32, i32, i32) {
    %c0_i32 = arith.constant 0 : i32
    %c0_i32_0 = arith.constant 0 : i32
    %c0_i32_1 = arith.constant 0 : i32
    %c0_i32_2 = arith.constant 0 : i32
    return %c0_i32, %c0_i32_0, %c0_i32_1 : i32, i32, i32
  }
  func.func @transform_11(%arg0: i32) -> (i32, i32, i32) {
    %c0_i32 = arith.constant 0 : i32
    %c0_i32_0 = arith.constant 0 : i32
    %c0_i32_1 = arith.constant 0 : i32
    %c0_i32_2 = arith.constant 0 : i32
    return %c0_i32, %c0_i32_0, %c0_i32_1 : i32, i32, i32
  }
  func.func @transform_12(%arg0: i32) -> (i32, i32, i32) {
    %c0_i32 = arith.constant 0 : i32
    %c0_i32_0 = arith.constant 0 : i32
    %c0_i32_1 = arith.constant 0 : i32
    %c0_i32_2 = arith.constant 0 : i32
    return %c0_i32, %c0_i32_0, %c0_i32_1 : i32, i32, i32
  }
  func.func @transform_13(%arg0: i32) -> (i32, i32, i32) {
    %c0_i32 = arith.constant 0 : i32
    %c0_i32_0 = arith.constant 0 : i32
    %c0_i32_1 = arith.constant 0 : i32
    %c0_i32_2 = arith.constant 0 : i32
    return %c0_i32, %c0_i32_0, %c0_i32_1 : i32, i32, i32
  }
  func.func @transform_14(%arg0: i32) -> (i32, i32, i32) {
    %c0_i32 = arith.constant 0 : i32
    %c0_i32_0 = arith.constant 0 : i32
    %c0_i32_1 = arith.constant 0 : i32
    %c0_i32_2 = arith.constant 0 : i32
    return %c0_i32, %c0_i32_0, %c0_i32_1 : i32, i32, i32
  }
  func.func @transform_15(%arg0: i32) -> (i32, i32, i32) {
    %c0_i32 = arith.constant 0 : i32
    %c0_i32_0 = arith.constant 0 : i32
    %c0_i32_1 = arith.constant 0 : i32
    %c0_i32_2 = arith.constant 0 : i32
    return %c0_i32, %c0_i32_0, %c0_i32_1 : i32, i32, i32
  }
  func.func @transform_16(%arg0: i32) -> (i32, i32, i32) {
    %c0_i32 = arith.constant 0 : i32
    %c0_i32_0 = arith.constant 0 : i32
    %c0_i32_1 = arith.constant 0 : i32
    %c0_i32_2 = arith.constant 0 : i32
    return %c0_i32, %c0_i32_0, %c0_i32_1 : i32, i32, i32
  }
  func.func @transform_17(%arg0: i32) -> (i32, i32, i32) {
    %c0_i32 = arith.constant 0 : i32
    %c0_i32_0 = arith.constant 0 : i32
    %c0_i32_1 = arith.constant 0 : i32
    %c0_i32_2 = arith.constant 0 : i32
    return %c0_i32, %c0_i32_0, %c0_i32_1 : i32, i32, i32
  }
  func.func @transform_18(%arg0: i32) -> (i32, i32, i32) {
    %c0_i32 = arith.constant 0 : i32
    %c0_i32_0 = arith.constant 0 : i32
    %c0_i32_1 = arith.constant 0 : i32
    %c0_i32_2 = arith.constant 0 : i32
    return %c0_i32, %c0_i32_0, %c0_i32_1 : i32, i32, i32
  }
  func.func @transform_19(%arg0: i32) -> (i32, i32) {
    %c0_i32 = arith.constant 0 : i32
    %c0_i32_0 = arith.constant 0 : i32
    %c0_i32_1 = arith.constant 0 : i32
    return %c0_i32, %c0_i32_0 : i32, i32
  }
  func.func @transform_20(%arg0: i32) -> (i32, i32, i32) {
    %c0_i32 = arith.constant 0 : i32
    %c0_i32_0 = arith.constant 0 : i32
    %c0_i32_1 = arith.constant 0 : i32
    %c0_i32_2 = arith.constant 0 : i32
    return %c0_i32, %c0_i32_0, %c0_i32_1 : i32, i32, i32
  }
  func.func @transform_21(%arg0: i32) -> (i32, i32, i32) {
    %c0_i32 = arith.constant 0 : i32
    %c0_i32_0 = arith.constant 0 : i32
    %c0_i32_1 = arith.constant 0 : i32
    %c0_i32_2 = arith.constant 0 : i32
    return %c0_i32, %c0_i32_0, %c0_i32_1 : i32, i32, i32
  }
  func.func @transform_22(%arg0: i32) -> (i32, i32, i32) {
    %c0_i32 = arith.constant 0 : i32
    %c0_i32_0 = arith.constant 0 : i32
    %c0_i32_1 = arith.constant 0 : i32
    %c0_i32_2 = arith.constant 0 : i32
    return %c0_i32, %c0_i32_0, %c0_i32_1 : i32, i32, i32
  }
  func.func @transform_23(%arg0: i32) -> (i32, i32, i32) {
    %c0_i32 = arith.constant 0 : i32
    %c0_i32_0 = arith.constant 0 : i32
    %c0_i32_1 = arith.constant 0 : i32
    %c0_i32_2 = arith.constant 0 : i32
    return %c0_i32, %c0_i32_0, %c0_i32_1 : i32, i32, i32
  }
  func.func @transform_24(%arg0: i32) -> (i32, i32, i32) {
    %c0_i32 = arith.constant 0 : i32
    %c0_i32_0 = arith.constant 0 : i32
    %c0_i32_1 = arith.constant 0 : i32
    %c0_i32_2 = arith.constant 0 : i32
    return %c0_i32, %c0_i32_0, %c0_i32_1 : i32, i32, i32
  }
  func.func @transform_25(%arg0: i32) -> (i32, i32, i32) {
    %c0_i32 = arith.constant 0 : i32
    %c0_i32_0 = arith.constant 0 : i32
    %c0_i32_1 = arith.constant 0 : i32
    %c0_i32_2 = arith.constant 0 : i32
    return %c0_i32, %c0_i32_0, %c0_i32_1 : i32, i32, i32
  }
  func.func @transform_26(%arg0: i32) -> (i32, i32, i32) {
    %c0_i32 = arith.constant 0 : i32
    %c0_i32_0 = arith.constant 0 : i32
    %c0_i32_1 = arith.constant 0 : i32
    %c0_i32_2 = arith.constant 0 : i32
    return %c0_i32, %c0_i32_0, %c0_i32_1 : i32, i32, i32
  }
  func.func @transform_27(%arg0: i32) -> (i32, i32, i32) {
    %c0_i32 = arith.constant 0 : i32
    %c0_i32_0 = arith.constant 0 : i32
    %c0_i32_1 = arith.constant 0 : i32
    %c0_i32_2 = arith.constant 0 : i32
    return %c0_i32, %c0_i32_0, %c0_i32_1 : i32, i32, i32
  }
  func.func @transform_28(%arg0: i32) -> (i32, i32, i32) {
    %c0_i32 = arith.constant 0 : i32
    %c0_i32_0 = arith.constant 0 : i32
    %c0_i32_1 = arith.constant 0 : i32
    %c0_i32_2 = arith.constant 0 : i32
    return %c0_i32, %c0_i32_0, %c0_i32_1 : i32, i32, i32
  }
  func.func @transform_29(%arg0: i32) -> (i32, i32, i32) {
    %c0_i32 = arith.constant 0 : i32
    %c0_i32_0 = arith.constant 0 : i32
    %c0_i32_1 = arith.constant 0 : i32
    %c0_i32_2 = arith.constant 0 : i32
    return %c0_i32, %c0_i32_0, %c0_i32_1 : i32, i32, i32
  }
  func.func @transform_30(%arg0: i32) -> (i32, i32, i32) {
    %c0_i32 = arith.constant 0 : i32
    %c0_i32_0 = arith.constant 0 : i32
    %c0_i32_1 = arith.constant 0 : i32
    %c0_i32_2 = arith.constant 0 : i32
    return %c0_i32, %c0_i32_0, %c0_i32_1 : i32, i32, i32
  }
  func.func @transform_31(%arg0: i32) -> (i32, i32, i32) {
    %c0_i32 = arith.constant 0 : i32
    %c0_i32_0 = arith.constant 0 : i32
    %c0_i32_1 = arith.constant 0 : i32
    %c0_i32_2 = arith.constant 0 : i32
    return %c0_i32, %c0_i32_0, %c0_i32_1 : i32, i32, i32
  }
  func.func @transform_32(%arg0: i32) -> (i32, i32, i32) {
    %c0_i32 = arith.constant 0 : i32
    %c0_i32_0 = arith.constant 0 : i32
    %c0_i32_1 = arith.constant 0 : i32
    return %arg0, %c0_i32, %c0_i32_0 : i32, i32, i32
  }
}

</mosaic_0001>

<bundles_post_ra>
// kernel: tpu_custom_call.1
= control target key start
LH: loop header
LB: loop body
LE: loop exit
PB: predicated region body
PF: predicated region fallthrough
CT: control target
= control target key end

     0   :  { %s7472_s6 = smov 1   ;;  %s7473_s10 = smov 2   ;;  %s8654_s0 = inlined_call_operand.smem [shape: u32[33], index: -1, kind: input, shape index: {}] }
   0x1   :  { %s7545_s5 = sld [smem:[%s8654_s0]]   ;;  %s7474_s14 = smov 3  }
   0x2   :  { %s7550_s9 = sld [smem:[%s8654_s0 + %s7472_s6]]   ;;  %s7475_s18 = smov 4  }
   0x3   :  { %s7555_s13 = sld [smem:[%s8654_s0 + %s7473_s10]]   ;;  %s7476_s22 = smov 5  }
   0x4   :  { %s7560_s17 = sld [smem:[%s8654_s0 + %s7474_s14]]   ;;  %s7477_s26 = smov 6  }
   0x5   :  { %s7565_s21 = sld [smem:[%s8654_s0 + %s7475_s18]]   ;;  %s7478_s30 = smov 7  }
   0x6   :  { %s7570_s25 = sld [smem:[%s8654_s0 + %s7476_s22]]   ;;  %s7479_s4 = smov 8  }
   0x7   :  { %8679 = sst [smem:[#allocation38_spill]] %s7545_s5  ;;  %s7480_s10 = smov 9  }
   0x8   :  { %8680 = sst [smem:[#allocation39_spill]] %s7550_s9  ;;  %s7481_s15 = smov 10  }
   0x9   :  { %8681 = sst [smem:[#allocation40_spill]] %s7555_s13  ;;  %s7482_s20 = smov 11  }
   0xa   :  { %8682 = sst [smem:[#allocation41_spill]] %s7560_s17  ;;  %s7484_s1 = smov 13  }
   0xb   :  { %8683 = sst [smem:[#allocation42_spill]] %s7565_s21  ;;  %s7485_s7 = smov 14  }
   0xc   :  { %8684 = sst [smem:[#allocation43_spill]] %s7570_s25  ;;  %s7487_s22 = smov 16  }
   0xd   :  { %s7575_s29 = sld [smem:[%s8654_s0 + %s7477_s26]]   ;;  %s7483_s26 = smov 12  }
   0xe   :  { %s7580_s3 = sld [smem:[%s8654_s0 + %s7478_s30]]   ;;  %s7488_s28 = smov 17  }
   0xf   :  { %s7585_s8 = sld [smem:[%s8654_s0 + %s7479_s4]]  }
  0x10   :  { %s7590_s14 = sld [smem:[%s8654_s0 + %s7480_s10]]  }
  0x11   :  { %s7595_s19 = sld [smem:[%s8654_s0 + %s7481_s15]]   ;;  %s7486_s15 = smov 15  }
  0x12   :  { %s7600_s24 = sld [smem:[%s8654_s0 + %s7482_s20]]  }
  0x13   :  { %8685 = sst [smem:[#allocation44_spill]] %s7575_s29 }
  0x14   :  { %8686 = sst [smem:[#allocation45_spill]] %s7580_s3 }
  0x15   :  { %8687 = sst [smem:[#allocation46_spill]] %s7585_s8 }
  0x16   :  { %8688 = sst [smem:[#allocation47_spill]] %s7590_s14 }
  0x17   :  { %8689 = sst [smem:[#allocation48_spill]] %s7595_s19 }
  0x18   :  { %8690 = sst [smem:[#allocation49_spill]] %s7600_s24 }
  0x19   :  { %s7605_s30 = sld [smem:[%s8654_s0 + %s7483_s26]]  }
  0x1a   :  { %s7610_s6 = sld [smem:[%s8654_s0 + %s7484_s1]]  }
  0x1b   :  { %s7615_s12 = sld [smem:[%s8654_s0 + %s7485_s7]]   ;;  %s7489_s7 = smov 18  }
  0x1c   :  { %s7620_s20 = sld [smem:[%s8654_s0 + %s7486_s15]]   ;;  %s7490_s15 = smov 19  }
  0x1d   :  { %s7625_s27 = sld [smem:[%s8654_s0 + %s7487_s22]]   ;;  %s7491_s22 = smov 20  }
  0x1e   :  { %s7630_s4 = sld [smem:[%s8654_s0 + %s7488_s28]]   ;;  %s7492_s28 = smov 21  }
  0x1f   :  { %s7640_s24 = sld [smem:[%s8654_s0 + %s7490_s15]]   ;;  %s7494_s15 = smov 23  }
  0x20   :  { %8691 = sst [smem:[#allocation50_spill]] %s7610_s6 }
  0x21   :  { %8692 = sst [smem:[#allocation51_spill]] %s7615_s12 }
  0x22   :  { %8693 = sst [smem:[#allocation52_spill]] %s7620_s20 }
  0x23   :  { %s7635_s6 = sld [smem:[%s8654_s0 + %s7489_s7]]   ;;  %s7493_s7 = smov 22  }
  0x24   :  { %8694 = sst [smem:[#allocation53_spill]] %s7630_s4 }
  0x25   :  { %s7645_s14 = sld [smem:[%s8654_s0 + %s7491_s22]]   ;;  %s7495_s22 = smov 24  }
  0x26   :  { %s7650_s25 = sld [smem:[%s8654_s0 + %s7492_s28]]   ;;  %s7496_s28 = smov 25  }
  0x27   :  { %s7655_s3 = sld [smem:[%s8654_s0 + %s7493_s7]]   ;;  %s7497_s7 = smov 26  }
  0x28   :  { %s7660_s17 = sld [smem:[%s8654_s0 + %s7494_s15]]   ;;  %s7498_s15 = smov 27  }
  0x29   :  { %8695 = sst [smem:[#allocation54_spill]] %s7635_s6 }
  0x2a   :  { %s7675_s5 = sld [smem:[%s8654_s0 + %s7497_s7]]   ;;  %s7501_s7 = smov 30  }
  0x2b   :  { %8696 = sst [smem:[#allocation55_spill]] %s7645_s14 }
  0x2c   :  { %8697 = sst [smem:[#allocation56_spill]] %s7650_s25 }
  0x2d   :  { %8698 = sst [smem:[#allocation57_spill]] %s7655_s3 }
  0x2e   :  { %8699 = sst [smem:[#allocation58_spill]] %s7660_s17 }
  0x2f   :  { %s7665_s14 = sld [smem:[%s8654_s0 + %s7495_s22]]   ;;  %s7499_s22 = smov 28  }
  0x30   :  { %s7670_s25 = sld [smem:[%s8654_s0 + %s7496_s28]]   ;;  %s7500_s28 = smov 29  }
  0x31   :  { %8702 = sst [smem:[#allocation61_spill]] %s7675_s5 }
  0x32   :  { %s7680_s17 = sld [smem:[%s8654_s0 + %s7498_s15]]   ;;  %s7502_s15 = smov 31  }
  0x33   :  { %s7685_s13 = sld [smem:[%s8654_s0 + %s7499_s22]]   ;;  %s7503_s22 = smov 32  }
  0x34   :  { %s7695_s5 = sld [smem:[%s8654_s0 + %s7501_s7]]  }
  0x35   :  { %8700 = sst [smem:[#allocation59_spill]] %s7665_s14 }
  0x36   :  { %8701 = sst [smem:[#allocation60_spill]] %s7670_s25 }
  0x37   :  { %s7690_s25 = sld [smem:[%s8654_s0 + %s7500_s28]]  }
  0x38   :  { %8703 = sst [smem:[#allocation62_spill]] %s7680_s17 }
  0x39   :  { %8704 = sst [smem:[#allocation63_spill]] %s7685_s13 }
  0x3a   :  { %8705 = sst [smem:[#allocation64_spill]] %s7695_s5 }
  0x3b   :  { %s7700_s17 = sld [smem:[%s8654_s0 + %s7502_s15]]  }
  0x3c   :  { %s7705_s13 = sld [smem:[%s8654_s0 + %s7503_s22]]  }
  0x42   :  { %8706 = sst [smem:[#allocation65_spill]] %s7705_s13 }
  0x43   :  { %70 = vsyncpa [#allocation4], 0 }
  0x44   :  { %72 = vsyncpa [#allocation4 + $0x1], 0 }
  0x45   :  { %73 = vsyncpa [#allocation7], 0 }
  0x46   :  { %75 = vsyncpa [#allocation7 + $0x1], 0 }
  0x47   :  { %76 = vsyncpa [#allocation10], 0 }
  0x48   :  { %77 = vsyncpa [#allocation13], 0 }
  0x49   :  { %78 = vsyncpa [#allocation16], 0 }
  0x4a   :  { %79 = vsyncpa [#allocation19], 0 }
  0x4b   :  { %80 = vsyncpa [#allocation22], 0 }
  0x4c   :  { %81 = vsyncpa [#allocation25], 0 }
  0x4d   :  { %82 = vsyncpa [#allocation5], 0 }
  0x4e   :  { %84 = vsyncpa [#allocation5 + $0x1], 0  ;;  %s7707_s28 = smov 0   ;;  %s7709_s1 = smov 0  }
  0x4f   :  { %s7711_s2 = smov 0   ;;  %s7713_s0 = smov 0  }
  0x50 LB: > { %s8707_s9 = sld [smem:[#allocation39_spill]]  ;;  %s7504_s7 = smov [#allocation8]   ;;  %s7458_s28 = sphi %s7707_s28, %s8767_s28   ;;  %s7470_s0 = sphi %s7713_s0, %s8770_s0   ;;  %s7466_s2 = sphi %s7711_s2, %s8769_s2   ;;  %s7462_s1 = sphi %s7709_s1, %s8768_s1  }
  0x51   : > { %s824_s10 = sshll.u32 %s7504_s7, 4  ;;  %s7728_s11 = sadd.s32 4294967295, %s7470_s0   ;;  %s825_s10 = int_to_ptr.vmem [resolvable:$true] %s824_s10 }
  0x52   : > { %p5860_p0 = scmp.ge.s32.totalorder %s7470_s0, 1  ;;  %p8664_p1 = scmp.eq.s32.totalorder %s7728_s11, 0 }
  0x53   : > { %p808_p2 = scmp.lt.s32.totalorder %s7470_s0, 5  ;;  %s7505_s16 = smov [#allocation9]  }
  0x54   : > { %s838_s18 = sshll.u32 %s7505_s16, 4  ;;  %s7506_s22 = smov [#allocation12]   ;;  %s839_s18 = int_to_ptr.vmem [resolvable:$true] %s838_s18 }
  0x55   : > { %p7733_p3 = pnand %p5860_p0, %p808_p2  ;;  %s867_s23 = sshll.u32 %s7506_s22, 4  ;;  %s7745_s23 = int_to_ptr.vmem [resolvable:$true] %s867_s23 }
  0x56   : > { %s6991_s13 = scalar_lea.vmem %s825_s10, 128  ;;  %p6999_p10 = scmp.lt.s32.totalorder %s825_s10, %s825_s10 }
  0x57   : > { %s8708_s15 = scalar_select %p7733_p3, 1, 0 }
  0x58   : > { %p6722_p4 = pneg %p7733_p3  ;;  %p6992_p7 = scmp.ne.s32.totalorder %s825_s10, %s6991_s13 }
  0x59   : > { %p7000_p11 = scmp.lt.s32.totalorder %s6991_s13, %s6991_s13 }
  0x5a   : > { %p7741_p5 = pnand %p6722_p4, %p8664_p1 }
  0x5b   : > { %p7001_p12 = por %p7000_p11, %p6999_p10 }
  0x5c   : > { %p7749_p6 = pneg %p7741_p5 }
  0x5e   : > { %p6994_p8 = pnand %p6992_p7, %p7749_p6 }
  0x60   : > { %p6995_p9 = pneg %p6994_p8 }
  0x62   : > { %p7002_p13 = pnand %p7001_p12, %p6995_p9 }
  0x64   : > { %7005 = shalt.err (!%p7002_p13)
}
  0x65   : > { %s8711_s21 = sld [smem:[#allocation42_spill]]  ;;  %s7017_s16 = scalar_lea.vmem %s839_s18, 16 }
  0x66   : > { %p7018_p0 = scmp.ne.s32.totalorder %s839_s18, %s7017_s16  ;;  %s7024_s22 = scalar_lea.vmem %s839_s18, 32 }
  0x67   : > { %p7025_p1 = scmp.lt.s32.totalorder %s839_s18, %s839_s18  ;;  %p7026_p3 = scmp.lt.s32.totalorder %s7024_s22, %s7017_s16 }
  0x68   : > { %p7020_p2 = pnand %p7018_p0, %p7749_p6 }
  0x69   : > { %p7027_p7 = por %p7026_p3, %p7025_p1 }
  0x6a   : > { %p7021_p4 = pneg %p7020_p2 }
  0x6b   : > { %6725 = dma.hbm_to_vmem [thread:$0]  (!%p7741_p5), %s8711_s21, 128, %s825_s10, [#allocation7]  }
  0x6c   : > { %p7028_p8 = pnand %p7027_p7, %p7021_p4 }
  0x6e   : > { %7031 = shalt.err (!%p7028_p8)
}
  0x6f   : > { %s8712_s29 = sld [smem:[#allocation44_spill]]  ;;  %s7043_s13 = scalar_lea.vmem %s7745_s23, 32 }
  0x70   : > { %p7044_p9 = scmp.ne.s32.totalorder %s7745_s23, %s7043_s13  ;;  %p7051_p12 = scmp.lt.s32.totalorder %s7745_s23, %s7745_s23 }
  0x71   : > { %p7052_p13 = scmp.lt.s32.totalorder %s7043_s13, %s7043_s13 }
  0x72   : > { %p7046_p10 = pnand %p7044_p9, %p7749_p6 }
  0x73   : > { %p7053_p0 = por %p7052_p13, %p7051_p12 }
  0x74   : > { %p7047_p11 = pneg %p7046_p10 }
  0x75   : > { %6728 = dma.hbm_to_vmem [thread:$0]  (!%p7741_p5), %s8712_s29, 16, %s839_s18, [#allocation10]  }
  0x76   : > { %p7054_p1 = pnand %p7053_p0, %p7047_p11 }
  0x78   : > { %7057 = shalt.err (!%p7054_p1)
}
  0x79   : > { %s8666_s10 = smov 16   ;;  %s8713_s19 = sld [smem:[#allocation48_spill]] }
  0x7a   : > { %s8670_s16 = smov 1   ;;  %s7509_s18 = smov [#allocation15]  }
  0x7b   : > { %s899_s22 = sshll.u32 %s7509_s18, 4  ;;  %s7510_s21 = smov [#allocation18]   ;;  %s900_s22 = int_to_ptr.vmem [resolvable:$true] %s899_s22 }
  0x7c   : > { %s925_s29 = sshll.u32 %s7510_s21, 4  ;;  %s7069_s13 = scalar_lea.vmem %s900_s22, 32  ;;  %s926_s29 = int_to_ptr.vmem [resolvable:$true] %s925_s29 }
  0x7d   : > { %p7070_p3 = scmp.ne.s32.totalorder %s900_s22, %s7069_s13  ;;  %p7077_p7 = scmp.lt.s32.totalorder %s900_s22, %s900_s22 }
  0x7e   : > { %p7078_p8 = scmp.lt.s32.totalorder %s7069_s13, %s7069_s13 }
  0x7f   : > { %6734 = dma.hbm_to_vmem [thread:$0]  (!%p7741_p5), %s8713_s19, 32, %s7745_s23, [#allocation13], %s8666_s10, %s8666_s10, %s8670_s16  }
  0x80   : > { %p7072_p2 = pnand %p7070_p3, %p7749_p6  ;;  %p7079_p9 = por %p7078_p8, %p7077_p7 }
  0x82   : > { %p7073_p4 = pneg %p7072_p2 }
  0x84   : > { %p7080_p10 = pnand %p7079_p9, %p7073_p4 }
  0x86   : > { %7083 = shalt.err (!%p7080_p10)
}
  0x87   : > { %s8714_s12 = sld [smem:[#allocation51_spill]]  ;;  %s7095_s21 = scalar_lea.vmem %s926_s29, 32 }
  0x88   : > { %p7096_p11 = scmp.ne.s32.totalorder %s926_s29, %s7095_s21  ;;  %p7103_p0 = scmp.lt.s32.totalorder %s926_s29, %s926_s29 }
  0x89   : > { %p7104_p1 = scmp.lt.s32.totalorder %s7095_s21, %s7095_s21 }
  0x8a   : > { %p7098_p12 = pnand %p7096_p11, %p7749_p6 }
  0x8b   : > { %p7105_p3 = por %p7104_p1, %p7103_p0 }
  0x8c   : > { %p7099_p13 = pneg %p7098_p12 }
  0x8d   : > { %6740 = dma.hbm_to_vmem [thread:$0]  (!%p7741_p5), %s8714_s12, 32, %s900_s22, [#allocation16], %s8666_s10, %s8666_s10, %s8670_s16  }
  0x8e   : > { %p7106_p2 = pnand %p7105_p3, %p7099_p13 }
  0x90   : > { %7109 = shalt.err (!%p7106_p2)
}
  0x91   : > { %6746 = dma.hbm_to_vmem [thread:$0]  (!%p7741_p5), %s7625_s27, 32, %s926_s29, [#allocation19], %s8666_s10, %s8666_s10, %s8670_s16  }
  0x92   : > { %s7511_s23 = smov [#allocation21]   ;;  %s7512_s22 = smov [#allocation24]  }
  0x93   : > { %s951_s18 = sshll.u32 %s7511_s23, 4  ;;  %s981_s13 = sshll.u32 %s7512_s22, 4  ;;  %s952_s18 = int_to_ptr.vmem [resolvable:$true] %s951_s18  ;;  %s982_s13 = int_to_ptr.vmem [resolvable:$true] %s981_s13 }
  0x94   : > { %s7121_s12 = scalar_lea.vmem %s952_s18, 32  ;;  %p7129_p9 = scmp.lt.s32.totalorder %s952_s18, %s952_s18 }
  0x95   : > { %p7122_p4 = scmp.ne.s32.totalorder %s952_s18, %s7121_s12  ;;  %p7130_p10 = scmp.lt.s32.totalorder %s7121_s12, %s7121_s12 }
  0x97   : > { %p7124_p7 = pnand %p7122_p4, %p7749_p6  ;;  %p7131_p11 = por %p7130_p10, %p7129_p9 }
  0x99   : > { %p7125_p8 = pneg %p7124_p7 }
  0x9b   : > { %p7132_p12 = pnand %p7131_p11, %p7125_p8 }
  0x9d   : > { %7135 = shalt.err (!%p7132_p12)
}
  0x9e   : > { %s8715_s6 = sld [smem:[#allocation54_spill]]  ;;  %s7147_s29 = scalar_lea.vmem %s982_s13, 1024 }
  0x9f   : > { %p7148_p13 = scmp.ne.s32.totalorder %s982_s13, %s7147_s29  ;;  %p7155_p3 = scmp.lt.s32.totalorder %s982_s13, %s982_s13 }
  0xa0   : > { %p7156_p2 = scmp.lt.s32.totalorder %s7147_s29, %s7147_s29 }
  0xa1   : > { %p7150_p0 = pnand %p7148_p13, %p7749_p6 }
  0xa2   : > { %p7157_p4 = por %p7156_p2, %p7155_p3 }
  0xa3   : > { %p7151_p1 = pneg %p7150_p0 }
  0xa4   : > { %6752 = dma.hbm_to_vmem [thread:$0]  (!%p7741_p5), %s8715_s6, 32, %s952_s18, [#allocation22], %s8666_s10, %s8666_s10, %s8670_s16  }
  0xa5   : > { %p7158_p7 = pnand %p7157_p4, %p7151_p1 }
  0xa7   : > { %7161 = shalt.err (!%p7158_p7)
}
  0xa8   : > { %s8668_s12 = smov 128   ;;  %s8716_s3 = sld [smem:[#allocation57_spill]] }
  0xa9   : > { %s8669_s21 = smov 8   ;;  %s7515_s23 = smov [#allocation11]  }
  0xaa   : > { %s851_s18 = sshll.u32 %s7515_s23, 4  ;;  %s852_s18 = int_to_ptr.vmem [resolvable:$true] %s851_s18 }
  0xab   : > { %s7173_s22 = scalar_lea.vmem %s852_s18, 64  ;;  %p7181_p11 = scmp.lt.s32.totalorder %s852_s18, %s852_s18 }
  0xac   : > { %p7174_p8 = scmp.ne.s32.totalorder %s852_s18, %s7173_s22  ;;  %p7182_p12 = scmp.lt.s32.totalorder %s7173_s22, %s7173_s22 }
  0xae   : > { %6758 = dma.hbm_to_vmem [thread:$0]  (!%p7741_p5), %s8716_s3, 1024, %s982_s13, [#allocation25], %s8668_s12, %s8668_s12, %s8669_s21  }
  0xaf   : > { %p7176_p9 = pnand %p7174_p8, %p7749_p6  ;;  %p7183_p13 = por %p7182_p12, %p7181_p11 }
  0xb1   : > { %p7177_p10 = pneg %p7176_p9 }
  0xb3   : > { %p7184_p0 = pnand %p7183_p13, %p7177_p10 }
  0xb5   : > { %7187 = shalt.err (!%p7184_p0)
}
  0xb6   : > { %s7516_s29 = smov 32   ;;  %s8717_s8 = sld [smem:[#allocation46_spill]] }
  0xb7   : > { %s7517_s10 = smov 2   ;;  %s7518_s13 = smov [#allocation14]  }
  0xb8   : > { %s883_s23 = sshll.u32 %s7518_s13, 4  ;;  %s7519_s12 = smov [#allocation17]   ;;  %s884_s23 = int_to_ptr.vmem [resolvable:$true] %s883_s23 }
  0xb9   : > { %s912_s21 = sshll.u32 %s7519_s12, 4  ;;  %s7199_s16 = scalar_lea.vmem %s884_s23, 32  ;;  %s913_s21 = int_to_ptr.vmem [resolvable:$true] %s912_s21 }
  0xba   : > { %p7200_p1 = scmp.ne.s32.totalorder %s884_s23, %s7199_s16  ;;  %p7207_p4 = scmp.lt.s32.totalorder %s884_s23, %s884_s23 }
  0xbb   : > { %p7208_p7 = scmp.lt.s32.totalorder %s7199_s16, %s7199_s16 }
  0xbc   : > { %6731 = dma.hbm_to_vmem [thread:$0]  (!%p7741_p5), %s8717_s8, 64, %s852_s18, [#allocation10], %s7516_s29, %s7516_s29, %s7517_s10  }
  0xbd   : > { %p7202_p3 = pnand %p7200_p1, %p7749_p6  ;;  %p7209_p8 = por %p7208_p7, %p7207_p4 }
  0xbf   : > { %p7203_p2 = pneg %p7202_p3 }
  0xc1   : > { %p7210_p9 = pnand %p7209_p8, %p7203_p2 }
  0xc3   : > { %7213 = shalt.err (!%p7210_p9)
}
  0xc4   : > { %s8718_s22 = smov 1   ;;  %s8719_s10 = smov 16  }
  0xc5   : > { %6737 = dma.hbm_to_vmem [thread:$0]  (!%p7741_p5), %s7605_s30, 32, %s884_s23, [#allocation13], %s8719_s10, %s8719_s10, %s8718_s22  }
  0xc6   : > { %s7225_s12 = scalar_lea.vmem %s913_s21, 32  ;;  %p7233_p13 = scmp.lt.s32.totalorder %s913_s21, %s913_s21 }
  0xc7   : > { %p7226_p10 = scmp.ne.s32.totalorder %s913_s21, %s7225_s12  ;;  %p7234_p0 = scmp.lt.s32.totalorder %s7225_s12, %s7225_s12 }
  0xc9   : > { %p7228_p11 = pnand %p7226_p10, %p7749_p6  ;;  %p7235_p1 = por %p7234_p0, %p7233_p13 }
  0xcb   : > { %p7229_p12 = pneg %p7228_p11 }
  0xcd   : > { %p7236_p3 = pnand %p7235_p1, %p7229_p12 }
  0xcf   : > { %7239 = shalt.err (!%p7236_p3)
}
  0xd0   : > { %s8720_s20 = sld [smem:[#allocation52_spill]]  ;;  %s7520_s16 = smov [#allocation20]  }
  0xd1   : > { %s938_s18 = sshll.u32 %s7520_s16, 4  ;;  %s7521_s29 = smov [#allocation23]   ;;  %s939_s18 = int_to_ptr.vmem [resolvable:$true] %s938_s18 }
  0xd2   : > { %s965_s13 = sshll.u32 %s7521_s29, 4  ;;  %s7251_s23 = scalar_lea.vmem %s939_s18, 32  ;;  %s966_s13 = int_to_ptr.vmem [resolvable:$true] %s965_s13 }
  0xd3   : > { %p7252_p2 = scmp.ne.s32.totalorder %s939_s18, %s7251_s23  ;;  %p7259_p8 = scmp.lt.s32.totalorder %s939_s18, %s939_s18 }
  0xd4   : > { %p7260_p9 = scmp.lt.s32.totalorder %s7251_s23, %s7251_s23 }
  0xd5   : > { %p7254_p4 = pnand %p7252_p2, %p7749_p6 }
  0xd6   : > { %6743 = dma.hbm_to_vmem [thread:$0]  (!%p7741_p5), %s8720_s20, 32, %s913_s21, [#allocation16], %s8719_s10, %s8719_s10, %s8718_s22  }
  0xd7   : > { %p7255_p7 = pneg %p7254_p4  ;;  %p7261_p10 = por %p7260_p9, %p7259_p8 }
  0xd9   : > { %p7262_p11 = pnand %p7261_p10, %p7255_p7 }
  0xdb   : > { %7265 = shalt.err (!%p7262_p11)
}
  0xdc   : > { %s8721_s4 = sld [smem:[#allocation53_spill]]  ;;  %s7277_s21 = scalar_lea.vmem %s966_s13, 16 }
  0xdd   : > { %p7278_p12 = scmp.ne.s32.totalorder %s966_s13, %s7277_s21  ;;  %s7284_s12 = scalar_lea.vmem %s966_s13, 32 }
  0xde   : > { %p7285_p1 = scmp.lt.s32.totalorder %s966_s13, %s966_s13  ;;  %p7286_p3 = scmp.lt.s32.totalorder %s7284_s12, %s7277_s21 }
  0xdf   : > { %p7280_p13 = pnand %p7278_p12, %p7749_p6 }
  0xe0   : > { %p7287_p2 = por %p7286_p3, %p7285_p1 }
  0xe1   : > { %p7281_p0 = pneg %p7280_p13 }
  0xe2   : > { %6749 = dma.hbm_to_vmem [thread:$0]  (!%p7741_p5), %s8721_s4, 32, %s939_s18, [#allocation19], %s8719_s10, %s8719_s10, %s8718_s22  }
  0xe3   : > { %p7288_p4 = pnand %p7287_p2, %p7281_p0 }
  0xe5   : > { %7291 = shalt.err (!%p7288_p4)
}
  0xe6   : > { %6755 = dma.hbm_to_vmem [thread:$0]  (!%p7741_p5), %s7640_s24, 16, %s966_s13, [#allocation22]  }
  0xe7   : > { %s7522_s16 = smov [#allocation26]  }
  0xe8   : > { %s997_s29 = sshll.u32 %s7522_s16, 4  ;;  %s998_s29 = int_to_ptr.vmem [resolvable:$true] %s997_s29 }
  0xe9   : > { %s7303_s22 = scalar_lea.vmem %s998_s29, 1024  ;;  %p7311_p10 = scmp.lt.s32.totalorder %s998_s29, %s998_s29 }
  0xea   : > { %p7304_p7 = scmp.ne.s32.totalorder %s998_s29, %s7303_s22  ;;  %p7312_p11 = scmp.lt.s32.totalorder %s7303_s22, %s7303_s22 }
  0xec   : > { %p7306_p8 = pnand %p7304_p7, %p7749_p6  ;;  %p7313_p12 = por %p7312_p11, %p7311_p10 }
  0xee   : > { %p7307_p9 = pneg %p7306_p8 }
  0xf0   : > { %p7314_p13 = pnand %p7313_p12, %p7307_p9 }
  0xf2   : > { %7317 = shalt.err (!%p7314_p13)
}
  0xf3   : > { %s8722_s10 = smov 8   ;;  %s8723_s18 = smov 128  }
  0xf4   : > { %s8724_s14 = sld [smem:[#allocation59_spill]]  ;;  %s5859_s26 = sadd.s32 4294967294, %s7470_s0  }
  0xf5   : > { %s7852_s7 = sadd.s32 1, %s7470_s0   ;;  %s123_s13 = sadd.s32 1, %s7466_s2 }
  0xf6   : > { %s120_s23 = ssub.s32 %s7470_s0, %s7852_s7  ;;  %p130_p6 = scmp.ne.s32.totalorder %s7466_s2, %s7462_s1 }
  0xf7   : > { %p121_p0 = scmp.eq.s32.totalorder %s120_s23, 0  ;;  %p131_p1 = scmp.eq.s32.totalorder %s7470_s0, 0 }
  0xf8   : > { %p136_p3 = scmp.ne.s32.totalorder %s7462_s1, %s7458_s28  ;;  %p795_p2 = scmp.eq.s32.totalorder %s7728_s11, 3 }
  0xf9   : > { %s8725_s21 = sld [smem:[#allocation40_spill]]  ;;  %p132_p4 = por %p131_p1, %p130_p6 }
  0xfa   : > { %6761 = dma.hbm_to_vmem [thread:$0]  (!%p7741_p5), %s8724_s14, 1024, %s998_s29, [#allocation25], %s8723_s18, %s8723_s18, %s8722_s10  }
  0xfb   : > { %s7864_s12 = scalar_select %p121_p0, %s7466_s2, %s123_s13  }
  0xfc   : > { %p8726_p5 = scmp.eq.s32.totalorder %s7728_s11, 0  ;;  %p7872_p8 = por %p795_p2, %p130_p6 }
  0xfd   : > { %p801_p9 = scmp.eq.s32.totalorder %s5859_s26, 3  ;;  %p6786_p10 = scmp.lt.s32.totalorder %s7470_s0, 4 }
  0xfe   : > { %p7868_p7 = por %p8726_p5, %p136_p3  ;;  %s7878_s22 = sand.u32 1, %s7466_s2  }
  0xff   : > { %s8728_s29 = scalar_select %p7872_p8, 1, 0 }
 0x100   : > { %s8727_s16 = scalar_select %p7868_p7, 1, 0 }
 0x101   : > { %p7880_p11 = por %p801_p9, %p136_p3  ;;  %s5875_s18 = sshll.u32 %s7470_s0, 4 }
 0x102   : > { %s7886_s13 = scalar_lea.hbm %s8707_s9, %s5875_s18  ;;  %s1042_s23 = scalar_lea.vmem [#allocation3], %s7878_s22 }
 0x103   : > { %s8729_s10 = scalar_select %p7880_p11, 1, 0 }
 0x104   : > { %s1049_s3 = sshll.u32 %s1042_s23, 4  ;;  %p7891_p12 = pnand %p6786_p10, %p132_p4  ;;  %s7889_s3 = int_to_ptr.vmem [resolvable:$true] %s1049_s3 }
 0x105   : > { %s7897_s6 = scalar_lea.hbm %s8725_s21, %s5875_s18  ;;  %s1040_s8 = scalar_lea.sflag [#allocation4], %s7878_s22 }
 0x106   : > { %s7318_s14 = scalar_lea.hbm %s7886_s13, 16  ;;  %p7320_p6 = pneg %p7891_p12 }
 0x107   : > { %p7319_p13 = scmp.ne.s32.totalorder %s7886_s13, %s7318_s14  ;;  %s7323_s23 = scalar_lea.hbm %s8707_s9, 64 }
 0x108   : > { %p7324_p3 = scmp.lt.s32.totalorder %s7886_s13, %s8707_s9  ;;  %p7325_p2 = scmp.lt.s32.totalorder %s7323_s23, %s7318_s14 }
 0x109   : > { %p7321_p0 = pnand %p7320_p6, %p7319_p13 }
 0x10a   : > { %p7326_p4 = por %p7325_p2, %p7324_p3 }
 0x10b   : > { %p7322_p1 = pneg %p7321_p0 }
 0x10d   : > { %p7327_p5 = pnand %p7326_p4, %p7322_p1 }
 0x10f   : > { %7330 = shalt.err (!%p7327_p5)
}
 0x110   : > { %s7331_s18 = scalar_lea.vmem %s7889_s3, 16  ;;  %s7523_s4 = smov [#allocation3]  }
 0x111   : > { %p7332_p9 = scmp.ne.s32.totalorder %s7889_s3, %s7331_s18  ;;  %s7336_s19 = sshll.u32 %s7523_s4, 4  ;;  %s7337_s19 = int_to_ptr.vmem [resolvable:$false] %s7336_s19 }
 0x112   : > { %s7338_s20 = scalar_lea.vmem %s7337_s19, 32  ;;  %p7339_p13 = scmp.lt.s32.totalorder %s7889_s3, %s7337_s19 }
 0x113   : > { %p7334_p10 = pnand %p7332_p9, %p7320_p6  ;;  %p7340_p0 = scmp.lt.s32.totalorder %s7338_s20, %s7331_s18 }
 0x115   : > { %p7335_p11 = pneg %p7334_p10  ;;  %p7341_p8 = por %p7340_p0, %p7339_p13 }
 0x117   : > { %p7342_p3 = pnand %p7341_p8, %p7335_p11 }
 0x119   : > { %7345 = shalt.err (!%p7342_p3)
}
 0x11a   : > { %6765 = dma.hbm_to_vmem [thread:$0]  (!%p7891_p12), %s7886_s13, 16, %s7889_s3, %s1040_s8  }
 0x11b   : > { %s1059_s14 = scalar_lea.vmem [#allocation6], %s7878_s22  ;;  %s8731_s19 = sand.u32 1, %s7470_s0  }
 0x11c   : > { %s1066_s4 = sshll.u32 %s1059_s14, 4  ;;  %s1057_s20 = scalar_lea.sflag [#allocation7], %s8731_s19  ;;  %s1067_s4 = int_to_ptr.vmem [resolvable:$true] %s1066_s4 }
 0x11d   : > { %s7346_s23 = scalar_lea.hbm %s7897_s6, 16  ;;  %s7351_s18 = scalar_lea.hbm %s8725_s21, 64 }
 0x11e   : > { %p7347_p8 = scmp.ne.s32.totalorder %s7897_s6, %s7346_s23  ;;  %p7352_p2 = scmp.lt.s32.totalorder %s7897_s6, %s8725_s21 }
 0x11f   : > { %p7353_p4 = scmp.lt.s32.totalorder %s7351_s18, %s7346_s23 }
 0x120   : > { %p7349_p11 = pnand %p7347_p8, %p7320_p6 }
 0x121   : > { %p7354_p5 = por %p7353_p4, %p7352_p2 }
 0x122   : > { %p7350_p1 = pneg %p7349_p11 }
 0x124   : > { %p7355_p9 = pnand %p7354_p5, %p7350_p1 }
 0x126   : > { %7358 = shalt.err (!%p7355_p9)
}
 0x127   : > { %s7359_s9 = scalar_lea.vmem %s1067_s4, 16  ;;  %s7524_s3 = smov [#allocation6]  }
 0x128   : > { %p7360_p10 = scmp.ne.s32.totalorder %s1067_s4, %s7359_s9  ;;  %s7364_s8 = sshll.u32 %s7524_s3, 4  ;;  %s7365_s8 = int_to_ptr.vmem [resolvable:$false] %s7364_s8 }
 0x129   : > { %s7366_s22 = scalar_lea.vmem %s7365_s8, 32  ;;  %p7367_p3 = scmp.lt.s32.totalorder %s1067_s4, %s7365_s8 }
 0x12a   : > { %p7362_p13 = pnand %p7360_p10, %p7320_p6  ;;  %p7368_p8 = scmp.lt.s32.totalorder %s7366_s22, %s7359_s9 }
 0x12c   : > { %p7363_p0 = pneg %p7362_p13  ;;  %p7369_p11 = por %p7368_p8, %p7367_p3 }
 0x12e   : > { %p7370_p7 = pnand %p7369_p11, %p7363_p0 }
 0x130   : > { %7373 = shalt.err (!%p7370_p7)
}
 0x131   : > { %6768 = dma.hbm_to_vmem [thread:$0]  (!%p7891_p12), %s7897_s6, 16, %s1067_s4, %s1057_s20  }
 0x132   : > { %p8732_p1 = scmp.ne.s32.totalorder %s8708_s15, 0 }
 0x133   : > { %s7940_s13 = sand.u32 (!%p8732_p1), 1, %s7462_s1   ;;  %p8733_p6 = scmp.ne.s32.totalorder (!%p8732_p1), %s8727_s16, 0 }
 0x134   : > { %1075 = sbr.rel (%p8732_p1) target bundleno = 11642 (0x2d7a), region = 148  ;;  %s1078_s14 = scalar_lea.sflag (!%p8732_p1), [#allocation4], %s7940_s13 }
 0x135   : > { %s1080_s19 = scalar_lea.vmem (!%p8732_p1), [#allocation3], %s7940_s13 }
 0x139   : > { %7417 = dma.done.wait (%p8733_p6), %s1078_s14, 16  }
 0x13a   : > { %7419 = vsyncadd (%p8733_p6), %s1078_s14, 4294967280  ;;  %s1085_s9 = sand.u32 1, %s7728_s11   ;;  %s1088_s15 = scalar_lea.vmem [#allocation6], %s7940_s13 }
 0x13b   : > { %s1086_s6 = scalar_lea.sflag [#allocation7], %s1085_s9 }
 0x13c   : > { %7421 = dma.done.wait (%p8733_p6), %s1086_s6, 16  }
 0x13d   : > { %7423 = vsyncadd (%p8733_p6), %s1086_s6, 4294967280  ;;  %p8734_p7 = scmp.eq.s32.totalorder %s7728_s11, 0 }
 0x13f   : > { %7425 = dma.done.wait (%p8734_p7), [#allocation7], 128   ;;  %p8735_p12 = pmov %p8734_p7 }
 0x140   : > { %p8736_p2 = pmov %p8734_p7 }
 0x141   : > { %7427 = vsyncadd (%p8735_p12), [#allocation7], 4294967168 }
 0x142   : > { %7429 = dma.done.wait (%p8736_p2), [#allocation10], 80   ;;  %p8737_p4 = pmov %p8736_p2 }
 0x143   : > { %p8738_p5 = pmov %p8736_p2 }
 0x144   : > { %7431 = vsyncadd (%p8737_p4), [#allocation10], 4294967216 }
 0x145   : > { %7433 = dma.done.wait (%p8738_p5), [#allocation13], 64   ;;  %p8739_p9 = pmov %p8736_p2 }
 0x146   : > { %p8740_p10 = pmov %p8736_p2 }
 0x147   : > { %7435 = vsyncadd (%p8739_p9), [#allocation13], 4294967232 }
 0x148   : > { %7437 = dma.done.wait (%p8740_p10), [#allocation16], 64   ;;  %p8741_p13 = pmov %p8736_p2 }
 0x149   : > { %p8742_p0 = pmov %p8736_p2 }
 0x14a   : > { %7439 = vsyncadd (%p8741_p13), [#allocation16], 4294967232 }
 0x14b   : > { %7441 = dma.done.wait (%p8742_p0), [#allocation19], 64   ;;  %p8743_p3 = pmov %p8742_p0 }
 0x14c   : > { %p8744_p8 = pmov %p8742_p0 }
 0x14d   : > { %7443 = vsyncadd (%p8743_p3), [#allocation19], 4294967232 }
 0x14e   : > { %7445 = dma.done.wait (%p8744_p8), [#allocation22], 48   ;;  %p8745_p11 = pmov %p8742_p0 }
 0x14f   : > { %p8746_p1 = pmov %p8742_p0 }
 0x150   : > { %7447 = vsyncadd (%p8745_p11), [#allocation22], 4294967248 }
 0x151   : > { %7449 = dma.done.wait (%p8746_p1), [#allocation25], 2048   ;;  %p8747_p6 = pmov %p8742_p0 }
 0x152   : > { %s8748_s16 = sld [smem:[#allocation38_spill]]  ;;  %p1227_p7 = scmp.lt.s32.totalorder %s7728_s11, 3  ;;  %v7525_v0 = vmov 0   ;;  %v7526_v1 = vmov 0.0   ;;  %vm7527_vm0 = vmmov 0   ;;  %v1232_v19 = vlaneseq  ;;  %v1256_v23 = vld [vmem:[#allocation8] sm:$0xff] }
 0x153   : > { %7451 = vsyncadd (%p8747_p6), [#allocation25], 4294965248  ;;  %s8749_s26 = sld [smem:[#allocation41_spill]]  ;;  %6895 = vset.pattern.permute.xlu0 %v7525_v0  ;;  %6247 = vmatprep.subr.mxu0 %v7526_v1  ;;  %v7528_v22 = vmov 1.0   ;;  %vm1329_vm2 = vcmask 523264   ;;  %s7529_s8 = smov 64  }
 0x154   : > { %s1228_s4 = scalar_select %p1227_p7, %s7728_s11, 3  ;;  %1454 = vmatprep.mubr.f32.mxu1 %v7526_v1  ;;  %6279 = vmatprep.mubr.msk.f32.mxu0 %vm7527_vm0, %v7526_v1  ;;  %v1233_v20 = vand.u32 127, %v1232_v19  ;;  %v5895_v55 = vld [vmem:[#allocation9] ss:$0 sm:$0xff]  ;;  %v1378_v58 = vshrl.u32 %v1232_v19, 7  ;;  %vm1472_vm3 = vcmask 130048  }
 0x155   : > { %s8750_s18 = sld [smem:[#allocation45_spill]]  ;;  %v1375_v60 = vld [vmem:[#allocation11] sm:$0x3]  ;;  %vm1555_vm4 = vcmask 64512   ;;  %s7530_s22 = smov 112   ;;  %vm4038_vm5 = vcmask 516096  }
 0x156   : > { %s5891_s20 = sshll.u32 %s1228_s4, 3  ;;  %s8751_s3 = sld [smem:[#allocation43_spill]]  ;;  %v8051_v59 = vsub.s32 0, %v1378_v58  ;;  %v8058_v0 = vsub.s32 1, %v1378_v58  ;;  %vm4292_vm6 = vcmask 1040384   ;;  %vm4266_vm7 = vcmask 65536  }
 0x157   : > { %s7531_s14 = smov 48   ;;  %s7532_s9 = smov 96   ;;  %vm4262_vm8 = vcmask 72704  }
 0x158   : > { %s1230_s23 = scalar_lea.vmem %s8748_s16, %s5891_s20  ;;  %v1380_v61 = vrot.slane %v1375_v60, %v8051_v59  ;;  %s7533_s6 = smov 32  }
 0x159   : > { %v1231_v2 = vld [vmem:[%s1230_s23] sm:$0xff]  ;;  %v1255_v3 = vld [vmem:[%s8749_s26 + $0x78] sm:$0xff]  ;;  %v1254_v4 = vld [vmem:[%s8749_s26 + $0x70] sm:$0xff]  ;;  %s8675_s16 = smov 80   ;;  %s7535_s4 = smov 16  }
 0x15a   : > { %1235 = vperm.xlu0 %6895, %v1231_v2   ;;  %6248 = vmatpush3.msra.mxu0 %v1255_v3  ;;  %v1253_v5 = vld [vmem:[%s8749_s26 + $0x68] sm:$0xff]  ;;  %v1252_v6 = vld [vmem:[%s8749_s26 + $0x60] sm:$0xff]  ;;  %v1251_v7 = vld [vmem:[%s8749_s26 + $0x58] sm:$0xff]  ;;  %v1384_v2 = vrot.slane %v1375_v60, %v8058_v0  ;;  %s8753_s20 = sld [smem:[#allocation49_spill]]  ;;  %p8765_p2 = scmp.ne.s32.totalorder %s8728_s29, 0 }
 0x15b   : > { %6249 = vmatprep.subr.mxu0 %v7526_v1  ;;  %v1250_v8 = vld [vmem:[%s8749_s26 + $0x50] sm:$0xff]  ;;  %v1249_v9 = vld [vmem:[%s8749_s26 + $0x48] sm:$0xff]  ;;  %v1248_v10 = vld [vmem:[%s8749_s26 + $0x40] sm:$0xff]  ;;  %s8754_s23 = sld [smem:[#allocation50_spill]] }
 0x15c   : > { %6250 = vmatpush3.msra.mxu0 %v1254_v4  ;;  %v1247_v11 = vld [vmem:[%s8749_s26 + $0x38] sm:$0xff]  ;;  %v1246_v12 = vld [vmem:[%s8749_s26 + $0x30] sm:$0xff]  ;;  %v1245_v13 = vld [vmem:[%s8749_s26 + $0x28] sm:$0xff]  ;;  %s8763_s5 = sld [smem:[#allocation64_spill]] }
 0x15d   : > { %6251 = vmatprep.subr.mxu0 %v7526_v1  ;;  %v1244_v14 = vld [vmem:[%s8749_s26 + $0x20] sm:$0xff]  ;;  %v1243_v15 = vld [vmem:[%s8749_s26 + $0x18] sm:$0xff]  ;;  %v1242_v16 = vld [vmem:[%s8749_s26 + $0x10] sm:$0xff] }
 0x15e   : > { %6252 = vmatpush3.msra.mxu0 %v1253_v5  ;;  %v1241_v17 = vld [vmem:[%s8749_s26 + $0x8] sm:$0xff]  ;;  %v1240_v18 = vld [vmem:[%s8749_s26] sm:$0xff]  ;;  %v1374_v33 = vld [vmem:[%s8750_s18 + $0x78] sm:$0xff] }
 0x15f   : > { %6253 = vmatprep.subr.mxu0 %v7526_v1  ;;  %v1373_v34 = vld [vmem:[%s8750_s18 + $0x70] sm:$0xff]  ;;  %v1372_v35 = vld [vmem:[%s8750_s18 + $0x68] sm:$0xff]  ;;  %1406 = vmatprep.subr.mxu1 %v1374_v33  ;;  %v1371_v36 = vld [vmem:[%s8750_s18 + $0x60] sm:$0xff] }
 0x160   : > { %6254 = vmatpush3.msra.mxu0 %v1252_v6  ;;  %1407 = vmatpush1.msra.mxu1 %v1373_v34  ;;  %v1370_v37 = vld [vmem:[%s8750_s18 + $0x58] sm:$0xff]  ;;  %v1369_v38 = vld [vmem:[%s8750_s18 + $0x50] sm:$0xff]  ;;  %v1368_v39 = vld [vmem:[%s8750_s18 + $0x48] sm:$0xff] }
 0x161   : > { %6255 = vmatprep.subr.mxu0 %v7526_v1  ;;  %1408 = vmatprep.subr.mxu1 %v1372_v35  ;;  %v1367_v40 = vld [vmem:[%s8750_s18 + $0x40] sm:$0xff]  ;;  %v1366_v41 = vld [vmem:[%s8750_s18 + $0x38] sm:$0xff]  ;;  %v1365_v42 = vld [vmem:[%s8750_s18 + $0x30] sm:$0xff] }
 0x162   : > { %6256 = vmatpush3.msra.mxu0 %v1251_v7  ;;  %1409 = vmatpush1.msra.mxu1 %v1371_v36  ;;  %v1364_v43 = vld [vmem:[%s8750_s18 + $0x28] sm:$0xff]  ;;  %v1363_v44 = vld [vmem:[%s8750_s18 + $0x20] sm:$0xff]  ;;  %v1362_v45 = vld [vmem:[%s8750_s18 + $0x18] sm:$0xff] }
 0x163   : > { %6257 = vmatprep.subr.mxu0 %v7526_v1  ;;  %1410 = vmatprep.subr.mxu1 %v1370_v37  ;;  %v1361_v46 = vld [vmem:[%s8750_s18 + $0x10] sm:$0xff]  ;;  %v1360_v47 = vld [vmem:[%s8750_s18 + $0x8] sm:$0xff]  ;;  %v1359_v48 = vld [vmem:[%s8750_s18] sm:$0xff] }
 0x164   : > { %6258 = vmatpush3.msra.mxu0 %v1250_v8  ;;  %1411 = vmatpush1.msra.mxu1 %v1369_v38  ;;  %v5894_v53 = vld [vmem:[%s8751_s3] ss:$0 sm:$0xff]  ;;  %s8755_s3 = sld [smem:[#allocation55_spill]] }
 0x165   : > { %6259 = vmatprep.subr.mxu0 %v7526_v1  ;;  %1412 = vmatprep.subr.mxu1 %v1368_v39  ;;  %v8073_v7 = vld [vmem:[%s1080_s19] ss:$0 sm:$0xff]  ;;  %s8752_s19 = sld [smem:[#allocation47_spill]] }
 0x166   : > { %6260 = vmatpush3.msra.mxu0 %v1249_v9  ;;  %1413 = vmatpush1.msra.mxu1 %v1367_v40 }
 0x167   : > { %6261 = vmatprep.subr.mxu0 %v7526_v1  ;;  %1414 = vmatprep.subr.mxu1 %v1366_v41 }
 0x168   : > { %6262 = vmatpush3.msra.mxu0 %v1248_v10  ;;  %1415 = vmatpush1.msra.mxu1 %v1365_v42 }
 0x169   : > { %6263 = vmatprep.subr.mxu0 %v7526_v1  ;;  %1416 = vmatprep.subr.mxu1 %v1364_v43 }
 0x16a   : > { %6264 = vmatpush3.msra.mxu0 %v1247_v11  ;;  %1417 = vmatpush1.msra.mxu1 %v1363_v44 }
 0x16b   : > { %6265 = vmatprep.subr.mxu0 %v7526_v1  ;;  %1418 = vmatprep.subr.mxu1 %v1362_v45  ;;  %v1464_v35 = vld [vmem:[%s8752_s19 + $0x18] sm:$0xff]  ;;  %v1463_v36 = vld [vmem:[%s8752_s19 + $0x10] sm:$0xff]  ;;  %v1462_v40 = vld [vmem:[%s8752_s19 + $0x8] sm:$0xff] }
 0x16c   : > { %6266 = vmatpush3.msra.mxu0 %v1246_v12  ;;  %1419 = vmatpush1.msra.mxu1 %v1361_v46  ;;  %v1461_v41 = vld [vmem:[%s8752_s19] sm:$0xff] }
 0x16d   : > { %6267 = vmatprep.subr.mxu0 %v7526_v1  ;;  %1420 = vmatprep.subr.mxu1 %v1360_v47 }
 0x16e   : > { %6268 = vmatpush3.msra.mxu0 %v1245_v13  ;;  %1421 = vmatpush1.msra.mxu1 %v1359_v48 }
 0x16f   : > { %6269 = vmatprep.subr.mxu0 %v7526_v1  ;;  %6282 = vmatprep.subr.mxu1 %v7526_v1 }
 0x170   : > { %6270 = vmatpush3.msra.mxu0 %v1244_v14 }
 0x171   : > { %6271 = vmatprep.subr.mxu0 %v7526_v1 }
 0x172   : > { %6272 = vmatpush3.msra.mxu0 %v1243_v15 }
 0x173   : > { %6273 = vmatprep.subr.mxu0 %v7526_v1 }
 0x174   : > { %6274 = vmatpush3.msra.mxu0 %v1242_v16 }
 0x175   : > { %6275 = vmatprep.subr.mxu0 %v7526_v1 }
 0x176   : > { %6276 = vmatpush3.msra.mxu0 %v1241_v17 }
 0x177   : > { %6277 = vmatprep.subr.mxu0 %v7526_v1 }
 0x178   : > { %6278 = vmatpush3.msra.mxu0 %v1240_v18 }
 0x179   : > { %6302 = vmatprep.subr.mxu0 %v7526_v1 }
 0x1d5   : > { %v1236_v21 = vpop.permute.xlu0 %1235 }
 0x1d6   : > { %vm1237_vm1 = vcmp.eq.s32.totalorder %v1233_v20, %v1236_v21 }
 0x1d7   : > { %6280 = vmatmul.mubr.msk.f32.vlgmr.msra.gmra.mxu0 %vm1237_vm1, %v7528_v22 }
 0x1d8   : > { %6306 = vmatprep.mubr.msk.f32.mxu0 %vm7527_vm0, %v7526_v1  ;;  %6303 = vmatpush3.msra.mxu0 %v1464_v35 }
 0x1d9   : > { %6304 = vmatprep.subr.mxu0 %v7526_v1 }
 0x1da   : > { %6305 = vmatpush3.msra.mxu0 %v1463_v36 }
 0x1db   : > { %6316 = vmatprep.subr.mxu0 %v7526_v1 }
 0x297   : > { %v1323_v24 = vpop.f32.mrf.mxu0 }
 0x298   : > { %v1324_v25 = vadd.f32 %v1323_v24, %v1256_v23 }
 0x299   : > { %v6281_v26 = vpop.f32.mrf.mxu0 }
 0x29a   : > { %v1330_v27 = vsel %vm1329_vm2, %v1324_v25, 0.0 }
 0x29b   : > { %1331 = vadd.xlane.f32.xlu0 %v1330_v27 }
 0x324   : > { %v1332_v28 = vpop.xlane.xlu0 %1331 }
 0x325   : > { %v1334_v29 = vmul.f32 0.015625, %v1332_v28 }
 0x327   : > { %v1335_v30 = vsub.f32 %v1324_v25, %v1334_v29 }
 0x329   : > { %v1336_v31 = vmul.f32 %v1335_v30, %v1335_v30 }
 0x32b   : > { %v1337_v32 = vsel %vm1329_vm2, %v1336_v31, 0.0 }
 0x32c   : > { %1338 = vadd.xlane.f32.xlu1 %v1337_v32 }
 0x3b5   : > { %v1339_v49 = vpop.xlane.xlu1 %1338 }
 0x3b6   : > { %v1340_v50 = vmul.f32 0.015625, %v1339_v49 }
 0x3b8   : > { %v1341_v51 = vadd.f32 1e-05, %v1340_v50 }
 0x3ba   : > { %6896 = vrsqrt.f32 %v1341_v51 }
 0x3c7   : > { %v6897_v52 = vpop.eup %6896 }
 0x3c8   : > { %v1343_v54 = vmul.f32 %v6897_v52, %v1335_v30 }
 0x3ca   : > { %v1350_v56 = vmul.f32 %v5894_v53, %v1343_v54 }
 0x3cc   : > { %v8044_v57 = vadd.f32 %v5895_v55, %v1350_v56 }
 0x3ce   : > { %5896 = vmatmul.mubr.msk.f32.vlgmr.msra.gmra.mxu1 %vm1329_vm2, %v8044_v57 }
 0x3cf   : > { %6284 = vmatprep.mubr.msk.f32.mxu1 %vm7527_vm0, %v7526_v1 }
 0x48e   : > { %v1456_v62 = vpop.f32.mrf.mxu1 }
 0x48f   : > { %v8054_v63 = vadd.f32 %v1456_v62, %v1380_v61 }
 0x490   : > { %v1458_v3 = vpop.f32.mrf.mxu1 }
 0x491   : > { %1470 = vrot.lane.b32.xlu1 %v8054_v63, %s7529_s8  ;;  %v8063_v5 = vadd.f32 %v1458_v3, %v1384_v2  ;;  %v1466_v2 = vld [vmem:[%s8752_s19 + $0x28] sm:$0xff] }
 0x503   : > { %v1471_v4 = vpop.permute.xlu1 %1470 }
 0x504   : > { %6283 = vmatpush3.xpose.msk.msra.mxu1 %vm1472_vm3, %v1471_v4 }
 0x505   : > { %6287 = vmatprep.subr.mxu1 %v7526_v1 }
 0x507   : > { %6285 = vmatmul.mubr.msk.f32.vlgmr.msra.gmra.mxu1 %vm1472_vm3, %v8054_v63 }
 0x508   : > { %6288 = vmatpush3.msra.mxu1 %v8063_v5  ;;  %6289 = vmatprep.mubr.msk.f32.mxu1 %vm7527_vm0, %v7526_v1 }
 0x509   : > { %6292 = vmatprep.subr.mxu1 %v7526_v1 }
 0x5c7   : > { %v1543_v6 = vpop.f32.mrf.mxu1 }
 0x5c8   : > { %v1547_v8 = vmul.f32 0.25, %v1543_v6 }
 0x5c9   : > { %v6286_v9 = vpop.f32.mrf.mxu1 }
 0x5ca   : > { %v1554_v10 = vadd.f32 %v8073_v7, %v1547_v8  ;;  %v1465_v9 = vld [vmem:[%s8752_s19 + $0x20] sm:$0xff] }
 0x5cc   : > { %v1556_v11 = vsel %vm1555_vm4, %v1554_v10, -inf }
 0x5cd   : > { %1557 = vmax.xlane.f32.xlu1 %v1556_v11 }
 0x5de   : > { %1640 = vrot.lane.b32.xlu1 %v8054_v63, %s7530_s22 }
 0x656   : > { %v1558_v12 = vpop.xlane.xlu1 %1557 }
 0x657   : > { %v1559_v13 = vsub.f32 %v1554_v10, %v1558_v12 }
 0x659   : > { %v1560_v14 = vmul.f32 1.442695, %v1559_v13 }
 0x65a   : > { %v1641_v21 = vpop.permute.xlu1 %1640 }
 0x65b   : > { %6898 = vpow2.f32 %v1560_v14 }
 0x668   : > { %v6899_v15 = vpop.eup %6898 }
 0x669   : > { %v1562_v16 = vsel %vm1555_vm4, %v6899_v15, 0.0 }
 0x66a   : > { %1563 = vadd.xlane.f32.xlu0 %v1562_v16 }
 0x680   : > { %1642 = vrot.lane.b32.xlu0 %v8054_v63, %s7531_s14 }
 0x6f3   : > { %v1564_v17 = vpop.xlane.xlu0 %1563 }
 0x6f4   : > { %6900 = vrcp.f32 %v1564_v17 }
 0x6f7   : > { %v1643_v20 = vpop.permute.xlu0 %1642 }
 0x701   : > { %v6901_v18 = vpop.eup %6900 }
 0x702   : > { %v1566_v19 = vmul.f32 %v6901_v18, %v6899_v15 }
 0x704   : > { %6290 = vmatmul.mubr.msk.f32.vlgmr.msra.gmra.mxu1 %vm1555_vm4, %v1566_v19 }
 0x705   : > { %6293 = vmatpush3.xpose.msk.msra.mxu1 %vm1472_vm3, %v1643_v20  ;;  %6294 = vmatprep.mubr.msk.f32.mxu1 %vm7527_vm0, %v7526_v1 }
 0x706   : > { %6297 = vmatprep.subr.mxu1 %v7526_v1 }
 0x708   : > { %6295 = vmatmul.mubr.msk.f32.vlgmr.msra.gmra.mxu1 %vm1472_vm3, %v1641_v21 }
 0x709   : > { %6299 = vmatprep.mubr.msk.f32.mxu1 %vm7527_vm0, %v7526_v1 }
 0x7c4   : > { %v1636_v22 = vpop.f32.mrf.mxu1 }
 0x7c6   : > { %v6291_v23 = vpop.f32.mrf.mxu1 }
 0x7c8   : > { %v1714_v24 = vpop.f32.mrf.mxu1 }
 0x7c9   : > { %v1718_v25 = vmul.f32 0.25, %v1714_v24 }
 0x7ca   : > { %v6296_v26 = vpop.f32.mrf.mxu1 }
 0x7cb   : > { %v1719_v27 = vadd.f32 %v8073_v7, %v1718_v25  ;;  %v1468_v25 = vld [vmem:[%s8752_s19 + $0x38] sm:$0xff] }
 0x7cd   : > { %v1720_v28 = vsel %vm1555_vm4, %v1719_v27, -inf }
 0x7ce   : > { %1721 = vmax.xlane.f32.xlu0 %v1720_v28 }
 0x7e4   : > { %1732 = vrot.lane.b32.xlu0 %v8063_v5, %s7530_s22 }
 0x7e8   : > { %1954 = vrot.lane.b32.xlu0 %v8054_v63, %s7532_s9 }
 0x857   : > { %v1722_v29 = vpop.xlane.xlu0 %1721 }
 0x858   : > { %v1723_v30 = vsub.f32 %v1719_v27, %v1722_v29 }
 0x85a   : > { %v1724_v31 = vmul.f32 1.442695, %v1723_v30  ;;  %v1467_v30 = vld [vmem:[%s8752_s19 + $0x30] sm:$0xff] }
 0x85b   : > { %v1733_v32 = vpop.permute.xlu0 %1732 }
 0x85c   : > { %6902 = vpow2.f32 %v1724_v31  ;;  %6298 = vmatpush3.msra.mxu1 %v1733_v32 }
 0x85d   : > { %6309 = vmatprep.subr.mxu1 %v7526_v1 }
 0x85f   : > { %v1955_v45 = vpop.permute.xlu0 %1954 }
 0x869   : > { %v6903_v33 = vpop.eup %6902 }
 0x86a   : > { %v1726_v34 = vsel %vm1555_vm4, %v6903_v33, 0.0 }
 0x86b   : > { %1727 = vadd.xlane.f32.xlu1 %v1726_v34  ;;  %v5914_v34 = vld [vmem:[#allocation12] ss:$0 sm:$0xff] }
 0x87c   : > { %1956 = vrot.lane.b32.xlu1 %v8054_v63, %s7533_s6 }
 0x8f4   : > { %v1728_v37 = vpop.xlane.xlu1 %1727 }
 0x8f5   : > { %6904 = vrcp.f32 %v1728_v37 }
 0x8f8   : > { %v1957_v43 = vpop.permute.xlu1 %1956 }
 0x902   : > { %v6905_v38 = vpop.eup %6904 }
 0x903   : > { %v1730_v39 = vmul.f32 %v6905_v38, %v6903_v33 }
 0x905   : > { %6300 = vmatmul.mubr.msk.f32.vlgmr.msra.gmra.mxu1 %vm1555_vm4, %v1730_v39 }
 0x906   : > { %6310 = vmatpush3.msra.mxu1 %v1462_v40  ;;  %6313 = vmatprep.mubr.msk.f32.mxu1 %vm7527_vm0, %v7526_v1 }
 0x907   : > { %6311 = vmatprep.subr.mxu1 %v7526_v1 }
 0x908   : > { %6312 = vmatpush3.msra.mxu1 %v1461_v41 }
 0x909   : > { %6314 = vmatmul.mubr.msk.f32.vlgmr.msra.gmra.mxu1 %vm1472_vm3, %v1636_v22  ;;  %6321 = vmatprep.subr.mxu1 %v7526_v1 }
 0x90a   : > { %6323 = vmatprep.mubr.msk.f32.mxu1 %vm7527_vm0, %v7526_v1 }
 0x9c5   : > { %v1804_v42 = vpop.f32.mrf.mxu1 }
 0x9c6   : > { %6307 = vmatmul.mubr.msk.f32.vlgmr.msra.gmra.mxu0 %vm1472_vm3, %v1804_v42 }
 0x9c7   : > { %6317 = vmatpush3.xpose.msk.msra.mxu0 %vm1472_vm3, %v1957_v43  ;;  %v6301_v44 = vpop.f32.mrf.mxu1  ;;  %6318 = vmatprep.mubr.msk.f32.mxu0 %vm7527_vm0, %v7526_v1 }
 0x9c8   : > { %6326 = vmatprep.subr.mxu0 %v7526_v1 }
 0x9c9   : > { %v8119_v46 = vpop.f32.mrf.mxu1 }
 0x9ca   : > { %6319 = vmatmul.mubr.msk.f32.vlgmr.msra.gmra.mxu0 %vm1472_vm3, %v1955_v45  ;;  %v2481_v45 = vld [vmem:[%s8753_s20 + $0x38] sm:$0xff] }
 0x9cb   : > { %v6315_v47 = vpop.f32.mrf.mxu1  ;;  %6330 = vmatprep.mubr.msk.f32.mxu0 %vm7527_vm0, %v7526_v1  ;;  %6327 = vmatpush3.msra.mxu0 %v1466_v2  ;;  %v2586_v2 = vld [vmem:[%s8754_s23 + $0x78] sm:$0xff] }
 0x9cc   : > { %6328 = vmatprep.subr.mxu0 %v7526_v1  ;;  %v2478_v47 = vld [vmem:[%s8753_s20 + $0x20] sm:$0xff] }
 0x9cd   : > { %6329 = vmatpush3.msra.mxu0 %v1465_v9  ;;  %v2580_v9 = vld [vmem:[%s8754_s23 + $0x48] sm:$0xff] }
 0x9ce   : > { %6338 = vmatprep.subr.mxu0 %v7526_v1 }
 0xa86   : > { %v1877_v48 = vpop.f32.mrf.mxu0 }
 0xa87   : > { %v1951_v23 = vadd.f32 %v8119_v46, %v1877_v48  ;;  %v2480_v46 = vld [vmem:[%s8753_s20 + $0x30] sm:$0xff]  ;;  %v2477_v48 = vld [vmem:[%s8753_s20 + $0x18] sm:$0xff] }
 0xa88   : > { %v6308_v49 = vpop.f32.mrf.mxu0 }
 0xa89   : > { %v2476_v49 = vld [vmem:[%s8753_s20 + $0x10] sm:$0xff] }
 0xa8a   : > { %v2028_v50 = vpop.f32.mrf.mxu0 }
 0xa8b   : > { %v2032_v51 = vmul.f32 0.25, %v2028_v50  ;;  %v2475_v50 = vld [vmem:[%s8753_s20 + $0x8] sm:$0xff] }
 0xa8c   : > { %v6320_v52 = vpop.f32.mrf.mxu0 }
 0xa8d   : > { %v2033_v53 = vadd.f32 %v8073_v7, %v2032_v51  ;;  %v2474_v51 = vld [vmem:[%s8753_s20] sm:$0xff] }
 0xa8f   : > { %v2034_v54 = vsel %vm1555_vm4, %v2033_v53, -inf }
 0xa90   : > { %2035 = vmax.xlane.f32.xlu0 %v2034_v54 }
 0xaa6   : > { %2045 = vrot.lane.b32.xlu0 %v8063_v5, %s7532_s9 }
 0xaaa   : > { %2195 = vrot.lane.b32.xlu0 %v8054_v63, %s8675_s16 }
 0xb19   : > { %v2036_v55 = vpop.xlane.xlu0 %2035 }
 0xb1a   : > { %v2037_v56 = vsub.f32 %v2033_v53, %v2036_v55 }
 0xb1c   : > { %v2038_v58 = vmul.f32 1.442695, %v2037_v56  ;;  %v5915_v56 = vld [vmem:[#allocation17] ss:$0 sm:$0xff] }
 0xb1d   : > { %v2046_v60 = vpop.permute.xlu0 %2045 }
 0xb1e   : > { %6906 = vpow2.f32 %v2038_v58  ;;  %6322 = vmatpush3.msra.mxu1 %v2046_v60  ;;  %v5916_v60 = vld [vmem:[#allocation18] ss:$0 sm:$0xff] }
 0xb1f   : > { %6333 = vmatprep.subr.mxu1 %v7526_v1 }
 0xb2b   : > { %v6907_v61 = vpop.eup %6906 }
 0xb2c   : > { %v2040_v62 = vsel %vm1555_vm4, %v6907_v61, 0.0 }
 0xb2d   : > { %2041 = vadd.xlane.f32.xlu1 %v2040_v62 }
 0xb3e   : > { %2197 = vrot.lane.b32.xlu1 %v8054_v63, %s7535_s4  ;;  %v2196_v63 = vpop.permute.xlu0 %2195 }
 0xbb6   : > { %v2042_v3 = vpop.xlane.xlu1 %2041 }
 0xbb7   : > { %6908 = vrcp.f32 %v2042_v3  ;;  %v2585_v3 = vld [vmem:[%s8754_s23 + $0x70] sm:$0xff] }
 0xbba   : > { %v2198_v8 = vpop.permute.xlu1 %2197 }
 0xbc4   : > { %v6909_v4 = vpop.eup %6908 }
 0xbc5   : > { %v2044_v6 = vmul.f32 %v6909_v4, %v6907_v61  ;;  %v2584_v4 = vld [vmem:[%s8754_s23 + $0x68] sm:$0xff] }
 0xbc7   : > { %6324 = vmatmul.mubr.msk.f32.vlgmr.msra.gmra.mxu1 %vm1555_vm4, %v2044_v6  ;;  %v2583_v6 = vld [vmem:[%s8754_s23 + $0x60] sm:$0xff] }
 0xbc8   : > { %6334 = vmatpush3.xpose.msk.msra.mxu1 %vm1472_vm3, %v2198_v8  ;;  %6335 = vmatprep.mubr.msk.f32.mxu1 %vm7527_vm0, %v7526_v1  ;;  %v2582_v8 = vld [vmem:[%s8754_s23 + $0x58] sm:$0xff] }
 0xbc9   : > { %6343 = vmatprep.subr.mxu1 %v7526_v1 }
 0xbcb   : > { %6336 = vmatmul.mubr.msk.f32.vlgmr.msra.gmra.mxu1 %vm1472_vm3, %v2196_v63  ;;  %v2581_v63 = vld [vmem:[%s8754_s23 + $0x50] sm:$0xff] }
 0xbcc   : > { %6347 = vmatprep.mubr.msk.f32.mxu1 %vm7527_vm0, %v7526_v1  ;;  %6344 = vmatpush3.msra.mxu1 %v1468_v25 }
 0xbcd   : > { %6345 = vmatprep.subr.mxu1 %v7526_v1 }
 0xbce   : > { %6346 = vmatpush3.msra.mxu1 %v1467_v30 }
 0xbcf   : > { %6369 = vmatprep.subr.mxu1 %v7526_v1 }
 0xc87   : > { %v2117_v10 = vpop.f32.mrf.mxu1 }
 0xc88   : > { %6331 = vmatmul.mubr.msk.f32.vlgmr.msra.gmra.mxu0 %vm1472_vm3, %v2117_v10  ;;  %v2579_v10 = vld [vmem:[%s8754_s23 + $0x40] sm:$0xff] }
 0xc89   : > { %v6325_v11 = vpop.f32.mrf.mxu1  ;;  %6340 = vmatprep.mubr.msk.f32.mxu0 %vm7527_vm0, %v7526_v1 }
 0xc8a   : > { %v2578_v11 = vld [vmem:[%s8754_s23 + $0x38] sm:$0xff] }
 0xc8b   : > { %v2269_v12 = vpop.f32.mrf.mxu1 }
 0xc8c   : > { %v2273_v13 = vmul.f32 0.25, %v2269_v12  ;;  %v2577_v12 = vld [vmem:[%s8754_s23 + $0x30] sm:$0xff] }
 0xc8d   : > { %v6337_v14 = vpop.f32.mrf.mxu1 }
 0xc8e   : > { %v2274_v15 = vadd.f32 %v8073_v7, %v2273_v13  ;;  %v2576_v13 = vld [vmem:[%s8754_s23 + $0x28] sm:$0xff]  ;;  %v2575_v14 = vld [vmem:[%s8754_s23 + $0x20] sm:$0xff] }
 0xc90   : > { %v2275_v16 = vsel %vm1555_vm4, %v2274_v15, -inf }
 0xc91   : > { %2276 = vmax.xlane.f32.xlu0 %v2275_v16  ;;  %v2573_v16 = vld [vmem:[%s8754_s23 + $0x10] sm:$0xff] }
 0xca7   : > { %2286 = vrot.lane.b32.xlu0 %v8063_v5, %s8675_s16 }
 0xd1a   : > { %v2277_v17 = vpop.xlane.xlu0 %2276 }
 0xd1b   : > { %v2278_v18 = vsub.f32 %v2274_v15, %v2277_v17  ;;  %v2574_v15 = vld [vmem:[%s8754_s23 + $0x18] sm:$0xff]  ;;  %v2572_v17 = vld [vmem:[%s8754_s23 + $0x8] sm:$0xff] }
 0xd1d   : > { %v2279_v19 = vmul.f32 1.442695, %v2278_v18  ;;  %v2571_v18 = vld [vmem:[%s8754_s23] sm:$0xff] }
 0xd1e   : > { %v2287_v20 = vpop.permute.xlu0 %2286 }
 0xd1f   : > { %6910 = vpow2.f32 %v2279_v19  ;;  %6339 = vmatpush3.msra.mxu0 %v2287_v20  ;;  %v5917_v19 = vld [vmem:[#allocation14] ss:$0 sm:$0xff] }
 0xd20   : > { %6350 = vmatprep.subr.mxu0 %v7526_v1 }
 0xd2c   : > { %v6911_v21 = vpop.eup %6910 }
 0xd2d   : > { %v2281_v22 = vsel %vm1555_vm4, %v6911_v21, 0.0 }
 0xd2e   : > { %2282 = vadd.xlane.f32.xlu1 %v2281_v22 }
 0xd48   : > { %v2190_v24 = vpop.f32.mrf.mxu0 }
 0xd49   : > { %v2194_v26 = vadd.f32 %v2190_v24, %v1951_v23 }
 0xd4a   : > { %v6332_v5 = vpop.f32.mrf.mxu0 }
 0xdb7   : > { %v2283_v27 = vpop.xlane.xlu1 %2282 }
 0xdb8   : > { %6912 = vrcp.f32 %v2283_v27 }
 0xdc5   : > { %v6913_v28 = vpop.eup %6912 }
 0xdc6   : > { %v2285_v29 = vmul.f32 %v6913_v28, %v6911_v21 }
 0xdc8   : > { %6341 = vmatmul.mubr.msk.f32.vlgmr.msra.gmra.mxu0 %vm1555_vm4, %v2285_v29 }
 0xdc9   : > { %6366 = vmatprep.mubr.msk.f32.mxu0 %vm7527_vm0, %v7526_v1  ;;  %6351 = vmatpush3.msra.mxu0 %v2481_v45  ;;  %v5934_v45 = vld [vmem:[%s8750_s18 + $0xe0] sm:$0xff] }
 0xdca   : > { %6352 = vmatprep.subr.mxu0 %v7526_v1 }
 0xdcb   : > { %6353 = vmatpush3.msra.mxu0 %v2480_v46  ;;  %v5933_v46 = vld [vmem:[%s8750_s18 + $0xd8] sm:$0xff] }
 0xdcc   : > { %6354 = vmatprep.subr.mxu0 %v7526_v1 }
 0xe88   : > { %v2358_v31 = vpop.f32.mrf.mxu0 }
 0xe89   : > { %6348 = vmatmul.mubr.msk.f32.vlgmr.msra.gmra.mxu1 %vm1472_vm3, %v2358_v31  ;;  %v5919_v31 = vld [vmem:[#allocation15] ss:$0 sm:$0xff] }
 0xe8a   : > { %v6342_v32 = vpop.f32.mrf.mxu0  ;;  %6401 = vmatprep.mubr.msk.f32.mxu1 %vm7527_vm0, %v7526_v1  ;;  %6370 = vmatpush3.msra.mxu1 %v2586_v2  ;;  %v5920_v2 = vld [vmem:[#allocation20] ss:$0 sm:$0xff] }
 0xe8b   : > { %6371 = vmatprep.subr.mxu1 %v7526_v1 }
 0xe8c   : > { %6372 = vmatpush3.msra.mxu1 %v2585_v3 }
 0xe8d   : > { %6373 = vmatprep.subr.mxu1 %v7526_v1 }
 0xe8e   : > { %6374 = vmatpush3.msra.mxu1 %v2584_v4  ;;  %v5921_v4 = vld [vmem:[#allocation21] ss:$0 sm:$0xff] }
 0xe8f   : > { %6375 = vmatprep.subr.mxu1 %v7526_v1 }
 0xe90   : > { %6376 = vmatpush3.msra.mxu1 %v2583_v6 }
 0xe91   : > { %6377 = vmatprep.subr.mxu1 %v7526_v1 }
 0xe92   : > { %6378 = vmatpush3.msra.mxu1 %v2582_v8 }
 0xe93   : > { %6379 = vmatprep.subr.mxu1 %v7526_v1 }
 0xe94   : > { %6380 = vmatpush3.msra.mxu1 %v2581_v63  ;;  %v2712_v63 = vld [vmem:[#allocation11 + $0x2] sm:$0x3] }
 0xe95   : > { %6381 = vmatprep.subr.mxu1 %v7526_v1 }
 0xe96   : > { %6382 = vmatpush3.msra.mxu1 %v2580_v9  ;;  %v2717_v9 = vrot.slane %v2712_v63, %v8051_v59 }
 0xe97   : > { %6383 = vmatprep.subr.mxu1 %v7526_v1 }
 0xe98   : > { %6384 = vmatpush3.msra.mxu1 %v2579_v10  ;;  %v2721_v10 = vrot.slane %v2712_v63, %v8058_v0 }
 0xe99   : > { %6385 = vmatprep.subr.mxu1 %v7526_v1 }
 0xe9a   : > { %6386 = vmatpush3.msra.mxu1 %v2578_v11 }
 0xe9b   : > { %6387 = vmatprep.subr.mxu1 %v7526_v1 }
 0xe9c   : > { %6388 = vmatpush3.msra.mxu1 %v2577_v12 }
 0xe9d   : > { %6389 = vmatprep.subr.mxu1 %v7526_v1 }
 0xe9e   : > { %6390 = vmatpush3.msra.mxu1 %v2576_v13 }
 0xe9f   : > { %6391 = vmatprep.subr.mxu1 %v7526_v1 }
 0xea0   : > { %6392 = vmatpush3.msra.mxu1 %v2575_v14 }
 0xea1   : > { %6393 = vmatprep.subr.mxu1 %v7526_v1 }
 0xea2   : > { %6394 = vmatpush3.msra.mxu1 %v2574_v15 }
 0xea3   : > { %6395 = vmatprep.subr.mxu1 %v7526_v1 }
 0xea4   : > { %6396 = vmatpush3.msra.mxu1 %v2573_v16 }
 0xea5   : > { %6397 = vmatprep.subr.mxu1 %v7526_v1 }
 0xea6   : > { %6398 = vmatpush3.msra.mxu1 %v2572_v17 }
 0xea7   : > { %6399 = vmatprep.subr.mxu1 %v7526_v1 }
 0xea8   : > { %6400 = vmatpush3.msra.mxu1 %v2571_v18 }
 0xea9   : > { %6409 = vmatprep.subr.mxu1 %v7526_v1 }
 0xf49   : > { %v2431_v33 = vpop.f32.mrf.mxu1 }
 0xf4a   : > { %v2435_v35 = vadd.f32 %v2431_v33, %v2194_v26 }
 0xf4b   : > { %v6349_v36 = vpop.f32.mrf.mxu1 }
 0xf4c   : > { %v2443_v37 = vadd.f32 %v5914_v34, %v2435_v35 }
 0xf4e   : > { %v2444_v38 = vadd.f32 %v2443_v37, %v8044_v57  ;;  %v2479_v57 = vld [vmem:[%s8753_s20 + $0x28] sm:$0xff] }
 0xf4f   : > { %6355 = vmatpush3.msra.mxu0 %v2479_v57  ;;  %v5932_v57 = vld [vmem:[%s8750_s18 + $0xd0] sm:$0xff] }
 0xf50   : > { %v2447_v39 = vsel %vm1329_vm2, %v2444_v38, 0.0  ;;  %6356 = vmatprep.subr.mxu0 %v7526_v1 }
 0xf51   : > { %2448 = vadd.xlane.f32.xlu1 %v2447_v39  ;;  %6357 = vmatpush3.msra.mxu0 %v2478_v47  ;;  %v5931_v47 = vld [vmem:[%s8750_s18 + $0xc8] sm:$0xff] }
 0xf52   : > { %6358 = vmatprep.subr.mxu0 %v7526_v1 }
 0xf53   : > { %6359 = vmatpush3.msra.mxu0 %v2477_v48  ;;  %v5930_v48 = vld [vmem:[%s8750_s18 + $0xc0] sm:$0xff] }
 0xf54   : > { %6360 = vmatprep.subr.mxu0 %v7526_v1 }
 0xf55   : > { %6361 = vmatpush3.msra.mxu0 %v2476_v49  ;;  %v5929_v49 = vld [vmem:[%s8750_s18 + $0xb8] sm:$0xff] }
 0xf56   : > { %6362 = vmatprep.subr.mxu0 %v7526_v1 }
 0xf57   : > { %6363 = vmatpush3.msra.mxu0 %v2475_v50  ;;  %v5928_v50 = vld [vmem:[%s8750_s18 + $0xb0] sm:$0xff] }
 0xf58   : > { %6364 = vmatprep.subr.mxu0 %v7526_v1 }
 0xf59   : > { %6365 = vmatpush3.msra.mxu0 %v2474_v51  ;;  %v5927_v51 = vld [vmem:[%s8750_s18 + $0xa8] sm:$0xff] }
 0xfda   : > { %v2449_v40 = vpop.xlane.xlu1 %2448 }
 0xfdb   : > { %v2450_v41 = vmul.f32 0.015625, %v2449_v40 }
 0xfdd   : > { %v2451_v42 = vsub.f32 %v2444_v38, %v2450_v41 }
 0xfdf   : > { %v2452_v43 = vmul.f32 %v2451_v42, %v2451_v42 }
 0xfe1   : > { %v2453_v44 = vsel %vm1329_vm2, %v2452_v43, 0.0  ;;  %v5936_v43 = vld [vmem:[%s8750_s18 + $0xf0] sm:$0xff] }
 0xfe2   : > { %2454 = vadd.xlane.f32.xlu1 %v2453_v44  ;;  %v5935_v44 = vld [vmem:[%s8750_s18 + $0xe8] sm:$0xff] }
0x106b   : > { %v2455_v52 = vpop.xlane.xlu1 %2454 }
0x106c   : > { %v2456_v53 = vmul.f32 0.015625, %v2455_v52  ;;  %v5926_v52 = vld [vmem:[%s8750_s18 + $0xa0] sm:$0xff] }
0x106e   : > { %v2457_v54 = vadd.f32 1e-05, %v2456_v53  ;;  %v5925_v53 = vld [vmem:[%s8750_s18 + $0x98] sm:$0xff] }
0x1070   : > { %6914 = vrsqrt.f32 %v2457_v54  ;;  %v5924_v54 = vld [vmem:[%s8750_s18 + $0x90] sm:$0xff] }
0x107d   : > { %v6915_v55 = vpop.eup %6914 }
0x107e   : > { %v2459_v58 = vmul.f32 %v6915_v55, %v2451_v42  ;;  %v5937_v42 = vld [vmem:[%s8750_s18 + $0xf8] sm:$0xff]  ;;  %v5923_v55 = vld [vmem:[%s8750_s18 + $0x88] sm:$0xff] }
0x107f   : > { %2743 = vmatprep.subr.mxu0 %v5937_v42 }
0x1080   : > { %v2466_v61 = vmul.f32 %v5915_v56, %v2459_v58  ;;  %v5922_v56 = vld [vmem:[%s8750_s18 + $0x80] sm:$0xff] }
0x1082   : > { %v8184_v62 = vadd.f32 %v5916_v60, %v2466_v61 }
0x1084   : > { %6367 = vmatmul.mubr.msk.f32.vlgmr.msra.gmra.mxu0 %vm1329_vm2, %v8184_v62 }
0x1085   : > { %2791 = vmatprep.mubr.f32.mxu0 %v7526_v1  ;;  %2744 = vmatpush1.msra.mxu0 %v5936_v43 }
0x1086   : > { %2745 = vmatprep.subr.mxu0 %v5935_v44  ;;  %v5940_v44 = vld [vmem:[%s8752_s19 + $0x48] sm:$0xff] }
0x1087   : > { %2746 = vmatpush1.msra.mxu0 %v5934_v45  ;;  %v5939_v45 = vld [vmem:[%s8752_s19 + $0x40] sm:$0xff] }
0x1088   : > { %2747 = vmatprep.subr.mxu0 %v5933_v46  ;;  %v5942_v46 = vld [vmem:[%s8752_s19 + $0x58] sm:$0xff] }
0x1089   : > { %2748 = vmatpush1.msra.mxu0 %v5932_v57  ;;  %v5941_v57 = vld [vmem:[%s8752_s19 + $0x50] sm:$0xff] }
0x108a   : > { %2749 = vmatprep.subr.mxu0 %v5931_v47 }
0x108b   : > { %2750 = vmatpush1.msra.mxu0 %v5930_v48 }
0x108c   : > { %2751 = vmatprep.subr.mxu0 %v5929_v49 }
0x108d   : > { %2752 = vmatpush1.msra.mxu0 %v5928_v50 }
0x108e   : > { %2753 = vmatprep.subr.mxu0 %v5927_v51 }
0x108f   : > { %2754 = vmatpush1.msra.mxu0 %v5926_v52 }
0x1090   : > { %2755 = vmatprep.subr.mxu0 %v5925_v53 }
0x1091   : > { %2756 = vmatpush1.msra.mxu0 %v5924_v54 }
0x1092   : > { %2757 = vmatprep.subr.mxu0 %v5923_v55 }
0x1093   : > { %2758 = vmatpush1.msra.mxu0 %v5922_v56 }
0x1094   : > { %6404 = vmatprep.subr.mxu0 %v7526_v1 }
0x1144   : > { %v2558_v20 = vpop.f32.mrf.mxu0 }
0x1145   : > { %v2559_v21 = vadd.f32 %v5917_v19, %v2558_v20 }
0x1146   : > { %v6368_v22 = vpop.f32.mrf.mxu0 }
0x1147   : > { %v2562_v23 = vmul.f32 %v2559_v21, %v2559_v21 }
0x1149   : > { %v2563_v24 = vmul.f32 %v2562_v23, %v2559_v21 }
0x114b   : > { %v2564_v25 = vmul.f32 0.044715, %v2563_v24 }
0x114d   : > { %v2565_v26 = vadd.f32 %v2564_v25, %v2559_v21 }
0x114f   : > { %v2566_v5 = vmul.f32 0.7978846, %v2565_v26 }
0x1151   : > { %6916 = vtanh.f32 %v2566_v5 }
0x115e   : > { %v6917_v27 = vpop.eup %6916 }
0x115f   : > { %v2568_v28 = vadd.f32 1.0, %v6917_v27 }
0x1161   : > { %v2569_v29 = vmul.f32 0.5, %v2568_v28 }
0x1163   : > { %v2570_v30 = vmul.f32 %v2569_v29, %v2559_v21 }
0x1165   : > { %6402 = vmatmul.mubr.f32.vlgmr.msra.gmra.mxu1 %v2570_v30 }
0x1166   : > { %6411 = vmatprep.mubr.msk.f32.mxu1 %vm7527_vm0, %v7526_v1 }
0x1225   : > { %v2660_v32 = vpop.f32.mrf.mxu1 }
0x1226   : > { %v2661_v33 = vadd.f32 %v5919_v31, %v2660_v32 }
0x1227   : > { %v6403_v34 = vpop.f32.mrf.mxu1 }
0x1228   : > { %v2664_v35 = vadd.f32 %v2661_v33, %v8184_v62 }
0x122a   : > { %v2667_v36 = vsel %vm1329_vm2, %v2664_v35, 0.0 }
0x122b   : > { %2668 = vadd.xlane.f32.xlu1 %v2667_v36 }
0x12b4   : > { %v2669_v37 = vpop.xlane.xlu1 %2668 }
0x12b5   : > { %v2670_v38 = vmul.f32 0.015625, %v2669_v37 }
0x12b7   : > { %v2671_v39 = vsub.f32 %v2664_v35, %v2670_v38 }
0x12b9   : > { %v2672_v40 = vmul.f32 %v2671_v39, %v2671_v39 }
0x12bb   : > { %v2673_v41 = vsel %vm1329_vm2, %v2672_v40, 0.0 }
0x12bc   : > { %2674 = vadd.xlane.f32.xlu0 %v2673_v41 }
0x1345   : > { %v2675_v58 = vpop.xlane.xlu0 %2674 }
0x1346   : > { %v2676_v60 = vmul.f32 0.015625, %v2675_v58 }
0x1348   : > { %v2677_v61 = vadd.f32 1e-05, %v2676_v60 }
0x134a   : > { %6918 = vrsqrt.f32 %v2677_v61 }
0x1357   : > { %v6919_v62 = vpop.eup %6918 }
0x1358   : > { %v2679_v3 = vmul.f32 %v6919_v62, %v2671_v39 }
0x135a   : > { %v2686_v6 = vmul.f32 %v5920_v2, %v2679_v3 }
0x135c   : > { %v8243_v8 = vadd.f32 %v5921_v4, %v2686_v6 }
0x135e   : > { %5938 = vmatmul.mubr.msk.f32.vlgmr.msra.gmra.mxu0 %vm1329_vm2, %v8243_v8 }
0x135f   : > { %6406 = vmatprep.mubr.msk.f32.mxu0 %vm7527_vm0, %v7526_v1 }
0x141e   : > { %v2793_v11 = vpop.f32.mrf.mxu0 }
0x141f   : > { %v8251_v12 = vadd.f32 %v2793_v11, %v2717_v9 }
0x1420   : > { %v2795_v13 = vpop.f32.mrf.mxu0 }
0x1421   : > { %v8253_v14 = vadd.f32 %v2795_v13, %v2721_v10  ;;  %2808 = vrot.lane.b32.xlu1 %v8251_v12, %s7529_s8  ;;  %v5944_v13 = vld [vmem:[%s8752_s19 + $0x68] sm:$0xff] }
0x1423   : > { %6410 = vmatpush3.msra.mxu1 %v8253_v14 }
0x1424   : > { %6419 = vmatprep.subr.mxu1 %v7526_v1 }
0x1425   : > { %2972 = vrot.lane.b32.xlu1 %v8251_v12, %s7531_s14 }
0x1429   : > { %2970 = vrot.lane.b32.xlu1 %v8251_v12, %s7530_s22 }
0x1493   : > { %v2809_v15 = vpop.permute.xlu1 %2808 }
0x1494   : > { %6405 = vmatpush3.xpose.msk.msra.mxu0 %vm1472_vm3, %v2809_v15 }
0x1495   : > { %6414 = vmatprep.subr.mxu0 %v7526_v1 }
0x1497   : > { %6407 = vmatmul.mubr.msk.f32.vlgmr.msra.gmra.mxu0 %vm1472_vm3, %v8251_v12  ;;  %v2973_v16 = vpop.permute.xlu1 %2972 }
0x1498   : > { %6415 = vmatpush3.xpose.msk.msra.mxu0 %vm1472_vm3, %v2973_v16  ;;  %6416 = vmatprep.mubr.msk.f32.mxu0 %vm7527_vm0, %v7526_v1 }
0x1499   : > { %6424 = vmatprep.subr.mxu0 %v7526_v1 }
0x149b   : > { %v2971_v17 = vpop.permute.xlu1 %2970 }
0x149c   : > { %6417 = vmatmul.mubr.msk.f32.vlgmr.msra.gmra.mxu0 %vm1472_vm3, %v2971_v17 }
0x149d   : > { %6428 = vmatprep.mubr.msk.f32.mxu0 %vm7527_vm0, %v7526_v1  ;;  %6425 = vmatpush3.msra.mxu0 %v5942_v46 }
0x149e   : > { %6426 = vmatprep.subr.mxu0 %v7526_v1 }
0x149f   : > { %6427 = vmatpush3.msra.mxu0 %v5941_v57 }
0x14a0   : > { %6438 = vmatprep.subr.mxu0 %v7526_v1 }
0x1557   : > { %v2880_v18 = vpop.f32.mrf.mxu0 }
0x1558   : > { %v2884_v19 = vmul.f32 0.25, %v2880_v18 }
0x1559   : > { %v6408_v20 = vpop.f32.mrf.mxu0 }
0x155a   : > { %v2885_v21 = vadd.f32 %v8073_v7, %v2884_v19  ;;  %v5943_v19 = vld [vmem:[%s8752_s19 + $0x60] sm:$0xff] }
0x155c   : > { %v3044_v22 = vpop.f32.mrf.mxu0  ;;  %v2886_v23 = vsel %vm1555_vm4, %v2885_v21, -inf }
0x155d   : > { %v3048_v24 = vmul.f32 0.25, %v3044_v22  ;;  %2887 = vmax.xlane.f32.xlu1 %v2886_v23 }
0x155e   : > { %v6418_v25 = vpop.f32.mrf.mxu0 }
0x155f   : > { %v3049_v26 = vadd.f32 %v8073_v7, %v3048_v24 }
0x1561   : > { %v3050_v5 = vsel %vm1555_vm4, %v3049_v26, -inf }
0x1562   : > { %3051 = vmax.xlane.f32.xlu0 %v3050_v5 }
0x156e   : > { %3286 = vrot.lane.b32.xlu1 %v8251_v12, %s7533_s6 }
0x15e6   : > { %v2888_v27 = vpop.xlane.xlu1 %2887 }
0x15e7   : > { %v2889_v28 = vsub.f32 %v2885_v21, %v2888_v27 }
0x15e9   : > { %v2890_v29 = vmul.f32 1.442695, %v2889_v28 }
0x15ea   : > { %v3287_v50 = vpop.permute.xlu1 %3286 }
0x15eb   : > { %6920 = vpow2.f32 %v2890_v29  ;;  %v3052_v30 = vpop.xlane.xlu0 %3051 }
0x15ec   : > { %v3053_v31 = vsub.f32 %v3049_v26, %v3052_v30 }
0x15ee   : > { %v3054_v32 = vmul.f32 1.442695, %v3053_v31 }
0x15f0   : > { %6922 = vpow2.f32 %v3054_v32  ;;  %v5946_v32 = vld [vmem:[%s8752_s19 + $0x78] sm:$0xff] }
0x15f8   : > { %v6921_v33 = vpop.eup %6920 }
0x15f9   : > { %v2892_v34 = vsel %vm1555_vm4, %v6921_v33, 0.0 }
0x15fa   : > { %2893 = vadd.xlane.f32.xlu0 %v2892_v34 }
0x15fd   : > { %v6923_v35 = vpop.eup %6922 }
0x15fe   : > { %v3056_v36 = vsel %vm1555_vm4, %v6923_v35, 0.0 }
0x15ff   : > { %3057 = vadd.xlane.f32.xlu0 %v3056_v36 }
0x1615   : > { %3062 = vrot.lane.b32.xlu0 %v8253_v14, %s7530_s22 }
0x1619   : > { %3284 = vrot.lane.b32.xlu0 %v8251_v12, %s7532_s9 }
0x1683   : > { %v2894_v37 = vpop.xlane.xlu0 %2893 }
0x1684   : > { %6924 = vrcp.f32 %v2894_v37  ;;  %v5945_v37 = vld [vmem:[%s8752_s19 + $0x70] sm:$0xff] }
0x1688   : > { %v3058_v38 = vpop.xlane.xlu0 %3057 }
0x1689   : > { %6926 = vrcp.f32 %v3058_v38 }
0x168c   : > { %v3063_v41 = vpop.permute.xlu0 %3062 }
0x1690   : > { %v3285_v52 = vpop.permute.xlu0 %3284 }
0x1691   : > { %v6925_v39 = vpop.eup %6924 }
0x1692   : > { %v2896_v40 = vmul.f32 %v6925_v39, %v6921_v33 }
0x1694   : > { %6412 = vmatmul.mubr.msk.f32.vlgmr.msra.gmra.mxu1 %vm1555_vm4, %v2896_v40 }
0x1695   : > { %6420 = vmatpush3.msra.mxu1 %v3063_v41  ;;  %6421 = vmatprep.mubr.msk.f32.mxu1 %vm7527_vm0, %v7526_v1  ;;  %v5963_v41 = vld [vmem:[#allocation12 + $0x1] ss:$0 sm:$0xff] }
0x1696   : > { %v6927_v42 = vpop.eup %6926  ;;  %6431 = vmatprep.subr.mxu1 %v7526_v1 }
0x1697   : > { %v3060_v43 = vmul.f32 %v6927_v42, %v6923_v35 }
0x1699   : > { %6422 = vmatmul.mubr.msk.f32.vlgmr.msra.gmra.mxu1 %vm1555_vm4, %v3060_v43 }
0x169a   : > { %6432 = vmatpush3.msra.mxu1 %v5940_v44  ;;  %6435 = vmatprep.mubr.msk.f32.mxu1 %vm7527_vm0, %v7526_v1 }
0x169b   : > { %6433 = vmatprep.subr.mxu1 %v7526_v1 }
0x169c   : > { %6434 = vmatpush3.msra.mxu1 %v5939_v45 }
0x169d   : > { %6443 = vmatprep.subr.mxu1 %v7526_v1 }
0x1754   : > { %v2966_v47 = vpop.f32.mrf.mxu1 }
0x1755   : > { %6436 = vmatmul.mubr.msk.f32.vlgmr.msra.gmra.mxu1 %vm1472_vm3, %v2966_v47 }
0x1756   : > { %v6413_v48 = vpop.f32.mrf.mxu1  ;;  %6445 = vmatprep.mubr.msk.f32.mxu1 %vm7527_vm0, %v7526_v1 }
0x1759   : > { %v3134_v49 = vpop.f32.mrf.mxu1 }
0x175a   : > { %6429 = vmatmul.mubr.msk.f32.vlgmr.msra.gmra.mxu0 %vm1472_vm3, %v3134_v49 }
0x175b   : > { %6439 = vmatpush3.xpose.msk.msra.mxu0 %vm1472_vm3, %v3287_v50  ;;  %v6423_v51 = vpop.f32.mrf.mxu1  ;;  %6440 = vmatprep.mubr.msk.f32.mxu0 %vm7527_vm0, %v7526_v1 }
0x175c   : > { %6448 = vmatprep.subr.mxu0 %v7526_v1  ;;  %v5973_v51 = vld [vmem:[%s8753_s20 + $0x78] sm:$0xff] }
0x175e   : > { %6441 = vmatmul.mubr.msk.f32.vlgmr.msra.gmra.mxu0 %vm1472_vm3, %v3285_v52  ;;  %v5972_v52 = vld [vmem:[%s8753_s20 + $0x70] sm:$0xff] }
0x175f   : > { %6452 = vmatprep.mubr.msk.f32.mxu0 %vm7527_vm0, %v7526_v1  ;;  %6449 = vmatpush3.msra.mxu0 %v5944_v13  ;;  %v5990_v13 = vld [vmem:[%s8754_s23 + $0xf0] sm:$0xff] }
0x1760   : > { %6450 = vmatprep.subr.mxu0 %v7526_v1 }
0x1761   : > { %6451 = vmatpush3.msra.mxu0 %v5943_v19  ;;  %v5984_v19 = vld [vmem:[%s8754_s23 + $0xc0] sm:$0xff] }
0x1762   : > { %6460 = vmatprep.subr.mxu0 %v7526_v1 }
0x1815   : > { %v3280_v53 = vpop.f32.mrf.mxu1 }
0x1817   : > { %v6437_v54 = vpop.f32.mrf.mxu1 }
0x1818   : > { %v5970_v54 = vld [vmem:[%s8753_s20 + $0x60] sm:$0xff] }
0x181a   : > { %v3207_v55 = vpop.f32.mrf.mxu0 }
0x181b   : > { %v3281_v56 = vadd.f32 %v3280_v53, %v3207_v55  ;;  %v5971_v53 = vld [vmem:[%s8753_s20 + $0x68] sm:$0xff]  ;;  %v5969_v55 = vld [vmem:[%s8753_s20 + $0x58] sm:$0xff] }
0x181c   : > { %v6430_v58 = vpop.f32.mrf.mxu0 }
0x181d   : > { %v5967_v58 = vld [vmem:[%s8753_s20 + $0x48] sm:$0xff] }
0x181e   : > { %v3358_v60 = vpop.f32.mrf.mxu0 }
0x181f   : > { %v3362_v61 = vmul.f32 0.25, %v3358_v60  ;;  %v5966_v60 = vld [vmem:[%s8753_s20 + $0x40] sm:$0xff] }
0x1820   : > { %v6442_v62 = vpop.f32.mrf.mxu0 }
0x1821   : > { %v3363_v2 = vadd.f32 %v8073_v7, %v3362_v61 }
0x1823   : > { %v3364_v3 = vsel %vm1555_vm4, %v3363_v2, -inf }
0x1824   : > { %3365 = vmax.xlane.f32.xlu0 %v3364_v3 }
0x183a   : > { %3375 = vrot.lane.b32.xlu0 %v8253_v14, %s7532_s9 }
0x183e   : > { %3525 = vrot.lane.b32.xlu0 %v8251_v12, %s8675_s16 }
0x18ad   : > { %v3366_v4 = vpop.xlane.xlu0 %3365 }
0x18ae   : > { %v3367_v6 = vsub.f32 %v3363_v2, %v3366_v4  ;;  %v5964_v4 = vld [vmem:[#allocation17 + $0x1] ss:$0 sm:$0xff] }
0x18b0   : > { %v3368_v63 = vmul.f32 1.442695, %v3367_v6 }
0x18b1   : > { %v3376_v9 = vpop.permute.xlu0 %3375 }
0x18b2   : > { %6928 = vpow2.f32 %v3368_v63  ;;  %6444 = vmatpush3.msra.mxu1 %v3376_v9  ;;  %v5965_v63 = vld [vmem:[#allocation18 + $0x1] ss:$0 sm:$0xff] }
0x18b3   : > { %6455 = vmatprep.subr.mxu1 %v7526_v1 }
0x18bf   : > { %v6929_v10 = vpop.eup %6928 }
0x18c0   : > { %v3370_v11 = vsel %vm1555_vm4, %v6929_v10, 0.0 }
0x18c1   : > { %3371 = vadd.xlane.f32.xlu1 %v3370_v11  ;;  %v5991_v11 = vld [vmem:[%s8754_s23 + $0xf8] sm:$0xff] }
0x18d2   : > { %3527 = vrot.lane.b32.xlu1 %v8251_v12, %s7535_s4  ;;  %v3526_v12 = vpop.permute.xlu0 %3525 }
0x194a   : > { %v3372_v15 = vpop.xlane.xlu1 %3371 }
0x194b   : > { %6930 = vrcp.f32 %v3372_v15  ;;  %v5989_v15 = vld [vmem:[%s8754_s23 + $0xe8] sm:$0xff] }
0x194e   : > { %v3528_v18 = vpop.permute.xlu1 %3527 }
0x1958   : > { %v6931_v16 = vpop.eup %6930 }
0x1959   : > { %v3374_v17 = vmul.f32 %v6931_v16, %v6929_v10  ;;  %v5988_v16 = vld [vmem:[%s8754_s23 + $0xe0] sm:$0xff] }
0x195b   : > { %6446 = vmatmul.mubr.msk.f32.vlgmr.msra.gmra.mxu1 %vm1555_vm4, %v3374_v17  ;;  %v5987_v17 = vld [vmem:[%s8754_s23 + $0xd8] sm:$0xff] }
0x195c   : > { %6456 = vmatpush3.xpose.msk.msra.mxu1 %vm1472_vm3, %v3528_v18  ;;  %6457 = vmatprep.mubr.msk.f32.mxu1 %vm7527_vm0, %v7526_v1  ;;  %v5986_v18 = vld [vmem:[%s8754_s23 + $0xd0] sm:$0xff] }
0x195d   : > { %6465 = vmatprep.subr.mxu1 %v7526_v1 }
0x195f   : > { %6458 = vmatmul.mubr.msk.f32.vlgmr.msra.gmra.mxu1 %vm1472_vm3, %v3526_v12  ;;  %v5985_v12 = vld [vmem:[%s8754_s23 + $0xc8] sm:$0xff] }
0x1960   : > { %6469 = vmatprep.mubr.msk.f32.mxu1 %vm7527_vm0, %v7526_v1  ;;  %6466 = vmatpush3.msra.mxu1 %v5946_v32 }
0x1961   : > { %6467 = vmatprep.subr.mxu1 %v7526_v1 }
0x1962   : > { %6468 = vmatpush3.msra.mxu1 %v5945_v37 }
0x1963   : > { %6491 = vmatprep.subr.mxu1 %v7526_v1 }
0x1a1b   : > { %v3447_v20 = vpop.f32.mrf.mxu1 }
0x1a1c   : > { %6453 = vmatmul.mubr.msk.f32.vlgmr.msra.gmra.mxu0 %vm1472_vm3, %v3447_v20  ;;  %v5983_v20 = vld [vmem:[%s8754_s23 + $0xb8] sm:$0xff] }
0x1a1d   : > { %v6447_v21 = vpop.f32.mrf.mxu1  ;;  %6462 = vmatprep.mubr.msk.f32.mxu0 %vm7527_vm0, %v7526_v1 }
0x1a1e   : > { %v5982_v21 = vld [vmem:[%s8754_s23 + $0xb0] sm:$0xff] }
0x1a1f   : > { %v3599_v22 = vpop.f32.mrf.mxu1 }
0x1a20   : > { %v3603_v23 = vmul.f32 0.25, %v3599_v22  ;;  %v5981_v22 = vld [vmem:[%s8754_s23 + $0xa8] sm:$0xff] }
0x1a21   : > { %v6459_v24 = vpop.f32.mrf.mxu1 }
0x1a22   : > { %v3604_v25 = vadd.f32 %v8073_v7, %v3603_v23  ;;  %v5980_v23 = vld [vmem:[%s8754_s23 + $0xa0] sm:$0xff]  ;;  %v5979_v24 = vld [vmem:[%s8754_s23 + $0x98] sm:$0xff] }
0x1a24   : > { %v3605_v26 = vsel %vm1555_vm4, %v3604_v25, -inf }
0x1a25   : > { %3606 = vmax.xlane.f32.xlu0 %v3605_v26  ;;  %v5977_v26 = vld [vmem:[%s8754_s23 + $0x88] sm:$0xff] }
0x1a3b   : > { %3616 = vrot.lane.b32.xlu0 %v8253_v14, %s8675_s16  ;;  %s8756_s16 = sld [smem:[#allocation56_spill]] }
0x1aae   : > { %v3607_v5 = vpop.xlane.xlu0 %3606 }
0x1aaf   : > { %v3608_v27 = vsub.f32 %v3604_v25, %v3607_v5  ;;  %v5978_v25 = vld [vmem:[%s8754_s23 + $0x90] sm:$0xff]  ;;  %v5976_v5 = vld [vmem:[%s8754_s23 + $0x80] sm:$0xff] }
0x1ab1   : > { %v3609_v28 = vmul.f32 1.442695, %v3608_v27  ;;  %v5974_v27 = vld [vmem:[#allocation14 + $0x1] ss:$0 sm:$0xff] }
0x1ab2   : > { %v3617_v29 = vpop.permute.xlu0 %3616 }
0x1ab3   : > { %6932 = vpow2.f32 %v3609_v28  ;;  %6461 = vmatpush3.msra.mxu0 %v3617_v29 }
0x1ab4   : > { %6472 = vmatprep.subr.mxu0 %v7526_v1 }
0x1ac0   : > { %v6933_v30 = vpop.eup %6932 }
0x1ac1   : > { %v3611_v31 = vsel %vm1555_vm4, %v6933_v30, 0.0 }
0x1ac2   : > { %3612 = vadd.xlane.f32.xlu1 %v3611_v31 }
0x1adc   : > { %v3520_v7 = vpop.f32.mrf.mxu0 }
0x1add   : > { %v3524_v33 = vadd.f32 %v3520_v7, %v3281_v56  ;;  %v5968_v56 = vld [vmem:[%s8753_s20 + $0x50] sm:$0xff] }
0x1ade   : > { %v6454_v34 = vpop.f32.mrf.mxu0 }
0x1b4b   : > { %v3613_v14 = vpop.xlane.xlu1 %3612 }
0x1b4c   : > { %6934 = vrcp.f32 %v3613_v14 }
0x1b59   : > { %v6935_v35 = vpop.eup %6934 }
0x1b5a   : > { %v3615_v36 = vmul.f32 %v6935_v35, %v6933_v30 }
0x1b5c   : > { %6463 = vmatmul.mubr.msk.f32.vlgmr.msra.gmra.mxu0 %vm1555_vm4, %v3615_v36 }
0x1b5d   : > { %6488 = vmatprep.mubr.msk.f32.mxu0 %vm7527_vm0, %v7526_v1  ;;  %6473 = vmatpush3.msra.mxu0 %v5973_v51  ;;  %v4056_v51 = vld [vmem:[%s8755_s3 + $0x60] sm:$0xff] }
0x1b5e   : > { %6474 = vmatprep.subr.mxu0 %v7526_v1 }
0x1b5f   : > { %6475 = vmatpush3.msra.mxu0 %v5972_v52  ;;  %v4055_v52 = vld [vmem:[%s8755_s3 + $0x58] sm:$0xff] }
0x1b60   : > { %6476 = vmatprep.subr.mxu0 %v7526_v1 }
0x1b61   : > { %6477 = vmatpush3.msra.mxu0 %v5971_v53  ;;  %v4054_v53 = vld [vmem:[%s8755_s3 + $0x50] sm:$0xff] }
0x1b62   : > { %6478 = vmatprep.subr.mxu0 %v7526_v1 }
0x1b63   : > { %6479 = vmatpush3.msra.mxu0 %v5970_v54  ;;  %v4053_v54 = vld [vmem:[%s8755_s3 + $0x48] sm:$0xff] }
0x1b64   : > { %6480 = vmatprep.subr.mxu0 %v7526_v1 }
0x1b65   : > { %6481 = vmatpush3.msra.mxu0 %v5969_v55  ;;  %v4052_v55 = vld [vmem:[%s8755_s3 + $0x40] sm:$0xff] }
0x1b66   : > { %6482 = vmatprep.subr.mxu0 %v7526_v1 }
0x1b67   : > { %6483 = vmatpush3.msra.mxu0 %v5968_v56  ;;  %v4051_v56 = vld [vmem:[%s8755_s3 + $0x38] sm:$0xff] }
0x1b68   : > { %6484 = vmatprep.subr.mxu0 %v7526_v1 }
0x1b69   : > { %6485 = vmatpush3.msra.mxu0 %v5967_v58  ;;  %v4050_v58 = vld [vmem:[%s8755_s3 + $0x30] sm:$0xff] }
0x1b6a   : > { %6486 = vmatprep.subr.mxu0 %v7526_v1 }
0x1b6b   : > { %6487 = vmatpush3.msra.mxu0 %v5966_v60  ;;  %v4049_v60 = vld [vmem:[%s8755_s3 + $0x28] sm:$0xff] }
0x1c1c   : > { %v3688_v38 = vpop.f32.mrf.mxu0 }
0x1c1d   : > { %6470 = vmatmul.mubr.msk.f32.vlgmr.msra.gmra.mxu1 %vm1472_vm3, %v3688_v38  ;;  %v5992_v38 = vld [vmem:[#allocation15 + $0x1] ss:$0 sm:$0xff] }
0x1c1e   : > { %v6464_v39 = vpop.f32.mrf.mxu0  ;;  %6523 = vmatprep.mubr.msk.f32.mxu1 %vm7527_vm0, %v7526_v1  ;;  %6492 = vmatpush3.msra.mxu1 %v5991_v11 }
0x1c1f   : > { %6493 = vmatprep.subr.mxu1 %v7526_v1 }
0x1c20   : > { %6494 = vmatpush3.msra.mxu1 %v5990_v13  ;;  %v5993_v13 = vld [vmem:[#allocation20 + $0x1] ss:$0 sm:$0xff] }
0x1c21   : > { %6495 = vmatprep.subr.mxu1 %v7526_v1 }
0x1c22   : > { %6496 = vmatpush3.msra.mxu1 %v5989_v15 }
0x1c23   : > { %6497 = vmatprep.subr.mxu1 %v7526_v1 }
0x1c24   : > { %6498 = vmatpush3.msra.mxu1 %v5988_v16  ;;  %v5994_v16 = vld [vmem:[#allocation21 + $0x1] ss:$0 sm:$0xff] }
0x1c25   : > { %6499 = vmatprep.subr.mxu1 %v7526_v1 }
0x1c26   : > { %6500 = vmatpush3.msra.mxu1 %v5987_v17 }
0x1c27   : > { %6501 = vmatprep.subr.mxu1 %v7526_v1 }
0x1c28   : > { %6502 = vmatpush3.msra.mxu1 %v5986_v18 }
0x1c29   : > { %6503 = vmatprep.subr.mxu1 %v7526_v1 }
0x1c2a   : > { %6504 = vmatpush3.msra.mxu1 %v5985_v12 }
0x1c2b   : > { %6505 = vmatprep.subr.mxu1 %v7526_v1 }
0x1c2c   : > { %6506 = vmatpush3.msra.mxu1 %v5984_v19 }
0x1c2d   : > { %6507 = vmatprep.subr.mxu1 %v7526_v1 }
0x1c2e   : > { %6508 = vmatpush3.msra.mxu1 %v5983_v20 }
0x1c2f   : > { %6509 = vmatprep.subr.mxu1 %v7526_v1 }
0x1c30   : > { %6510 = vmatpush3.msra.mxu1 %v5982_v21 }
0x1c31   : > { %6511 = vmatprep.subr.mxu1 %v7526_v1 }
0x1c32   : > { %6512 = vmatpush3.msra.mxu1 %v5981_v22  ;;  %v4060_v22 = vld [vmem:[%s8756_s16] sm:$0x3]  ;;  %s8764_s16 = sld [smem:[#allocation65_spill]] }
0x1c33   : > { %6513 = vmatprep.subr.mxu1 %v7526_v1 }
0x1c34   : > { %6514 = vmatpush3.msra.mxu1 %v5980_v23  ;;  %v4065_v23 = vrot.slane %v4060_v22, %v8051_v59 }
0x1c35   : > { %6515 = vmatprep.subr.mxu1 %v7526_v1 }
0x1c36   : > { %6516 = vmatpush3.msra.mxu1 %v5979_v24 }
0x1c37   : > { %6517 = vmatprep.subr.mxu1 %v7526_v1 }
0x1c38   : > { %6518 = vmatpush3.msra.mxu1 %v5978_v25 }
0x1c39   : > { %6519 = vmatprep.subr.mxu1 %v7526_v1 }
0x1c3a   : > { %6520 = vmatpush3.msra.mxu1 %v5977_v26 }
0x1c3b   : > { %6521 = vmatprep.subr.mxu1 %v7526_v1 }
0x1c3c   : > { %6522 = vmatpush3.msra.mxu1 %v5976_v5  ;;  %v4069_v5 = vrot.slane %v4060_v22, %v8058_v0 }
0x1cdd   : > { %v3761_v40 = vpop.f32.mrf.mxu1 }
0x1cde   : > { %v3765_v42 = vadd.f32 %v3761_v40, %v3524_v33 }
0x1cdf   : > { %v6471_v43 = vpop.f32.mrf.mxu1 }
0x1ce0   : > { %v3774_v44 = vadd.f32 %v5963_v41, %v3765_v42 }
0x1ce2   : > { %v3775_v45 = vadd.f32 %v3774_v44, %v8243_v8 }
0x1ce4   : > { %v3780_v46 = vsel %vm1329_vm2, %v3775_v45, 0.0 }
0x1ce5   : > { %3781 = vadd.xlane.f32.xlu1 %v3780_v46 }
0x1d6e   : > { %v3782_v57 = vpop.xlane.xlu1 %3781 }
0x1d6f   : > { %v3783_v47 = vmul.f32 0.015625, %v3782_v57 }
0x1d71   : > { %v3784_v48 = vsub.f32 %v3775_v45, %v3783_v47 }
0x1d73   : > { %v3785_v49 = vmul.f32 %v3784_v48, %v3784_v48 }
0x1d75   : > { %v3786_v50 = vsel %vm1329_vm2, %v3785_v49, 0.0  ;;  %v4058_v49 = vld [vmem:[%s8755_s3 + $0x70] sm:$0xff] }
0x1d76   : > { %3787 = vadd.xlane.f32.xlu1 %v3786_v50  ;;  %v4057_v50 = vld [vmem:[%s8755_s3 + $0x68] sm:$0xff] }
0x1dff   : > { %v3788_v61 = vpop.xlane.xlu1 %3787 }
0x1e00   : > { %v3789_v62 = vmul.f32 0.015625, %v3788_v61  ;;  %v4048_v61 = vld [vmem:[%s8755_s3 + $0x20] sm:$0xff] }
0x1e02   : > { %v3790_v2 = vadd.f32 1e-05, %v3789_v62  ;;  %v4047_v62 = vld [vmem:[%s8755_s3 + $0x18] sm:$0xff] }
0x1e04   : > { %6936 = vrsqrt.f32 %v3790_v2  ;;  %v4037_v2 = vld [vmem:[#allocation23] sm:$0x1] }
0x1e05   : > { %4039 = vst.msk [vmem:[#allocation2] sm:$0x1] %vm4038_vm5, %v4037_v2 }
0x1e11   : > { %v6937_v3 = vpop.eup %6936 }
0x1e12   : > { %v3792_v6 = vmul.f32 %v6937_v3, %v3784_v48  ;;  %v4059_v48 = vld [vmem:[%s8755_s3 + $0x78] sm:$0xff]  ;;  %v4046_v3 = vld [vmem:[%s8755_s3 + $0x10] sm:$0xff] }
0x1e13   : > { %4094 = vmatprep.subr.mxu0 %v4059_v48 }
0x1e14   : > { %v3799_v9 = vmul.f32 %v5964_v4, %v3792_v6  ;;  %v4045_v4 = vld [vmem:[%s8755_s3 + $0x8] sm:$0xff]  ;;  %v4044_v6 = vld [vmem:[%s8755_s3] sm:$0xff]  ;;  %s7536_s3 = smov [#allocation27]  }
0x1e15   : > { %s7378_s18 = sshll.u32 %s7536_s3, 4  ;;  %s7379_s18 = int_to_ptr.vmem [resolvable:$false] %s7378_s18 }
0x1e16   : > { %v8371_v10 = vadd.f32 %v5965_v63, %v3799_v9 }
0x1e18   : > { %6489 = vmatmul.mubr.msk.f32.vlgmr.msra.gmra.mxu0 %vm1329_vm2, %v8371_v10 }
0x1e19   : > { %4142 = vmatprep.mubr.f32.mxu0 %v7526_v1  ;;  %4095 = vmatpush1.msra.mxu0 %v4058_v49 }
0x1e1a   : > { %4096 = vmatprep.subr.mxu0 %v4057_v50 }
0x1e1b   : > { %4097 = vmatpush1.msra.mxu0 %v4056_v51 }
0x1e1c   : > { %4098 = vmatprep.subr.mxu0 %v4055_v52 }
0x1e1d   : > { %4099 = vmatpush1.msra.mxu0 %v4054_v53 }
0x1e1e   : > { %4100 = vmatprep.subr.mxu0 %v4053_v54 }
0x1e1f   : > { %4101 = vmatpush1.msra.mxu0 %v4052_v55 }
0x1e20   : > { %4102 = vmatprep.subr.mxu0 %v4051_v56 }
0x1e21   : > { %4103 = vmatpush1.msra.mxu0 %v4050_v58 }
0x1e22   : > { %4104 = vmatprep.subr.mxu0 %v4049_v60 }
0x1e23   : > { %4105 = vmatpush1.msra.mxu0 %v4048_v61 }
0x1e24   : > { %4106 = vmatprep.subr.mxu0 %v4047_v62 }
0x1e25   : > { %4107 = vmatpush1.msra.mxu0 %v4046_v3 }
0x1e26   : > { %4108 = vmatprep.subr.mxu0 %v4045_v4 }
0x1e27   : > { %4109 = vmatpush1.msra.mxu0 %v4044_v6 }
0x1ed8   : > { %v3893_v28 = vpop.f32.mrf.mxu0 }
0x1ed9   : > { %v3894_v29 = vadd.f32 %v5974_v27, %v3893_v28 }
0x1eda   : > { %v6490_v30 = vpop.f32.mrf.mxu0 }
0x1edb   : > { %v3897_v31 = vmul.f32 %v3894_v29, %v3894_v29 }
0x1edd   : > { %v3898_v7 = vmul.f32 %v3897_v31, %v3894_v29 }
0x1edf   : > { %v3899_v32 = vmul.f32 0.044715, %v3898_v7 }
0x1ee1   : > { %v3900_v33 = vadd.f32 %v3899_v32, %v3894_v29 }
0x1ee3   : > { %v3901_v34 = vmul.f32 0.7978846, %v3900_v33 }
0x1ee5   : > { %6938 = vtanh.f32 %v3901_v34 }
0x1ef2   : > { %v6939_v14 = vpop.eup %6938 }
0x1ef3   : > { %v3903_v35 = vadd.f32 1.0, %v6939_v14 }
0x1ef5   : > { %v3904_v36 = vmul.f32 0.5, %v3903_v35 }
0x1ef7   : > { %v3905_v37 = vmul.f32 %v3904_v36, %v3894_v29 }
0x1ef9   : > { %6524 = vmatmul.mubr.f32.vlgmr.msra.gmra.mxu1 %v3905_v37  ;;  %v8483_v37 = vld [vmem:[%s1088_s15] ss:$0 sm:$0xff]  ;;  %s8757_s15 = smov 80  }
0x1fb9   : > { %v3997_v39 = vpop.f32.mrf.mxu1 }
0x1fba   : > { %v3998_v40 = vadd.f32 %v5992_v38, %v3997_v39 }
0x1fbb   : > { %v6525_v41 = vpop.f32.mrf.mxu1 }
0x1fbc   : > { %v4001_v42 = vadd.f32 %v3998_v40, %v8371_v10 }
0x1fbe   : > { %v4006_v43 = vsel %vm1329_vm2, %v4001_v42, 0.0 }
0x1fbf   : > { %4007 = vadd.xlane.f32.xlu1 %v4006_v43 }
0x2048   : > { %v4008_v44 = vpop.xlane.xlu1 %4007 }
0x2049   : > { %v4009_v45 = vmul.f32 0.015625, %v4008_v44 }
0x204b   : > { %v4010_v46 = vsub.f32 %v4001_v42, %v4009_v45 }
0x204d   : > { %v4011_v57 = vmul.f32 %v4010_v46, %v4010_v46 }
0x204f   : > { %v4012_v47 = vsel %vm1329_vm2, %v4011_v57, 0.0 }
0x2050   : > { %4013 = vadd.xlane.f32.xlu0 %v4012_v47 }
0x20d9   : > { %v4014_v63 = vpop.xlane.xlu0 %4013 }
0x20da   : > { %v4015_v9 = vmul.f32 0.015625, %v4014_v63 }
0x20dc   : > { %v4016_v10 = vadd.f32 1e-05, %v4015_v9 }
0x20de   : > { %6940 = vrsqrt.f32 %v4016_v10 }
0x20eb   : > { %v6941_v11 = vpop.eup %6940 }
0x20ec   : > { %v4018_v15 = vmul.f32 %v6941_v11, %v4010_v46  ;;  %v4158_v11 = vld [vmem:[#allocation24 + $0x18] sm:$0xff] }
0x20ee   : > { %v4025_v17 = vmul.f32 %v5993_v13, %v4018_v15 }
0x20f0   : > { %v4032_v18 = vadd.f32 %v5994_v16, %v4025_v17 }
0x20f2   : > { %v4034_v12 = vadd.f32 %v4032_v18, %v8243_v8  ;;  %v4157_v18 = vld [vmem:[#allocation24 + $0x10] sm:$0xff] }
0x20f4   : > { %v4036_v19 = vmul.f32 0.5, %v4034_v12 }
0x20f6   : > { %4040 = vst.msk [vmem:[#allocation2 + $0x1] sm:$0xff] %vm1329_vm2, %v4036_v19 }
0x20fd   : > { %v8429_v20 = vld [vmem:[#allocation2] sm:$0xff]  ;;  %v8434_v21 = vld [vmem:[#allocation2 + $0x8] sm:$0x1] }
0x20fe   : > { %5995 = vmatmul.mubr.msk.f32.vlgmr.msra.gmra.mxu0 %vm1329_vm2, %v8429_v20 }
0x20ff   : > { %4148 = vmatprep.mubr.f32.mxu0 %v7526_v1 }
0x2102   : > { %5996 = vmatmul.mubr.msk.f32.gmra.mxu0 %vm1329_vm2, %v8434_v21 }
0x21be   : > { %v4144_v24 = vpop.f32.mrf.mxu0 }
0x21bf   : > { %v8440_v8 = vadd.f32 %v4144_v24, %v4065_v23 }
0x21c0   : > { %v4146_v25 = vpop.f32.mrf.mxu0 }
0x21c1   : > { %6530 = vmatprep.mubr.msk.f32.mxu0 %vm1472_vm3, %v8440_v8  ;;  %v8453_v59 = vadd.f32 %v4146_v25, %v4069_v5 }
0x21c2   : > { %v4150_v26 = vpop.f32.mrf.mxu0 }
0x21c3   : > { %v8445_v27 = vadd.f32 %v4150_v26, %v4065_v23 }
0x21c4   : > { %v4152_v1 = vpop.f32.mrf.mxu0 }
0x21c5   : > { %v8447_v28 = vadd.f32 %v4152_v1, %v4069_v5  ;;  %4373 = vrot.lane.b32.xlu0 %v8445_v27, %s7530_s22  ;;  %4167 = vrot.lane.b32.xlu1 %v8445_v27, %s7529_s8 }
0x21c7   : > { %6533 = vmatprep.subr.msk.mxu1 %vm4292_vm6, %v8447_v28 }
0x21c8   : > { %6534 = vmatpush3.msk.msra.mxu1 %vm4292_vm6, %v8447_v28 }
0x21c9   : > { %6535 = vmatprep.subr.mxu1 %v8453_v59  ;;  %4165 = vrot.lane.b32.xlu1 %v8440_v8, %s7529_s8  ;;  %s8758_s8 = sld [smem:[#allocation58_spill]] }
0x21ca   : > { %6536 = vmatpush3.msra.mxu1 %v8453_v59 }
0x21cd   : > { %4377 = vrot.lane.b32.xlu1 %v8445_v27, %s7531_s14 }
0x21d1   : > { %4375 = vrot.lane.b32.xlu1 %v8440_v8, %s7531_s14  ;;  %s8760_s14 = sld [smem:[#allocation63_spill]] }
0x21d5   : > { %4371 = vrot.lane.b32.xlu1 %v8440_v8, %s7530_s22 }
0x2237   : > { %v4168_v0 = vpop.permute.xlu1 %4167  ;;  %v4374_v32 = vpop.permute.xlu0 %4373 }
0x2238   : > { %6526 = vmatprep.subr.msk.mxu0 %vm1472_vm3, %v4168_v0 }
0x2239   : > { %6527 = vmatpush3.xpose.msk.msra.mxu0 %vm1472_vm3, %v4168_v0 }
0x223b   : > { %v4166_v29 = vpop.permute.xlu1 %4165 }
0x223c   : > { %6528 = vmatprep.subr.msk.mxu0 %vm1472_vm3, %v4166_v29 }
0x223d   : > { %6529 = vmatpush3.xpose.msk.msra.mxu0 %vm1472_vm3, %v4166_v29 }
0x223f   : > { %v4378_v30 = vpop.permute.xlu1 %4377 }
0x2240   : > { %6531 = vmatmul.mubr.msk.f32.vlgmr.msra.gmra.mxu0 %vm1472_vm3, %v8445_v27  ;;  %6540 = vmatprep.subr.msk.mxu0 %vm1472_vm3, %v4378_v30 }
0x2241   : > { %6541 = vmatpush3.xpose.msk.msra.mxu0 %vm1472_vm3, %v4378_v30 }
0x2243   : > { %v4376_v31 = vpop.permute.xlu1 %4375 }
0x2244   : > { %6542 = vmatprep.subr.msk.mxu0 %vm1472_vm3, %v4376_v31 }
0x2245   : > { %6543 = vmatpush3.xpose.msk.msra.mxu0 %vm1472_vm3, %v4376_v31 }
0x2247   : > { %v4372_v7 = vpop.permute.xlu1 %4371 }
0x2248   : > { %6544 = vmatprep.mubr.msk.f32.mxu0 %vm1472_vm3, %v4372_v7 }
0x2249   : > { %6545 = vmatmul.mubr.msk.f32.vlgmr.msra.gmra.mxu0 %vm1472_vm3, %v4374_v32 }
0x2300   : > { %v6532_v33 = vpop.f32.mrf.mxu0 }
0x2301   : > { %v4253_v43 = vmul.f32 0.25, %v6532_v33 }
0x2302   : > { %v4243_v34 = vpop.f32.mrf.mxu0 }
0x2303   : > { %v4261_v44 = vadd.f32 %v8483_v37, %v4253_v43  ;;  %v4252_v62 = vmul.f32 0.25, %v4243_v34 }
0x2305   : > { %v4267_v45 = vsel %vm4266_vm7, %v4261_v44, -inf  ;;  %v4260_v2 = vadd.f32 %v8483_v37, %v4252_v62 }
0x2307   : > { %v4263_v3 = vsel %vm4262_vm8, %v4260_v2, -inf }
0x2309   : > { %v6546_v14 = vpop.f32.mrf.mxu0 }
0x230a   : > { %v4463_v35 = vmul.f32 0.25, %v6546_v14 }
0x230b   : > { %v4453_v36 = vpop.f32.mrf.mxu0 }
0x230c   : > { %v4462_v38 = vmul.f32 0.25, %v4453_v36  ;;  %v4465_v39 = vadd.f32 %v8483_v37, %v4463_v35  ;;  %v4156_v35 = vld [vmem:[#allocation24 + $0x8] sm:$0xff]  ;;  %v4155_v36 = vld [vmem:[#allocation24] sm:$0xff] }
0x230d   : > { %6561 = vmatprep.subr.mxu1 %v4156_v35 }
0x230e   : > { %v4469_v40 = vsel %vm4266_vm7, %v4465_v39, -inf  ;;  %v4464_v41 = vadd.f32 %v8483_v37, %v4462_v38 }
0x230f   : > { %4470 = vmax.xlane.f32.xlu0 %v4469_v40 }
0x2310   : > { %v4466_v42 = vsel %vm4262_vm8, %v4464_v41, -inf }
0x2311   : > { %4467 = vmax.xlane.f32.xlu1 %v4466_v42 }
0x2325   : > { %4489 = vrot.lane.b32.xlu0 %v8453_v59, %s7530_s22 }
0x2329   : > { %4741 = vrot.lane.b32.xlu0 %v8445_v27, %s7532_s9 }
0x2348   : > { %4268 = vmax.xlane.f32.xlu0 %v4267_v45 }
0x2398   : > { %v4471_v46 = vpop.xlane.xlu0 %4470 }
0x2399   : > { %v4473_v57 = vsub.f32 %v4465_v39, %v4471_v46 }
0x239a   : > { %v4468_v47 = vpop.xlane.xlu1 %4467 }
0x239b   : > { %v4476_v48 = vmul.f32 1.442695, %v4473_v57  ;;  %v4472_v49 = vsub.f32 %v4464_v41, %v4468_v47 }
0x239c   : > { %v4490_v55 = vpop.permute.xlu0 %4489 }
0x239d   : > { %6942 = vpow2.f32 %v4476_v48  ;;  %v4474_v50 = vmul.f32 1.442695, %v4472_v49 }
0x239f   : > { %6944 = vpow2.f32 %v4474_v50 }
0x23a0   : > { %v4742_v56 = vpop.permute.xlu0 %4741 }
0x23aa   : > { %v6943_v51 = vpop.eup %6942 }
0x23ab   : > { %v4481_v52 = vsel %vm4266_vm7, %v6943_v51, 0.0 }
0x23ac   : > { %v6945_v53 = vpop.eup %6944  ;;  %4482 = vadd.xlane.f32.xlu1 %v4481_v52 }
0x23ad   : > { %v4478_v54 = vsel %vm4262_vm8, %v6945_v53, 0.0 }
0x23b0   : > { %4479 = vadd.xlane.f32.xlu1 %v4478_v54 }
0x23c1   : > { %4491 = vrot.lane.b32.xlu1 %v8447_v28, %s7530_s22  ;;  %s8759_s22 = sld [smem:[#allocation61_spill]] }
0x23c5   : > { %4745 = vrot.lane.b32.xlu1 %v8445_v27, %s7533_s6 }
0x23c9   : > { %4743 = vrot.lane.b32.xlu1 %v8440_v8, %s7533_s6  ;;  %s8762_s6 = sld [smem:[#allocation62_spill]] }
0x23cd   : > { %4739 = vrot.lane.b32.xlu1 %v8440_v8, %s7532_s9 }
0x23d1   : > { %v4269_v58 = vpop.xlane.xlu0 %4268 }
0x23d2   : > { %v4271_v60 = vsub.f32 %v4261_v44, %v4269_v58 }
0x23d4   : > { %v4274_v61 = vmul.f32 1.442695, %v4271_v60 }
0x23d6   : > { %6946 = vpow2.f32 %v4274_v61 }
0x23e3   : > { %v8507_v4 = vpop.eup %6946 }
0x23e4   : > { %v4279_v6 = vsel %vm4266_vm7, %v8507_v4, 0.0 }
0x23f1   : > { %4264 = vmax.xlane.f32.xlu1 %v4263_v3 }
0x23f5   : > { %4280 = vadd.xlane.f32.xlu1 %v4279_v6 }
0x2406   : > { %5031 = vrot.lane.b32.xlu1 %v8440_v8, %s7535_s4 }
0x240a   : > { %5027 = vrot.lane.b32.xlu1 %v8440_v8, %s8757_s15 }
0x2435   : > { %v4483_v63 = vpop.xlane.xlu1 %4482 }
0x2436   : > { %6948 = vrcp.f32 %v4483_v63 }
0x2439   : > { %v4480_v9 = vpop.xlane.xlu1 %4479 }
0x243a   : > { %6950 = vrcp.f32 %v4480_v9 }
0x243d   : > { %v4492_v10 = vpop.permute.xlu1 %4491 }
0x243e   : > { %6547 = vmatprep.subr.msk.mxu0 %vm4292_vm6, %v4492_v10 }
0x243f   : > { %6548 = vmatpush3.msk.msra.mxu0 %vm4292_vm6, %v4492_v10 }
0x2440   : > { %6549 = vmatprep.subr.mxu0 %v4490_v55 }
0x2441   : > { %6550 = vmatpush3.msra.mxu0 %v4490_v55  ;;  %v4746_v12 = vpop.permute.xlu1 %4745 }
0x2442   : > { %6554 = vmatprep.subr.mxu0 %v4158_v11 }
0x2443   : > { %v6949_v13 = vpop.eup %6948 }
0x2444   : > { %v4487_v17 = vmul.f32 %v6949_v13, %v6943_v51 }
0x2445   : > { %v4744_v19 = vpop.permute.xlu1 %4743 }
0x2447   : > { %v6951_v15 = vpop.eup %6950 }
0x2448   : > { %v4485_v16 = vmul.f32 %v6951_v15, %v6945_v53 }
0x2449   : > { %v4740_v22 = vpop.permute.xlu1 %4739 }
0x244a   : > { %6551 = vmatprep.mubr.msk.f32.mxu0 %vm4262_vm8, %v4485_v16 }
0x244b   : > { %6552 = vmatmul.mubr.msk.f32.vlgmr.msra.gmra.mxu0 %vm4262_vm8, %v4487_v17 }
0x244c   : > { %6555 = vmatpush3.msra.mxu0 %v4158_v11 }
0x244d   : > { %6556 = vmatprep.subr.mxu0 %v4157_v18 }
0x244e   : > { %6557 = vmatpush3.msra.mxu0 %v4157_v18 }
0x244f   : > { %6568 = vmatprep.subr.msk.mxu0 %vm1472_vm3, %v4746_v12 }
0x247a   : > { %v4265_v23 = vpop.xlane.xlu1 %4264 }
0x247b   : > { %v4270_v24 = vsub.f32 %v4260_v2, %v4265_v23 }
0x247d   : > { %v4272_v8 = vmul.f32 1.442695, %v4270_v24 }
0x247e   : > { %v4281_v5 = vpop.xlane.xlu1 %4280 }
0x247f   : > { %6952 = vpow2.f32 %v4272_v8 }
0x2480   : > { %6954 = vrcp.f32 %v4281_v5 }
0x2482   : > { %v5032_v29 = vpop.permute.xlu1 %5031 }
0x2486   : > { %v5028_v30 = vpop.permute.xlu1 %5027 }
0x248c   : > { %v6953_v25 = vpop.eup %6952 }
0x248d   : > { %v4276_v26 = vsel %vm4262_vm8, %v6953_v25, 0.0  ;;  %v6955_v32 = vpop.eup %6954 }
0x248e   : > { %4277 = vadd.xlane.f32.xlu0 %v4276_v26  ;;  %v4285_v14 = vmul.f32 %v6955_v32, %v8507_v4 }
0x24a4   : > { %5033 = vrot.lane.b32.xlu0 %v8445_v27, %s7535_s4  ;;  %s6043_s4 = sshll.u32 %s7728_s11, 4 }
0x24a8   : > { %5029 = vrot.lane.b32.xlu0 %v8445_v27, %s8757_s15 }
0x250b   : > { %v6553_v1 = vpop.f32.mrf.mxu0 }
0x250d   : > { %v4568_v0 = vpop.f32.mrf.mxu0 }
0x250e   : > { %6558 = vmatprep.mubr.msk.f32.mxu0 %vm1472_vm3, %v4568_v0  ;;  %v4160_v0 = vld [vmem:[#allocation24 + $0x28] sm:$0xff] }
0x250f   : > { %6559 = vmatmul.mubr.msk.f32.vlgmr.msra.gmra.mxu0 %vm1472_vm3, %v6553_v1 }
0x2510   : > { %6569 = vmatpush3.xpose.msk.msra.mxu0 %vm1472_vm3, %v4746_v12  ;;  %6572 = vmatprep.mubr.msk.f32.mxu0 %vm1472_vm3, %v4740_v22 }
0x2511   : > { %6570 = vmatprep.subr.msk.mxu0 %vm1472_vm3, %v4744_v19 }
0x2514   : > { %6571 = vmatpush3.xpose.msk.msra.mxu0 %vm1472_vm3, %v4744_v19 }
0x2517   : > { %6573 = vmatmul.mubr.msk.f32.vlgmr.msra.gmra.mxu0 %vm1472_vm3, %v4742_v56  ;;  %v4278_v27 = vpop.xlane.xlu0 %4277 }
0x2518   : > { %6956 = vrcp.f32 %v4278_v27  ;;  %6593 = vmatprep.mubr.msk.f32.mxu0 %vm1472_vm3, %v5028_v30 }
0x251b   : > { %v5034_v31 = vpop.permute.xlu0 %5033 }
0x251c   : > { %6589 = vmatprep.subr.msk.mxu0 %vm1472_vm3, %v5034_v31 }
0x251d   : > { %6590 = vmatpush3.xpose.msk.msra.mxu0 %vm1472_vm3, %v5034_v31 }
0x251e   : > { %6591 = vmatprep.subr.msk.mxu0 %vm1472_vm3, %v5032_v29 }
0x251f   : > { %v5030_v7 = vpop.permute.xlu0 %5029 }
0x2521   : > { %6592 = vmatpush3.xpose.msk.msra.mxu0 %vm1472_vm3, %v5032_v29  ;;  %v4159_v29 = vld [vmem:[#allocation24 + $0x20] sm:$0xff] }
0x2524   : > { %6594 = vmatmul.mubr.msk.f32.vlgmr.msra.gmra.mxu0 %vm1472_vm3, %v5030_v7 }
0x2525   : > { %v6957_v33 = vpop.eup %6956 }
0x2526   : > { %v4283_v34 = vmul.f32 %v6957_v33, %v6953_v25 }
0x2528   : > { %6537 = vmatprep.mubr.msk.f32.mxu1 %vm4262_vm8, %v4283_v34 }
0x2529   : > { %6538 = vmatmul.mubr.msk.f32.vlgmr.msra.gmra.mxu1 %vm4262_vm8, %v4285_v14 }
0x252a   : > { %6562 = vmatpush3.msra.mxu1 %v4156_v35 }
0x252b   : > { %6563 = vmatprep.subr.mxu1 %v4155_v36 }
0x252c   : > { %6564 = vmatpush3.msra.mxu1 %v4155_v36 }
0x25cf   : > { %v8541_v38 = vpop.f32.mrf.mxu0 }
0x25d1   : > { %v8543_v39 = vpop.f32.mrf.mxu0 }
0x25d7   : > { %v6574_v40 = vpop.f32.mrf.mxu0 }
0x25d8   : > { %v4831_v41 = vmul.f32 0.25, %v6574_v40  ;;  %v4162_v40 = vld [vmem:[#allocation24 + $0x38] sm:$0xff] }
0x25d9   : > { %v4821_v42 = vpop.f32.mrf.mxu0 }
0x25da   : > { %v4830_v43 = vmul.f32 0.25, %v4821_v42  ;;  %v4833_v44 = vadd.f32 %v8483_v37, %v4831_v41  ;;  %v4161_v41 = vld [vmem:[#allocation24 + $0x30] sm:$0xff] }
0x25dc   : > { %v4837_v45 = vsel %vm4266_vm7, %v4833_v44, -inf  ;;  %v4832_v46 = vadd.f32 %v8483_v37, %v4830_v43 }
0x25dd   : > { %4838 = vmax.xlane.f32.xlu0 %v4837_v45 }
0x25de   : > { %v4834_v57 = vsel %vm4262_vm8, %v4832_v46, -inf }
0x25df   : > { %4835 = vmax.xlane.f32.xlu1 %v4834_v57 }
0x25e4   : > { %v6595_v61 = vpop.f32.mrf.mxu0 }
0x25e5   : > { %v5119_v3 = vmul.f32 0.25, %v6595_v61 }
0x25e6   : > { %v5109_v62 = vpop.f32.mrf.mxu0 }
0x25e7   : > { %v5118_v2 = vmul.f32 0.25, %v5109_v62  ;;  %v5121_v6 = vadd.f32 %v8483_v37, %v5119_v3 }
0x25e9   : > { %v6539_v47 = vpop.f32.mrf.mxu1  ;;  %v5120_v4 = vadd.f32 %v8483_v37, %v5118_v2  ;;  %v5125_v9 = vsel %vm4266_vm7, %v5121_v6, -inf }
0x25eb   : > { %v4362_v48 = vpop.f32.mrf.mxu1  ;;  %v5122_v63 = vsel %vm4262_vm8, %v5120_v4, -inf }
0x25ec   : > { %6565 = vmatprep.mubr.msk.f32.mxu1 %vm1472_vm3, %v4362_v48 }
0x25ed   : > { %6566 = vmatmul.mubr.msk.f32.vlgmr.msra.gmra.mxu1 %vm1472_vm3, %v6539_v47 }
0x2666   : > { %v4839_v49 = vpop.xlane.xlu0 %4838 }
0x2667   : > { %v4841_v50 = vsub.f32 %v4833_v44, %v4839_v49  ;;  %v6034_v49 = vld [vmem:[%s8758_s8] ss:$0 sm:$0xff] }
0x2668   : > { %v4836_v51 = vpop.xlane.xlu1 %4835 }
0x2669   : > { %v4844_v52 = vmul.f32 1.442695, %v4841_v50  ;;  %v4840_v53 = vsub.f32 %v4832_v46, %v4836_v51 }
0x266b   : > { %6958 = vpow2.f32 %v4844_v52  ;;  %v4842_v54 = vmul.f32 1.442695, %v4840_v53 }
0x266d   : > { %6960 = vpow2.f32 %v4842_v54 }
0x2678   : > { %v6959_v55 = vpop.eup %6958 }
0x2679   : > { %v4849_v56 = vsel %vm4266_vm7, %v6959_v55, 0.0 }
0x267a   : > { %v6961_v58 = vpop.eup %6960  ;;  %4850 = vadd.xlane.f32.xlu1 %v4849_v56 }
0x267b   : > { %v4846_v60 = vsel %vm4262_vm8, %v6961_v58, 0.0 }
0x267c   : > { %4847 = vadd.xlane.f32.xlu0 %v4846_v60 }
0x268b   : > { %4856 = vrot.lane.b32.xlu1 %v8453_v59, %s7532_s9 }
0x2692   : > { %4858 = vrot.lane.b32.xlu0 %v8447_v28, %s7532_s9  ;;  %s8761_s9 = sld [smem:[#allocation60_spill]] }
0x26ad   : > { %v6567_v30 = vpop.f32.mrf.mxu1 }
0x26ae   : > { %v4736_v42 = vadd.f32 %v6567_v30, %v8541_v38 }
0x26af   : > { %5123 = vmax.xlane.f32.xlu1 %v5122_v63  ;;  %v4730_v27 = vpop.f32.mrf.mxu1 }
0x26b0   : > { %v4731_v47 = vadd.f32 %v4730_v27, %v8543_v39 }
0x26b1   : > { %5126 = vmax.xlane.f32.xlu0 %v5125_v9  ;;  %v5377_v9 = vld [vmem:[#allocation26 + $0x38] sm:$0xff] }
0x26b2   : > { %6610 = vmatprep.subr.mxu0 %v5377_v9 }
0x26b3   : > { %6611 = vmatpush3.msra.mxu0 %v5377_v9  ;;  %v6042_v9 = vld [vmem:[%s7700_s17] ss:$0 sm:$0xff] }
0x2703   : > { %v4851_v10 = vpop.xlane.xlu1 %4850 }
0x2704   : > { %6962 = vrcp.f32 %v4851_v10  ;;  %v5376_v10 = vld [vmem:[#allocation26 + $0x30] sm:$0xff] }
0x2705   : > { %v4848_v11 = vpop.xlane.xlu0 %4847  ;;  %6612 = vmatprep.subr.mxu0 %v5376_v10 }
0x2706   : > { %6964 = vrcp.f32 %v4848_v11  ;;  %v5375_v11 = vld [vmem:[#allocation26 + $0x28] sm:$0xff]  ;;  %6613 = vmatpush3.msra.mxu0 %v5376_v10 }
0x2707   : > { %v4857_v15 = vpop.permute.xlu1 %4856  ;;  %6614 = vmatprep.subr.mxu0 %v5375_v11 }
0x2708   : > { %6615 = vmatpush3.msra.mxu0 %v5375_v11 }
0x2709   : > { %v4859_v13 = vpop.permute.xlu0 %4858 }
0x270a   : > { %6575 = vmatprep.subr.msk.mxu1 %vm4292_vm6, %v4859_v13 }
0x270b   : > { %6576 = vmatpush3.msk.msra.mxu1 %vm4292_vm6, %v4859_v13  ;;  %v5374_v13 = vld [vmem:[#allocation26 + $0x20] sm:$0xff] }
0x270c   : > { %6577 = vmatprep.subr.mxu1 %v4857_v15  ;;  %6616 = vmatprep.subr.mxu0 %v5374_v13 }
0x270d   : > { %6578 = vmatpush3.msra.mxu1 %v4857_v15  ;;  %v5373_v15 = vld [vmem:[#allocation26 + $0x18] sm:$0xff]  ;;  %6617 = vmatpush3.msra.mxu0 %v5374_v13 }
0x270e   : > { %6582 = vmatprep.subr.mxu1 %v4160_v0  ;;  %6618 = vmatprep.subr.mxu0 %v5373_v15 }
0x270f   : > { %6619 = vmatpush3.msra.mxu0 %v5373_v15 }
0x2711   : > { %v6963_v16 = vpop.eup %6962 }
0x2712   : > { %v4855_v18 = vmul.f32 %v6963_v16, %v6959_v55  ;;  %v5372_v16 = vld [vmem:[#allocation26 + $0x10] sm:$0xff] }
0x2713   : > { %v6965_v37 = vpop.eup %6964  ;;  %6620 = vmatprep.subr.mxu0 %v5372_v16 }
0x2714   : > { %v4853_v17 = vmul.f32 %v6965_v37, %v6961_v58  ;;  %v5371_v37 = vld [vmem:[#allocation26 + $0x8] sm:$0xff]  ;;  %6621 = vmatpush3.msra.mxu0 %v5372_v16 }
0x2715   : > { %6622 = vmatprep.subr.mxu0 %v5371_v37 }
0x2716   : > { %6579 = vmatprep.mubr.msk.f32.mxu1 %vm4262_vm8, %v4853_v17  ;;  %v5370_v17 = vld [vmem:[#allocation26] sm:$0xff]  ;;  %6623 = vmatpush3.msra.mxu0 %v5371_v37 }
0x2717   : > { %6580 = vmatmul.mubr.msk.f32.vlgmr.msra.gmra.mxu1 %vm4262_vm8, %v4855_v18  ;;  %6624 = vmatprep.subr.mxu0 %v5370_v17  ;;  %v5483_v18 = vld [vmem:[%s8759_s22 + $0x78] sm:$0xff] }
0x2718   : > { %6583 = vmatpush3.msra.mxu1 %v4160_v0  ;;  %6625 = vmatpush3.msra.mxu0 %v5370_v17  ;;  %v5472_v0 = vld [vmem:[%s8759_s22 + $0x20] sm:$0xff] }
0x2719   : > { %6584 = vmatprep.subr.mxu1 %v4159_v29 }
0x271a   : > { %6585 = vmatpush3.msra.mxu1 %v4159_v29 }
0x2738   : > { %v5124_v12 = vpop.xlane.xlu1 %5123 }
0x2739   : > { %v5128_v19 = vsub.f32 %v5120_v4, %v5124_v12  ;;  %v5482_v12 = vld [vmem:[%s8759_s22 + $0x70] sm:$0xff] }
0x273a   : > { %v5127_v22 = vpop.xlane.xlu0 %5126 }
0x273b   : > { %v5130_v23 = vmul.f32 1.442695, %v5128_v19  ;;  %v5129_v24 = vsub.f32 %v5121_v6, %v5127_v22  ;;  %v5481_v19 = vld [vmem:[%s8759_s22 + $0x68] sm:$0xff]  ;;  %v5480_v22 = vld [vmem:[%s8759_s22 + $0x60] sm:$0xff] }
0x273d   : > { %6966 = vpow2.f32 %v5130_v23  ;;  %v5132_v8 = vmul.f32 1.442695, %v5129_v24  ;;  %v5479_v23 = vld [vmem:[%s8759_s22 + $0x58] sm:$0xff]  ;;  %v5478_v24 = vld [vmem:[%s8759_s22 + $0x50] sm:$0xff] }
0x273f   : > { %6968 = vpow2.f32 %v5132_v8  ;;  %v5477_v8 = vld [vmem:[%s8759_s22 + $0x48] sm:$0xff] }
0x274a   : > { %v6967_v25 = vpop.eup %6966 }
0x274b   : > { %v5134_v26 = vsel %vm4262_vm8, %v6967_v25, 0.0 }
0x274c   : > { %v6969_v5 = vpop.eup %6968  ;;  %5135 = vadd.xlane.f32.xlu0 %v5134_v26  ;;  %v5475_v26 = vld [vmem:[%s8759_s22 + $0x38] sm:$0xff] }
0x274d   : > { %v5137_v1 = vsel %vm4266_vm7, %v6969_v5, 0.0 }
0x274e   : > { %5138 = vadd.xlane.f32.xlu1 %v5137_v1  ;;  %v5473_v1 = vld [vmem:[%s8759_s22 + $0x28] sm:$0xff] }
0x275f   : > { %5144 = vrot.lane.b32.xlu1 %v8453_v59, %s8757_s15 }
0x2762   : > { %5146 = vrot.lane.b32.xlu0 %v8447_v28, %s8757_s15  ;;  %s1226_s15 = scalar_lea.vmem [#allocation27], %s7940_s13 }
0x2763   : > { %s5609_s8 = sshll.u32 %s1226_s15, 4  ;;  %s5610_s8 = int_to_ptr.vmem [resolvable:$true] %s5609_s8 }
0x2764   : > { %p7381_p9 = scmp.lt.s32.totalorder %s5610_s8, %s7379_s18 }
0x27d5   : > { %v5136_v31 = vpop.xlane.xlu0 %5135 }
0x27d6   : > { %6970 = vrcp.f32 %v5136_v31 }
0x27d7   : > { %v6581_v7 = vpop.f32.mrf.mxu1  ;;  %v5139_v32 = vpop.xlane.xlu1 %5138 }
0x27d8   : > { %6972 = vrcp.f32 %v5139_v32 }
0x27d9   : > { %v4935_v33 = vpop.f32.mrf.mxu1  ;;  %v5147_v34 = vpop.permute.xlu0 %5146 }
0x27da   : > { %6586 = vmatprep.mubr.msk.f32.mxu1 %vm1472_vm3, %v4935_v33  ;;  %6596 = vmatprep.subr.msk.mxu1 %vm4292_vm6, %v5147_v34 }
0x27db   : > { %6587 = vmatmul.mubr.msk.f32.vlgmr.msra.gmra.mxu1 %vm1472_vm3, %v6581_v7  ;;  %v5145_v14 = vpop.permute.xlu1 %5144 }
0x27dc   : > { %6597 = vmatpush3.msk.msra.mxu1 %vm4292_vm6, %v5147_v34  ;;  %v6035_v34 = vld [vmem:[%s8760_s14] ss:$0 sm:$0xff]  ;;  %s5607_s14 = scalar_lea.hbm %s8764_s16, %s6043_s4 }
0x27dd   : > { %6598 = vmatprep.subr.mxu1 %v5145_v14 }
0x27de   : > { %6599 = vmatpush3.msra.mxu1 %v5145_v14 }
0x27df   : > { %6603 = vmatprep.subr.mxu1 %v4162_v40 }
0x27e3   : > { %v6971_v28 = vpop.eup %6970 }
0x27e4   : > { %v5141_v59 = vmul.f32 %v6971_v28, %v6967_v25  ;;  %v5476_v25 = vld [vmem:[%s8759_s22 + $0x40] sm:$0xff] }
0x27e5   : > { %v6973_v35 = vpop.eup %6972 }
0x27e6   : > { %6600 = vmatprep.mubr.msk.f32.mxu1 %vm4262_vm8, %v5141_v59  ;;  %v5143_v36 = vmul.f32 %v6973_v35, %v6969_v5  ;;  %v5474_v5 = vld [vmem:[%s8759_s22 + $0x30] sm:$0xff] }
0x27e8   : > { %6601 = vmatmul.mubr.msk.f32.vlgmr.msra.gmra.mxu1 %vm4262_vm8, %v5143_v36  ;;  %v6036_v36 = vld [vmem:[%s7690_s25] ss:$0 sm:$0xff] }
0x27e9   : > { %6604 = vmatpush3.msra.mxu1 %v4162_v40 }
0x27ea   : > { %6605 = vmatprep.subr.mxu1 %v4161_v41 }
0x27eb   : > { %6606 = vmatpush3.msra.mxu1 %v4161_v41 }
0x27ec   : > { %6629 = vmatprep.subr.mxu1 %v5483_v18 }
0x289b   : > { %v6588_v43 = vpop.f32.mrf.mxu1 }
0x289c   : > { %v5026_v44 = vadd.f32 %v6588_v43, %v4736_v42  ;;  %v5471_v43 = vld [vmem:[%s8759_s22 + $0x18] sm:$0xff] }
0x289d   : > { %v5016_v45 = vpop.f32.mrf.mxu1 }
0x289e   : > { %v5025_v50 = vadd.f32 %v5016_v45, %v4731_v47  ;;  %v5469_v45 = vld [vmem:[%s8759_s22 + $0x8] sm:$0xff] }
0x28a8   : > { %v6602_v46 = vpop.f32.mrf.mxu1 }
0x28aa   : > { %v5223_v57 = vpop.f32.mrf.mxu1 }
0x28ab   : > { %6607 = vmatprep.mubr.msk.f32.mxu1 %vm1472_vm3, %v5223_v57  ;;  %v6037_v57 = vld [vmem:[%s8761_s9] ss:$0 sm:$0xff]  ;;  %s5597_s9 = scalar_lea.sflag [#allocation5], %s7940_s13 }
0x28ac   : > { %6608 = vmatmul.mubr.msk.f32.vlgmr.msra.gmra.mxu1 %vm1472_vm3, %v6602_v46  ;;  %v5468_v46 = vld [vmem:[%s8759_s22] sm:$0xff] }
0x28ad   : > { %6630 = vmatpush3.msra.mxu1 %v5483_v18 }
0x28ae   : > { %6631 = vmatprep.subr.mxu1 %v5482_v12 }
0x28af   : > { %6632 = vmatpush3.msra.mxu1 %v5482_v12 }
0x28b0   : > { %6633 = vmatprep.subr.mxu1 %v5481_v19 }
0x28b1   : > { %6634 = vmatpush3.msra.mxu1 %v5481_v19 }
0x28b2   : > { %6635 = vmatprep.subr.mxu1 %v5480_v22 }
0x28b3   : > { %6636 = vmatpush3.msra.mxu1 %v5480_v22 }
0x28b4   : > { %6637 = vmatprep.subr.mxu1 %v5479_v23 }
0x28b5   : > { %6638 = vmatpush3.msra.mxu1 %v5479_v23 }
0x28b6   : > { %6639 = vmatprep.subr.mxu1 %v5478_v24 }
0x28b7   : > { %6640 = vmatpush3.msra.mxu1 %v5478_v24 }
0x28b8   : > { %6641 = vmatprep.subr.mxu1 %v5477_v8 }
0x28b9   : > { %6642 = vmatpush3.msra.mxu1 %v5477_v8 }
0x28ba   : > { %6643 = vmatprep.subr.mxu1 %v5476_v25 }
0x28bb   : > { %6644 = vmatpush3.msra.mxu1 %v5476_v25 }
0x28bc   : > { %6645 = vmatprep.subr.mxu1 %v5475_v26 }
0x28bd   : > { %6646 = vmatpush3.msra.mxu1 %v5475_v26 }
0x28be   : > { %6647 = vmatprep.subr.mxu1 %v5474_v5 }
0x28bf   : > { %6648 = vmatpush3.msra.mxu1 %v5474_v5 }
0x28c0   : > { %6649 = vmatprep.subr.mxu1 %v5473_v1 }
0x28c1   : > { %6650 = vmatpush3.msra.mxu1 %v5473_v1 }
0x28c2   : > { %6651 = vmatprep.subr.mxu1 %v5472_v0 }
0x28c3   : > { %6652 = vmatpush3.msra.mxu1 %v5472_v0 }
0x28c4   : > { %6653 = vmatprep.subr.mxu1 %v5471_v43 }
0x28c5   : > { %6654 = vmatpush3.msra.mxu1 %v5471_v43 }
0x296c   : > { %v6609_v48 = vpop.f32.mrf.mxu1 }
0x296d   : > { %v5314_v51 = vadd.f32 %v6609_v48, %v5026_v44  ;;  %v5470_v44 = vld [vmem:[%s8759_s22 + $0x10] sm:$0xff] }
0x296e   : > { %v5304_v52 = vpop.f32.mrf.mxu1  ;;  %6655 = vmatprep.subr.mxu1 %v5470_v44 }
0x296f   : > { %v5323_v53 = vadd.f32 %v6034_v49, %v5314_v51  ;;  %v5313_v54 = vadd.f32 %v5304_v52, %v5025_v50  ;;  %6656 = vmatpush3.msra.mxu1 %v5470_v44 }
0x2970   : > { %6657 = vmatprep.subr.mxu1 %v5469_v45 }
0x2971   : > { %v5322_v55 = vadd.f32 %v6034_v49, %v5313_v54  ;;  %v5325_v38 = vadd.f32 %v5323_v53, %v8434_v21  ;;  %6658 = vmatpush3.msra.mxu1 %v5469_v45  ;;  %v6040_v54 = vld [vmem:[%s8762_s6] ss:$0 sm:$0xff]  ;;  %s7374_s6 = scalar_lea.vmem %s5610_s8, 16 }
0x2972   : > { %6659 = vmatprep.subr.mxu1 %v5468_v46  ;;  %p7375_p12 = scmp.ne.s32.totalorder %s5610_s8, %s7374_s6 }
0x2973   : > { %v5331_v56 = vsel %vm4038_vm5, %v5325_v38, 0.0  ;;  %v5324_v58 = vadd.f32 %v5322_v55, %v8429_v20  ;;  %6660 = vmatpush3.msra.mxu1 %v5468_v46 }
0x2974   : > { %5332 = vadd.xlane.f32.xlu0 %v5331_v56  ;;  %p7376_p4 = pnand %p7375_p12, %p8765_p2 }
0x2975   : > { %v5328_v60 = vsel %vm1329_vm2, %v5324_v58, 0.0 }
0x2976   : > { %5329 = vadd.xlane.f32.xlu1 %v5328_v60  ;;  %p7377_p5 = pneg %p7376_p4 }
0x29fd   : > { %v5333_v61 = vpop.xlane.xlu0 %5332 }
0x29fe   : > { %v5335_v39 = vmul.f32 0.015625, %v5333_v61 }
0x29ff   : > { %v5330_v62 = vpop.xlane.xlu1 %5329 }
0x2a00   : > { %v8586_v2 = vsub.f32 %v5325_v38, %v5335_v39  ;;  %v5334_v3 = vmul.f32 0.015625, %v5330_v62 }
0x2a02   : > { %v8588_v4 = vsub.f32 %v5324_v58, %v5334_v3  ;;  %v5339_v6 = vmul.f32 %v8586_v2, %v8586_v2 }
0x2a04   : > { %v5343_v21 = vsel %vm4038_vm5, %v5339_v6, 0.0  ;;  %v5338_v20 = vmul.f32 %v8588_v4, %v8588_v4 }
0x2a05   : > { %5344 = vadd.xlane.f32.xlu1 %v5343_v21 }
0x2a06   : > { %v5340_v63 = vsel %vm1329_vm2, %v5338_v20, 0.0  ;;  %v6041_v20 = vld [vmem:[%s8763_s5] ss:$0 sm:$0xff]  ;;  %s7380_s5 = scalar_lea.vmem %s7379_s18, 32 }
0x2a07   : > { %5341 = vadd.xlane.f32.xlu0 %v5340_v63  ;;  %p7382_p10 = scmp.lt.s32.totalorder %s7380_s5, %s7374_s6 }
0x2a09   : > { %p7383_p13 = por %p7382_p10, %p7381_p9 }
0x2a0b   : > { %p7384_p0 = pnand %p7383_p13, %p7377_p5 }
0x2a8e   : > { %v5345_v29 = vpop.xlane.xlu1 %5344 }
0x2a8f   : > { %v5347_v30 = vmul.f32 0.015625, %v5345_v29 }
0x2a90   : > { %v5342_v27 = vpop.xlane.xlu0 %5341 }
0x2a91   : > { %v5349_v31 = vadd.f32 1e-05, %v5347_v30  ;;  %v5346_v7 = vmul.f32 0.015625, %v5342_v27 }
0x2a93   : > { %6974 = vrsqrt.f32 %v5349_v31  ;;  %v5348_v32 = vadd.f32 1e-05, %v5346_v7 }
0x2a95   : > { %6976 = vrsqrt.f32 %v5348_v32 }
0x2aa0   : > { %v6975_v33 = vpop.eup %6974 }
0x2aa1   : > { %v5353_v14 = vmul.f32 %v6975_v33, %v8586_v2 }
0x2aa2   : > { %v6977_v28 = vpop.eup %6976 }
0x2aa3   : > { %v5352_v59 = vmul.f32 %v6977_v28, %v8588_v4  ;;  %v5361_v35 = vmul.f32 %v6035_v34, %v5353_v14 }
0x2aa5   : > { %v5360_v40 = vmul.f32 %v6035_v34, %v5352_v59  ;;  %v5369_v42 = vadd.f32 %v6036_v36, %v5361_v35 }
0x2aa7   : > { %v5368_v41 = vadd.f32 %v6036_v36, %v5360_v40 }
0x2aa9   : > { %6626 = vmatprep.mubr.msk.f32.mxu0 %vm1329_vm2, %v5368_v41 }
0x2aaa   : > { %6627 = vmatmul.mubr.msk.f32.vlgmr.msra.gmra.mxu0 %vm1329_vm2, %v5369_v42 }
0x2b6a   : > { %v6628_v47 = vpop.f32.mrf.mxu0 }
0x2b6b   : > { %v5463_v48 = vadd.f32 %v6628_v47, %v6037_v57 }
0x2b6c   : > { %v5457_v49 = vpop.f32.mrf.mxu0 }
0x2b6d   : > { %v5458_v50 = vadd.f32 %v6037_v57, %v5457_v49  ;;  %v5467_v52 = vmax.f32 %v5463_v48, 0.0 }
0x2b6f   : > { %v5466_v51 = vmax.f32 %v5458_v50, 0.0 }
0x2b71   : > { %6661 = vmatprep.mubr.f32.mxu1 %v5466_v51 }
0x2b72   : > { %6662 = vmatmul.mubr.f32.vlgmr.msra.gmra.mxu1 %v5467_v52 }
0x2c32   : > { %v6663_v53 = vpop.f32.mrf.mxu1 }
0x2c34   : > { %v5557_v55 = vpop.f32.mrf.mxu1 }
0x2c35   : > { %v5558_v38 = vadd.f32 %v6040_v54, %v5557_v55 }
0x2c37   : > { %v5565_v56 = vadd.f32 %v5558_v38, %v5368_v41 }
0x2c39   : > { %v5568_v58 = vsel %vm1329_vm2, %v5565_v56, 0.0 }
0x2c3a   : > { %5569 = vadd.xlane.f32.xlu0 %v5568_v58 }
0x2cc3   : > { %v5570_v60 = vpop.xlane.xlu0 %5569 }
0x2cc4   : > { %v5571_v61 = vmul.f32 0.015625, %v5570_v60 }
0x2cc6   : > { %v5572_v39 = vsub.f32 %v5565_v56, %v5571_v61 }
0x2cc8   : > { %v5573_v62 = vmul.f32 %v5572_v39, %v5572_v39 }
0x2cca   : > { %v5574_v2 = vsel %vm1329_vm2, %v5573_v62, 0.0 }
0x2ccb   : > { %5575 = vadd.xlane.f32.xlu1 %v5574_v2 }
0x2d54   : > { %v5576_v3 = vpop.xlane.xlu1 %5575 }
0x2d55   : > { %v5577_v4 = vmul.f32 0.015625, %v5576_v3 }
0x2d57   : > { %v5578_v6 = vadd.f32 1e-05, %v5577_v4 }
0x2d59   : > { %6978 = vrsqrt.f32 %v5578_v6 }
0x2d66   : > { %v6979_v21 = vpop.eup %6978 }
0x2d67   : > { %v5580_v63 = vmul.f32 %v6979_v21, %v5572_v39 }
0x2d69   : > { %v5587_v10 = vmul.f32 %v6041_v20, %v5580_v63 }
0x2d6b   : > { %v5594_v11 = vadd.f32 %v6042_v9, %v5587_v10 }
0x2d6d   : > { %5595 = vst.msk [vmem:[%s1226_s15] sm:$0x1] %vm4038_vm5, %v5594_v11 }
0x2d6e   : > { %7387 = shalt.err (!%p7384_p0)
}
0x2d6f   : > { %s7388_s11 = scalar_lea.hbm %s5607_s14, 16  ;;  %s7392_s13 = scalar_lea.hbm %s8764_s16, 64 }
0x2d70   : > { %p7389_p3 = scmp.ne.s32.totalorder %s5607_s14, %s7388_s11  ;;  %p7393_p1 = scmp.lt.s32.totalorder %s5607_s14, %s8764_s16 }
0x2d71   : > { %p7394_p6 = scmp.lt.s32.totalorder %s7392_s13, %s7388_s11 }
0x2d72   : > { %p7390_p8 = pnand %p7389_p3, %p8765_p2 }
0x2d73   : > { %p7395_p7 = por %p7394_p6, %p7393_p1 }
0x2d74   : > { %p7391_p11 = pneg %p7390_p8 }
0x2d76   : > { %p7396_p12 = pnand %p7395_p7, %p7391_p11 }
0x2d78   : > { %7399 = shalt.err (!%p7396_p12)
}
0x2d79   : > { %6720 = dma.vmem_to_hbm [thread:$0]  (%p8765_p2), %s5610_s8, 16, %s5607_s14, %s5597_s9  }
0x2d7a PF: > { %p6800_p4 = scmp.ge.s32.totalorder %s7470_s0, 2  ;;  %s5621_s5 = sand.u32 1, %s7458_s28  }
0x2d7b   : > { %p8766_p5 = scmp.ne.s32.totalorder %s8729_s10, 0  ;;  %s5622_s18 = scalar_lea.sflag [#allocation5], %s5621_s5 }
0x2d7d   : > { %p6770_p9 = pnand %p6800_p4, %p8766_p5 }
0x2d7f   : > { %p6771_p10 = pneg %p6770_p9 }
0x2d81   : > { %7453 = dma.done.wait (%p6771_p10), %s5622_s18, 16  }
0x2d82   : > { %7455 = vsyncadd (%p6771_p10), %s5622_s18, 4294967280  ;;  %p87_p13 = scmp.ge.s32.totalorder %s7852_s7, 6   ;;  %s8767_s28 = smov %s7462_s1 }
0x2d83   : > { %s8768_s1 = smov %s7466_s2  ;;  %s8769_s2 = smov %s7864_s12 }
0x2d84   : > { %s8770_s0 = smov %s7852_s7  ;;  %89 = sbr.rel (!%p87_p13) target bundleno = 80 (0x50), region = 305 }
0x2d89   :  { %5626 = vsyncpa [#allocation4], 1 }
0x2d8a   :  { %5628 = vsyncpa [#allocation4 + $0x1], 1 }
0x2d8b   :  { %5629 = vsyncpa [#allocation7], 1 }
0x2d8c   :  { %5631 = vsyncpa [#allocation7 + $0x1], 1 }
0x2d8d   :  { %5632 = vsyncpa [#allocation10], 1 }
0x2d8e   :  { %5633 = vsyncpa [#allocation13], 1 }
0x2d8f   :  { %5634 = vsyncpa [#allocation16], 1 }
0x2d90   :  { %5635 = vsyncpa [#allocation19], 1 }
0x2d91   :  { %5636 = vsyncpa [#allocation22], 1 }
0x2d92   :  { %5637 = vsyncpa [#allocation25], 1 }
0x2d93   :  { %5638 = vsyncpa [#allocation5], 1 }
0x2d94   :  { %5640 = vsyncpa [#allocation5 + $0x1], 1 }

</bundles_post_ra>
